<compile_context>
chip_gen: v7x
topology: tpu7x:2x2x1
jax: 0.10.0
libtpu: 0.0.40
codegen_flags: <defaults>
</compile_context>

<pallas_src>
import functools

import jax
import jax.numpy as jnp
from jax.experimental import pallas as pl
from jax.experimental.pallas import tpu as pltpu


# ---------------------------- Pallas helpers ----------------------------

def _const_spec(shape):
    """Full-array block whose index does not change over the grid."""
    zeros = (0,) * len(shape)
    return pl.BlockSpec(tuple(shape), lambda i, _z=zeros: _z)


# ----------------------- fused Net forward kernel -----------------------

def _fused_net_kernel(adj_ref, x_ref, pool_ref, w1_ref, w2_ref, lvec_ref,
                      emb_ref, wih_ref, whh_ref, lbias_ref,
                      gw1_ref, gvec_ref, gw2_ref,
                      out_ref, ig_scr,
                      *, num_layers, dim, seq_len, batch, hidden_pad):
    pid = pl.program_id(0)
    bf16 = jnp.bfloat16

    def proj_head_and_normalize(z_pre):
        """g: Linear1(pre-act) -> BN(train) -> ReLU -> Linear2(no bias) -> F.normalize."""
        gb1 = gvec_ref[0:1, :]
        ggam = gvec_ref[1:2, :]
        gbet = gvec_ref[2:3, :]
        z = z_pre + gb1
        mean = jnp.mean(z, axis=0, keepdims=True)
        var = jnp.mean(jnp.square(z - mean), axis=0, keepdims=True)   # biased var
        z = (z - mean) * jax.lax.rsqrt(var + 1e-5) * ggam + gbet
        z = jnp.maximum(z, 0.0)
        z = jnp.dot(z.astype(bf16), gw2_ref[...], preferred_element_type=jnp.float32)
        nrm = jnp.sqrt(jnp.sum(z * z, axis=1, keepdims=True))
        return z / jnp.maximum(nrm, 1e-12)                            # F.normalize(dim=1)

    # ------------------------- program 0: GIN branch -------------------------
    @pl.when(pid == 0)
    def _():
        adj = adj_ref[...]                    # (A + I), dense [N, N], bf16
        pool = pool_ref[...]                  # [G, N] graph membership, bf16
        h = x_ref[...]                        # [N, dim] (feature-padded), f32
        num_graphs = pool_ref.shape[0]
        proj_dim = gw1_ref.shape[1]

        # accumulate (global_add_pool(h_l) @ g_w1_block_l) across layers; this
        # is exactly concat(xpool, 1) @ g_w1 without the lane-offset concat.
        acc = jnp.zeros((num_graphs, proj_dim), jnp.float32)

        for l in range(num_layers):
            # GIN aggregation (eps=0): x_i + sum_j x_j
            agg = jnp.dot(adj, h.astype(bf16), preferred_element_type=jnp.float32)
            z = jnp.dot(agg.astype(bf16), w1_ref[l], preferred_element_type=jnp.float32)
            z = jnp.maximum(z + lvec_ref[4 * l + 0:4 * l + 1, :], 0.0)
            z = jnp.dot(z.astype(bf16), w2_ref[l], preferred_element_type=jnp.float32)
            z = jnp.maximum(z + lvec_ref[4 * l + 1:4 * l + 2, :], 0.0)   # outer F.relu
            # BatchNorm1d(dim), train mode (biased variance) in f32
            mean = jnp.mean(z, axis=0, keepdims=True)
            var = jnp.mean(jnp.square(z - mean), axis=0, keepdims=True)
            h = ((z - mean) * jax.lax.rsqrt(var + 1e-5)
                 * lvec_ref[4 * l + 2:4 * l + 3, :]
                 + lvec_ref[4 * l + 3:4 * l + 4, :])

            pooled = jnp.dot(pool, h.astype(bf16), preferred_element_type=jnp.float32)
            acc = acc + jnp.dot(pooled.astype(bf16),
                                gw1_ref[l * dim:(l + 1) * dim, :],
                                preferred_element_type=jnp.float32)

        out_ref[...] = proj_head_and_normalize(acc)

    # ------------------------ program 1: LSTM branch ------------------------
    @pl.when(pid == 1)
    def _():
        Hp = hidden_pad
        B = batch

        # Hoisted input projection: every timestep's x_t @ W_ih + b in one MXU
        # sequence, written to VMEM scratch and sliced per step below.
        ig_scr[...] = (jnp.dot(emb_ref[...].astype(bf16), wih_ref[...],
                               preferred_element_type=jnp.float32)
                       + lbias_ref[...])

        h = jnp.zeros((B, Hp), jnp.float32)
        c = jnp.zeros((B, Hp), jnp.float32)

        # time loop fully unrolled inside one kernel invocation (T small/static);
        # whh is read from its ref at the use site (never held live across the loop)
        for t in range(seq_len):
            gates = (ig_scr[t * B:(t + 1) * B, :]
                     + jnp.dot(h.astype(bf16), whh_ref[...],
                               preferred_element_type=jnp.float32))
            # PyTorch LSTM gate order i, f, g, o — slices on 128-lane boundaries
            i_g = jax.nn.sigmoid(gates[:, 0 * Hp:1 * Hp])
            f_g = jax.nn.sigmoid(gates[:, 1 * Hp:2 * Hp])
            g_g = jnp.tanh(gates[:, 2 * Hp:3 * Hp])
            o_g = jax.nn.sigmoid(gates[:, 3 * Hp:4 * Hp])
            c = f_g * c + i_g * g_g
            h = o_g * jnp.tanh(c)            # padded lanes stay exactly 0

        # feat[:, -1] -> projection head (padded rows of g_w1 are zero)
        z_pre = jnp.dot(h.astype(bf16), gw1_ref[...], preferred_element_type=jnp.float32)
        out_ref[...] = proj_head_and_normalize(z_pre)


def fused_net_projected(x, adj_plus_i, pool_mat, emb_seq, params,
                        *, dim, hidden, hidden_pad):
    """One pallas_call computing both normalized projections."""
    L = len(params["gin"])
    G, N = pool_mat.shape
    T, B, E = emb_seq.shape
    assert G == B, "graph batch and SMILES batch must match"
    H, Hp = hidden, hidden_pad
    out_dim = params["g_w2"].shape[1]
    f32, bf16 = jnp.float32, jnp.bfloat16

    # ---------------- GIN slabs (layer-0 padded 8 -> dim features) ----------------
    num_features = x.shape[1]
    x_pad = jnp.pad(x.astype(f32), ((0, 0), (0, dim - num_features)))
    w1_list = ([jnp.pad(params["gin"][0]["w1"], ((0, dim - num_features), (0, 0)))]
               + [lp["w1"] for lp in params["gin"][1:]])
    w1_stack = jnp.stack(w1_list).astype(bf16)                               # [L, dim, dim]
    w2_stack = jnp.stack([lp["w2"] for lp in params["gin"]]).astype(bf16)    # [L, dim, dim]
    lvec = jnp.stack([v for lp in params["gin"]
                      for v in (lp["b1"], lp["b2"], lp["bn_gamma"], lp["bn_beta"])]
                     ).astype(f32)                                           # [4L, dim]

    # ------------- LSTM slabs (hidden 80 -> 128 so gate slices lane-align) -------------
    def pad_gate_cols(w):                                                    # [R,4H]->[R,4Hp]
        R = w.shape[0]
        return jnp.pad(w.reshape(R, 4, H),
                       ((0, 0), (0, 0), (0, Hp - H))).reshape(R, 4 * Hp)

    wih_p = pad_gate_cols(params["w_ih_t"]).astype(bf16)                                # [E, 4Hp]
    whh_p = jnp.pad(pad_gate_cols(params["w_hh_t"]), ((0, Hp - H), (0, 0))).astype(bf16)  # [Hp,4Hp]
    bias_p = pad_gate_cols((params["b_ih"] + params["b_hh"]).reshape(1, 4 * H)).astype(f32)
    emb_flat = emb_seq.reshape(T * B, E).astype(f32)                         # t-major rows

    # ---------------- shared projection head g ----------------
    gw1_pad = jnp.pad(params["g_w1"], ((0, Hp - L * dim), (0, 0))).astype(bf16)  # [Hp, 4*dim]
    gvec = jnp.stack([params["g_b1"], params["g_bn_gamma"],
                      params["g_bn_beta"]]).astype(f32)                          # [3, 4*dim]
    gw2 = params["g_w2"].astype(bf16)                                            # [4*dim, 6*dim]

    inputs = [adj_plus_i.astype(bf16), x_pad, pool_mat.astype(bf16),
              w1_stack, w2_stack, lvec,
              emb_flat, wih_p, whh_p, bias_p,
              gw1_pad, gvec, gw2]

    kern = functools.partial(_fused_net_kernel, num_layers=L, dim=dim,
                             seq_len=T, batch=B, hidden_pad=Hp)

    # TODO(synk): for large graphs, replace the resident dense [N,N] adjacency with a
    # scalar-prefetch segment-sum over edge_index and a tiled aggregation matmul
    # (and mark constant weight slabs pipeline_mode=pl.Buffered(1)) to stay within
    # v7x's 64 MiB VMEM.
    out = pl.pallas_call(
        kern,
        grid=(2,),                                      # program 0: GIN, program 1: LSTM
        out_shape=jax.ShapeDtypeStruct((2, G, out_dim), f32),
        in_specs=[_const_spec(a.shape) for a in inputs],
        out_specs=pl.BlockSpec((None, G, out_dim), lambda i: (i, 0, 0)),
        scratch_shapes=[pltpu.VMEM((T * B, 4 * Hp), f32)],
        compiler_params=pltpu.CompilerParams(
            dimension_semantics=("parallel",),
            vmem_limit_bytes=32 * 1024 * 1024),
    )(*inputs)
    return out[0], out[1]


# ------------------------- parameters (synthetic) -------------------------

def xavier_uniform(key, fan_in, fan_out):
    bound = (6.0 / (fan_in + fan_out)) ** 0.5
    return jax.random.uniform(key, (fan_in, fan_out), jnp.float32, -bound, bound)


def init_params(key, num_features, dim, num_gc_layers, vocab_size,
                embedding_dim, hidden, padding_idx):
    keys = iter(jax.random.split(key, 64))
    params = {}

    gin = []
    for i in range(num_gc_layers):
        fin = num_features if i == 0 else dim
        gin.append(dict(
            w1=xavier_uniform(next(keys), fin, dim),
            b1=jnp.zeros((dim,), jnp.float32),
            w2=xavier_uniform(next(keys), dim, dim),
            b2=jnp.zeros((dim,), jnp.float32),
            bn_gamma=jnp.ones((dim,), jnp.float32),
            bn_beta=jnp.zeros((dim,), jnp.float32),
        ))
    params["gin"] = gin

    # SMILES encoder: Embedding(padding_idx) + 1-layer unidirectional LSTM
    emb = jax.random.normal(next(keys), (vocab_size, embedding_dim), jnp.float32)
    params["emb"] = emb.at[padding_idx].set(0.0)
    k = 1.0 / (hidden ** 0.5)
    params["w_ih_t"] = jax.random.uniform(next(keys), (embedding_dim, 4 * hidden),
                                          jnp.float32, -k, k)
    params["w_hh_t"] = jax.random.uniform(next(keys), (hidden, 4 * hidden),
                                          jnp.float32, -k, k)
    params["b_ih"] = jax.random.uniform(next(keys), (4 * hidden,), jnp.float32, -k, k)
    params["b_hh"] = jax.random.uniform(next(keys), (4 * hidden,), jnp.float32, -k, k)

    # projection head g
    params["g_w1"] = xavier_uniform(next(keys), num_gc_layers * dim, 4 * dim)
    params["g_b1"] = jnp.zeros((4 * dim,), jnp.float32)
    params["g_bn_gamma"] = jnp.ones((4 * dim,), jnp.float32)
    params["g_bn_beta"] = jnp.zeros((4 * dim,), jnp.float32)
    params["g_w2"] = xavier_uniform(next(keys), 4 * dim, 6 * dim)   # bias=False
    return params


# ------------------------------ forward pass ------------------------------

@functools.partial(jax.jit,
                   static_argnames=("num_graphs", "hidden", "hidden_pad", "dim"))
def net_forward(params, x, edge_index, batch, tokens,
                num_graphs, hidden, hidden_pad, dim):
    N = x.shape[0]
    # dense (A + I): A[dst, src] += 1 per edge (src -> dst); scatter kept in XLA.
    adj = jnp.zeros((N, N), jnp.float32).at[edge_index[1], edge_index[0]].add(1.0)
    adj_plus_i = adj + jnp.eye(N, dtype=jnp.float32)
    pool_mat = (batch[None, :] == jnp.arange(num_graphs)[:, None]).astype(jnp.float32)
    # embedding gather kept as XLA glue (data-dependent gather), time-major
    emb_seq = jnp.take(params["emb"], tokens.T, axis=0)          # [T, B, E]
    # NOTE: like the reference Net, the last timestep (feat[:, -1]) is used even
    # if the sequence tail is padding tokens.
    return fused_net_projected(x, adj_plus_i, pool_mat, emb_seq, params,
                               dim=dim, hidden=hidden, hidden_pad=hidden_pad)


# ---------------------------------- main ----------------------------------

if __name__ == "__main__":
    # hyperparameters (small, consistent with Net.__init__)
    num_features = 8
    dim = 16
    num_gc_layers = 5
    vocab_size = 20
    max_len = 8
    padding_idx = 0
    embedding_dim = 16
    hidden = num_gc_layers * dim                      # LSTM hidden = num_gc_layers * dim = 80
    hidden_pad = ((hidden + 127) // 128) * 128        # 80 -> 128 (lane-aligned gates)

    num_graphs = 8                                    # >= 8 graphs / SMILES to fill sublanes
    nodes_per_graph = 5
    N = num_graphs * nodes_per_graph

    key = jax.random.PRNGKey(0)
    kx, ktok, kparam = jax.random.split(key, 3)

    x = jax.random.normal(kx, (N, num_features), jnp.float32)
    # bidirectional chain edges inside each graph
    src, dst = [], []
    for g in range(num_graphs):
        base = g * nodes_per_graph
        for i in range(nodes_per_graph - 1):
            src += [base + i, base + i + 1]
            dst += [base + i + 1, base + i]
    edge_index = jnp.array([src, dst], dtype=jnp.int32)            # [2, 64]
    batch = jnp.repeat(jnp.arange(num_graphs, dtype=jnp.int32), nodes_per_graph)
    tokens = jax.random.randint(ktok, (num_graphs, max_len), 1, vocab_size,
                                dtype=jnp.int32)

    params = init_params(kparam, num_features, dim, num_gc_layers,
                         vocab_size, embedding_dim, hidden, padding_idx)

    out1, out2 = net_forward(params, x, edge_index, batch, tokens,
                             num_graphs=num_graphs, hidden=hidden,
                             hidden_pad=hidden_pad, dim=dim)
    jax.block_until_ready((out1, out2))

    assert out1.shape == (num_graphs, 6 * dim)
    assert out2.shape == (num_graphs, 6 * dim)
    assert bool(jnp.all(jnp.isfinite(out1))) and bool(jnp.all(jnp.isfinite(out2)))
    print("KERNEL_OK")
</pallas_src>

<mosaic_0001>
module attributes {stable_mosaic.version = 11 : i64} {
  func.func private @main(%arg0: i32) attributes {dimension_semantics = [#tpu.dimension_semantics<core_parallel>], iteration_bounds = array<i64: 2>, tpu.core_type = #tpu.core_type<sc_scalar_subcore>, window_params = []} {
    return
  }
}

module attributes {stable_mosaic.version = 11 : i64} {
  func.func private @main(%arg0: i32) attributes {dimension_semantics = [#tpu.dimension_semantics<core_parallel>], iteration_bounds = array<i64: 2>, tpu.core_type = #tpu.core_type<sc_scalar_subcore>, window_params = []} {
    return
  }
}

module attributes {stable_mosaic.version = 11 : i64} {
  func.func @_fused_net_kernel(%arg0: i32, %arg1: memref<40x40xbf16, #tpu.memory_space<vmem>>, %arg2: memref<40x16xf32, #tpu.memory_space<vmem>>, %arg3: memref<8x40xbf16, #tpu.memory_space<vmem>>, %arg4: memref<5x16x16xbf16, #tpu.memory_space<vmem>>, %arg5: memref<5x16x16xbf16, #tpu.memory_space<vmem>>, %arg6: memref<20x16xf32, #tpu.memory_space<vmem>>, %arg7: memref<64x16xf32, #tpu.memory_space<vmem>>, %arg8: memref<16x512xbf16, #tpu.memory_space<vmem>>, %arg9: memref<128x512xbf16, #tpu.memory_space<vmem>>, %arg10: memref<1x512xf32, #tpu.memory_space<vmem>>, %arg11: memref<128x64xbf16, #tpu.memory_space<vmem>>, %arg12: memref<3x64xf32, #tpu.memory_space<vmem>>, %arg13: memref<64x96xbf16, #tpu.memory_space<vmem>>, %arg14: memref<1x8x96xf32, #tpu.memory_space<vmem>>, %arg15: memref<64x512xf32, #tpu.memory_space<vmem>>) attributes {dimension_semantics = [#tpu.dimension_semantics<parallel>], iteration_bounds = array<i64: 2>, scalar_prefetch = 0 : i64, scratch_operands = 1 : i64, tpu.core_type = #tpu.core_type<tc>, window_params = [{pipeline_mode = #tpu.pipeline_mode<synchronous>, transform_indices = @transform_0, window_bounds = array<i64: 40, 40>}, {pipeline_mode = #tpu.pipeline_mode<synchronous>, transform_indices = @transform_1, window_bounds = array<i64: 40, 16>}, {pipeline_mode = #tpu.pipeline_mode<synchronous>, transform_indices = @transform_2, window_bounds = array<i64: 8, 40>}, {pipeline_mode = #tpu.pipeline_mode<synchronous>, transform_indices = @transform_3, window_bounds = array<i64: 5, 16, 16>}, {pipeline_mode = #tpu.pipeline_mode<synchronous>, transform_indices = @transform_4, window_bounds = array<i64: 5, 16, 16>}, {pipeline_mode = #tpu.pipeline_mode<synchronous>, transform_indices = @transform_5, window_bounds = array<i64: 20, 16>}, {pipeline_mode = #tpu.pipeline_mode<synchronous>, transform_indices = @transform_6, window_bounds = array<i64: 64, 16>}, {pipeline_mode = #tpu.pipeline_mode<synchronous>, transform_indices = @transform_7, window_bounds = array<i64: 16, 512>}, {pipeline_mode = #tpu.pipeline_mode<synchronous>, transform_indices = @transform_8, window_bounds = array<i64: 128, 512>}, {pipeline_mode = #tpu.pipeline_mode<synchronous>, transform_indices = @transform_9, window_bounds = array<i64: 1, 512>}, {pipeline_mode = #tpu.pipeline_mode<synchronous>, transform_indices = @transform_10, window_bounds = array<i64: 128, 64>}, {pipeline_mode = #tpu.pipeline_mode<synchronous>, transform_indices = @transform_11, window_bounds = array<i64: 3, 64>}, {pipeline_mode = #tpu.pipeline_mode<synchronous>, transform_indices = @transform_12, window_bounds = array<i64: 64, 96>}, {transform_indices = @transform_13, window_bounds = array<i64: 1, 8, 96>}]} {
    %c0_i32 = arith.constant 0 : i32
    %0 = arith.cmpi eq, %arg0, %c0_i32 : i32
    %1 = arith.extui %0 : i1 to i32
    %c0_i32_0 = arith.constant 0 : i32
    %2 = arith.cmpi ne, %1, %c0_i32_0 : i32
    scf.if %2 {
      %c0 = arith.constant 0 : index
      %c0_2 = arith.constant 0 : index
      %6 = vector.load %arg1[%c0, %c0_2] : memref<40x40xbf16, #tpu.memory_space<vmem>>, vector<40x40xbf16>
      %c0_3 = arith.constant 0 : index
      %c0_4 = arith.constant 0 : index
      %7 = vector.load %arg3[%c0_3, %c0_4] : memref<8x40xbf16, #tpu.memory_space<vmem>>, vector<8x40xbf16>
      %c0_5 = arith.constant 0 : index
      %c0_6 = arith.constant 0 : index
      %8 = vector.load %arg2[%c0_5, %c0_6] : memref<40x16xf32, #tpu.memory_space<vmem>>, vector<40x16xf32>
      %cst = arith.constant 0.000000e+00 : f32
      %9 = vector.broadcast %cst : f32 to vector<8x64xf32>
      %10 = arith.truncf %8 : vector<40x16xf32> to vector<40x16xbf16>
      %cst_7 = arith.constant dense<0.000000e+00> : vector<40x16xf32>
      %11 = tpu.matmul %6, %10, %cst_7 {dimension_numbers = #tpu.dot_dimension_numbers<[1], [0], [0], [1], [0, 0, 1, 1], [], []>} : vector<40x40xbf16>, vector<40x16xbf16>, vector<40x16xf32> -> vector<40x16xf32>
      %12 = arith.truncf %11 : vector<40x16xf32> to vector<40x16xbf16>
      %c0_8 = arith.constant 0 : index
      %c0_9 = arith.constant 0 : index
      %c0_10 = arith.constant 0 : index
      %13 = vector.load %arg4[%c0_8, %c0_9, %c0_10] : memref<5x16x16xbf16, #tpu.memory_space<vmem>>, vector<1x16x16xbf16>
      %14 = vector.shape_cast %13 : vector<1x16x16xbf16> to vector<16x16xbf16>
      %cst_11 = arith.constant dense<0.000000e+00> : vector<40x16xf32>
      %15 = tpu.matmul %12, %14, %cst_11 {dimension_numbers = #tpu.dot_dimension_numbers<[1], [0], [0], [1], [0, 0, 1, 1], [], []>} : vector<40x16xbf16>, vector<16x16xbf16>, vector<40x16xf32> -> vector<40x16xf32>
      %c0_12 = arith.constant 0 : index
      %c0_13 = arith.constant 0 : index
      %16 = vector.load %arg6[%c0_12, %c0_13] : memref<20x16xf32, #tpu.memory_space<vmem>>, vector<1x16xf32>
      %17 = vector.broadcast %16 : vector<1x16xf32> to vector<40x16xf32>
      %18 = arith.addf %15, %17 : vector<40x16xf32>
      %cst_14 = arith.constant 0.000000e+00 : f32
      %19 = vector.broadcast %cst_14 : f32 to vector<40x16xf32>
      %20 = arith.maximumf %18, %19 : vector<40x16xf32>
      %21 = arith.truncf %20 : vector<40x16xf32> to vector<40x16xbf16>
      %c0_15 = arith.constant 0 : index
      %c0_16 = arith.constant 0 : index
      %c0_17 = arith.constant 0 : index
      %22 = vector.load %arg5[%c0_15, %c0_16, %c0_17] : memref<5x16x16xbf16, #tpu.memory_space<vmem>>, vector<1x16x16xbf16>
      %23 = vector.shape_cast %22 : vector<1x16x16xbf16> to vector<16x16xbf16>
      %cst_18 = arith.constant dense<0.000000e+00> : vector<40x16xf32>
      %24 = tpu.matmul %21, %23, %cst_18 {dimension_numbers = #tpu.dot_dimension_numbers<[1], [0], [0], [1], [0, 0, 1, 1], [], []>} : vector<40x16xbf16>, vector<16x16xbf16>, vector<40x16xf32> -> vector<40x16xf32>
      %c1 = arith.constant 1 : index
      %c0_19 = arith.constant 0 : index
      %25 = vector.load %arg6[%c1, %c0_19] : memref<20x16xf32, #tpu.memory_space<vmem>>, vector<1x16xf32>
      %26 = vector.broadcast %25 : vector<1x16xf32> to vector<40x16xf32>
      %27 = arith.addf %24, %26 : vector<40x16xf32>
      %cst_20 = arith.constant 0.000000e+00 : f32
      %28 = vector.broadcast %cst_20 : f32 to vector<40x16xf32>
      %29 = arith.maximumf %27, %28 : vector<40x16xf32>
      %cst_21 = arith.constant dense<0.000000e+00> : vector<16xf32>
      %30 = vector.multi_reduction <add>, %29, %cst_21 [0] : vector<40x16xf32> to vector<16xf32>
      %31 = vector.shape_cast %30 : vector<16xf32> to vector<1x16xf32>
      %cst_22 = arith.constant 4.000000e+01 : f32
      %32 = vector.broadcast %cst_22 : f32 to vector<1x16xf32>
      %33 = arith.divf %31, %32 : vector<1x16xf32>
      %34 = vector.broadcast %33 : vector<1x16xf32> to vector<40x16xf32>
      %35 = arith.subf %29, %34 : vector<40x16xf32>
      %36 = arith.mulf %35, %35 : vector<40x16xf32>
      %cst_23 = arith.constant dense<0.000000e+00> : vector<16xf32>
      %37 = vector.multi_reduction <add>, %36, %cst_23 [0] : vector<40x16xf32> to vector<16xf32>
      %38 = vector.shape_cast %37 : vector<16xf32> to vector<1x16xf32>
      %cst_24 = arith.constant 4.000000e+01 : f32
      %39 = vector.broadcast %cst_24 : f32 to vector<1x16xf32>
      %40 = arith.divf %38, %39 : vector<1x16xf32>
      %41 = vector.broadcast %33 : vector<1x16xf32> to vector<40x16xf32>
      %42 = arith.subf %29, %41 : vector<40x16xf32>
      %cst_25 = arith.constant 9.99999974E-6 : f32
      %43 = vector.broadcast %cst_25 : f32 to vector<1x16xf32>
      %44 = arith.addf %40, %43 : vector<1x16xf32>
      %45 = math.rsqrt %44 : vector<1x16xf32>
      %46 = vector.broadcast %45 : vector<1x16xf32> to vector<40x16xf32>
      %47 = arith.mulf %42, %46 : vector<40x16xf32>
      %c2 = arith.constant 2 : index
      %c0_26 = arith.constant 0 : index
      %48 = vector.load %arg6[%c2, %c0_26] : memref<20x16xf32, #tpu.memory_space<vmem>>, vector<1x16xf32>
      %49 = vector.broadcast %48 : vector<1x16xf32> to vector<40x16xf32>
      %50 = arith.mulf %47, %49 : vector<40x16xf32>
      %c3 = arith.constant 3 : index
      %c0_27 = arith.constant 0 : index
      %51 = vector.load %arg6[%c3, %c0_27] : memref<20x16xf32, #tpu.memory_space<vmem>>, vector<1x16xf32>
      %52 = vector.broadcast %51 : vector<1x16xf32> to vector<40x16xf32>
      %53 = arith.addf %50, %52 : vector<40x16xf32>
      %54 = arith.truncf %53 : vector<40x16xf32> to vector<40x16xbf16>
      %cst_28 = arith.constant dense<0.000000e+00> : vector<8x16xf32>
      %55 = tpu.matmul %7, %54, %cst_28 {dimension_numbers = #tpu.dot_dimension_numbers<[1], [0], [0], [1], [0, 0, 1, 1], [], []>} : vector<8x40xbf16>, vector<40x16xbf16>, vector<8x16xf32> -> vector<8x16xf32>
      %56 = arith.truncf %55 : vector<8x16xf32> to vector<8x16xbf16>
      %c0_29 = arith.constant 0 : index
      %c0_30 = arith.constant 0 : index
      %57 = vector.load %arg11[%c0_29, %c0_30] : memref<128x64xbf16, #tpu.memory_space<vmem>>, vector<16x64xbf16>
      %cst_31 = arith.constant dense<0.000000e+00> : vector<8x64xf32>
      %58 = tpu.matmul %56, %57, %cst_31 {dimension_numbers = #tpu.dot_dimension_numbers<[1], [0], [0], [1], [0, 0, 1, 1], [], []>} : vector<8x16xbf16>, vector<16x64xbf16>, vector<8x64xf32> -> vector<8x64xf32>
      %59 = arith.addf %9, %58 : vector<8x64xf32>
      %60 = arith.truncf %53 : vector<40x16xf32> to vector<40x16xbf16>
      %cst_32 = arith.constant dense<0.000000e+00> : vector<40x16xf32>
      %61 = tpu.matmul %6, %60, %cst_32 {dimension_numbers = #tpu.dot_dimension_numbers<[1], [0], [0], [1], [0, 0, 1, 1], [], []>} : vector<40x40xbf16>, vector<40x16xbf16>, vector<40x16xf32> -> vector<40x16xf32>
      %62 = arith.truncf %61 : vector<40x16xf32> to vector<40x16xbf16>
      %c1_33 = arith.constant 1 : index
      %c0_34 = arith.constant 0 : index
      %c0_35 = arith.constant 0 : index
      %63 = vector.load %arg4[%c1_33, %c0_34, %c0_35] : memref<5x16x16xbf16, #tpu.memory_space<vmem>>, vector<1x16x16xbf16>
      %64 = vector.shape_cast %63 : vector<1x16x16xbf16> to vector<16x16xbf16>
      %cst_36 = arith.constant dense<0.000000e+00> : vector<40x16xf32>
      %65 = tpu.matmul %62, %64, %cst_36 {dimension_numbers = #tpu.dot_dimension_numbers<[1], [0], [0], [1], [0, 0, 1, 1], [], []>} : vector<40x16xbf16>, vector<16x16xbf16>, vector<40x16xf32> -> vector<40x16xf32>
      %c4 = arith.constant 4 : index
      %c0_37 = arith.constant 0 : index
      %66 = vector.load %arg6[%c4, %c0_37] : memref<20x16xf32, #tpu.memory_space<vmem>>, vector<1x16xf32>
      %67 = vector.broadcast %66 : vector<1x16xf32> to vector<40x16xf32>
      %68 = arith.addf %65, %67 : vector<40x16xf32>
      %cst_38 = arith.constant 0.000000e+00 : f32
      %69 = vector.broadcast %cst_38 : f32 to vector<40x16xf32>
      %70 = arith.maximumf %68, %69 : vector<40x16xf32>
      %71 = arith.truncf %70 : vector<40x16xf32> to vector<40x16xbf16>
      %c1_39 = arith.constant 1 : index
      %c0_40 = arith.constant 0 : index
      %c0_41 = arith.constant 0 : index
      %72 = vector.load %arg5[%c1_39, %c0_40, %c0_41] : memref<5x16x16xbf16, #tpu.memory_space<vmem>>, vector<1x16x16xbf16>
      %73 = vector.shape_cast %72 : vector<1x16x16xbf16> to vector<16x16xbf16>
      %cst_42 = arith.constant dense<0.000000e+00> : vector<40x16xf32>
      %74 = tpu.matmul %71, %73, %cst_42 {dimension_numbers = #tpu.dot_dimension_numbers<[1], [0], [0], [1], [0, 0, 1, 1], [], []>} : vector<40x16xbf16>, vector<16x16xbf16>, vector<40x16xf32> -> vector<40x16xf32>
      %c5 = arith.constant 5 : index
      %c0_43 = arith.constant 0 : index
      %75 = vector.load %arg6[%c5, %c0_43] : memref<20x16xf32, #tpu.memory_space<vmem>>, vector<1x16xf32>
      %76 = vector.broadcast %75 : vector<1x16xf32> to vector<40x16xf32>
      %77 = arith.addf %74, %76 : vector<40x16xf32>
      %cst_44 = arith.constant 0.000000e+00 : f32
      %78 = vector.broadcast %cst_44 : f32 to vector<40x16xf32>
      %79 = arith.maximumf %77, %78 : vector<40x16xf32>
      %cst_45 = arith.constant dense<0.000000e+00> : vector<16xf32>
      %80 = vector.multi_reduction <add>, %79, %cst_45 [0] : vector<40x16xf32> to vector<16xf32>
      %81 = vector.shape_cast %80 : vector<16xf32> to vector<1x16xf32>
      %cst_46 = arith.constant 4.000000e+01 : f32
      %82 = vector.broadcast %cst_46 : f32 to vector<1x16xf32>
      %83 = arith.divf %81, %82 : vector<1x16xf32>
      %84 = vector.broadcast %83 : vector<1x16xf32> to vector<40x16xf32>
      %85 = arith.subf %79, %84 : vector<40x16xf32>
      %86 = arith.mulf %85, %85 : vector<40x16xf32>
      %cst_47 = arith.constant dense<0.000000e+00> : vector<16xf32>
      %87 = vector.multi_reduction <add>, %86, %cst_47 [0] : vector<40x16xf32> to vector<16xf32>
      %88 = vector.shape_cast %87 : vector<16xf32> to vector<1x16xf32>
      %cst_48 = arith.constant 4.000000e+01 : f32
      %89 = vector.broadcast %cst_48 : f32 to vector<1x16xf32>
      %90 = arith.divf %88, %89 : vector<1x16xf32>
      %91 = vector.broadcast %83 : vector<1x16xf32> to vector<40x16xf32>
      %92 = arith.subf %79, %91 : vector<40x16xf32>
      %cst_49 = arith.constant 9.99999974E-6 : f32
      %93 = vector.broadcast %cst_49 : f32 to vector<1x16xf32>
      %94 = arith.addf %90, %93 : vector<1x16xf32>
      %95 = math.rsqrt %94 : vector<1x16xf32>
      %96 = vector.broadcast %95 : vector<1x16xf32> to vector<40x16xf32>
      %97 = arith.mulf %92, %96 : vector<40x16xf32>
      %c6 = arith.constant 6 : index
      %c0_50 = arith.constant 0 : index
      %98 = vector.load %arg6[%c6, %c0_50] : memref<20x16xf32, #tpu.memory_space<vmem>>, vector<1x16xf32>
      %99 = vector.broadcast %98 : vector<1x16xf32> to vector<40x16xf32>
      %100 = arith.mulf %97, %99 : vector<40x16xf32>
      %c7 = arith.constant 7 : index
      %c0_51 = arith.constant 0 : index
      %101 = vector.load %arg6[%c7, %c0_51] : memref<20x16xf32, #tpu.memory_space<vmem>>, vector<1x16xf32>
      %102 = vector.broadcast %101 : vector<1x16xf32> to vector<40x16xf32>
      %103 = arith.addf %100, %102 : vector<40x16xf32>
      %104 = arith.truncf %103 : vector<40x16xf32> to vector<40x16xbf16>
      %cst_52 = arith.constant dense<0.000000e+00> : vector<8x16xf32>
      %105 = tpu.matmul %7, %104, %cst_52 {dimension_numbers = #tpu.dot_dimension_numbers<[1], [0], [0], [1], [0, 0, 1, 1], [], []>} : vector<8x40xbf16>, vector<40x16xbf16>, vector<8x16xf32> -> vector<8x16xf32>
      %106 = arith.truncf %105 : vector<8x16xf32> to vector<8x16xbf16>
      %c16 = arith.constant 16 : index
      %c0_53 = arith.constant 0 : index
      %107 = vector.load %arg11[%c16, %c0_53] : memref<128x64xbf16, #tpu.memory_space<vmem>>, vector<16x64xbf16>
      %cst_54 = arith.constant dense<0.000000e+00> : vector<8x64xf32>
      %108 = tpu.matmul %106, %107, %cst_54 {dimension_numbers = #tpu.dot_dimension_numbers<[1], [0], [0], [1], [0, 0, 1, 1], [], []>} : vector<8x16xbf16>, vector<16x64xbf16>, vector<8x64xf32> -> vector<8x64xf32>
      %109 = arith.addf %59, %108 : vector<8x64xf32>
      %110 = arith.truncf %103 : vector<40x16xf32> to vector<40x16xbf16>
      %cst_55 = arith.constant dense<0.000000e+00> : vector<40x16xf32>
      %111 = tpu.matmul %6, %110, %cst_55 {dimension_numbers = #tpu.dot_dimension_numbers<[1], [0], [0], [1], [0, 0, 1, 1], [], []>} : vector<40x40xbf16>, vector<40x16xbf16>, vector<40x16xf32> -> vector<40x16xf32>
      %112 = arith.truncf %111 : vector<40x16xf32> to vector<40x16xbf16>
      %c2_56 = arith.constant 2 : index
      %c0_57 = arith.constant 0 : index
      %c0_58 = arith.constant 0 : index
      %113 = vector.load %arg4[%c2_56, %c0_57, %c0_58] : memref<5x16x16xbf16, #tpu.memory_space<vmem>>, vector<1x16x16xbf16>
      %114 = vector.shape_cast %113 : vector<1x16x16xbf16> to vector<16x16xbf16>
      %cst_59 = arith.constant dense<0.000000e+00> : vector<40x16xf32>
      %115 = tpu.matmul %112, %114, %cst_59 {dimension_numbers = #tpu.dot_dimension_numbers<[1], [0], [0], [1], [0, 0, 1, 1], [], []>} : vector<40x16xbf16>, vector<16x16xbf16>, vector<40x16xf32> -> vector<40x16xf32>
      %c8 = arith.constant 8 : index
      %c0_60 = arith.constant 0 : index
      %116 = vector.load %arg6[%c8, %c0_60] : memref<20x16xf32, #tpu.memory_space<vmem>>, vector<1x16xf32>
      %117 = vector.broadcast %116 : vector<1x16xf32> to vector<40x16xf32>
      %118 = arith.addf %115, %117 : vector<40x16xf32>
      %cst_61 = arith.constant 0.000000e+00 : f32
      %119 = vector.broadcast %cst_61 : f32 to vector<40x16xf32>
      %120 = arith.maximumf %118, %119 : vector<40x16xf32>
      %121 = arith.truncf %120 : vector<40x16xf32> to vector<40x16xbf16>
      %c2_62 = arith.constant 2 : index
      %c0_63 = arith.constant 0 : index
      %c0_64 = arith.constant 0 : index
      %122 = vector.load %arg5[%c2_62, %c0_63, %c0_64] : memref<5x16x16xbf16, #tpu.memory_space<vmem>>, vector<1x16x16xbf16>
      %123 = vector.shape_cast %122 : vector<1x16x16xbf16> to vector<16x16xbf16>
      %cst_65 = arith.constant dense<0.000000e+00> : vector<40x16xf32>
      %124 = tpu.matmul %121, %123, %cst_65 {dimension_numbers = #tpu.dot_dimension_numbers<[1], [0], [0], [1], [0, 0, 1, 1], [], []>} : vector<40x16xbf16>, vector<16x16xbf16>, vector<40x16xf32> -> vector<40x16xf32>
      %c9 = arith.constant 9 : index
      %c0_66 = arith.constant 0 : index
      %125 = vector.load %arg6[%c9, %c0_66] : memref<20x16xf32, #tpu.memory_space<vmem>>, vector<1x16xf32>
      %126 = vector.broadcast %125 : vector<1x16xf32> to vector<40x16xf32>
      %127 = arith.addf %124, %126 : vector<40x16xf32>
      %cst_67 = arith.constant 0.000000e+00 : f32
      %128 = vector.broadcast %cst_67 : f32 to vector<40x16xf32>
      %129 = arith.maximumf %127, %128 : vector<40x16xf32>
      %cst_68 = arith.constant dense<0.000000e+00> : vector<16xf32>
      %130 = vector.multi_reduction <add>, %129, %cst_68 [0] : vector<40x16xf32> to vector<16xf32>
      %131 = vector.shape_cast %130 : vector<16xf32> to vector<1x16xf32>
      %cst_69 = arith.constant 4.000000e+01 : f32
      %132 = vector.broadcast %cst_69 : f32 to vector<1x16xf32>
      %133 = arith.divf %131, %132 : vector<1x16xf32>
      %134 = vector.broadcast %133 : vector<1x16xf32> to vector<40x16xf32>
      %135 = arith.subf %129, %134 : vector<40x16xf32>
      %136 = arith.mulf %135, %135 : vector<40x16xf32>
      %cst_70 = arith.constant dense<0.000000e+00> : vector<16xf32>
      %137 = vector.multi_reduction <add>, %136, %cst_70 [0] : vector<40x16xf32> to vector<16xf32>
      %138 = vector.shape_cast %137 : vector<16xf32> to vector<1x16xf32>
      %cst_71 = arith.constant 4.000000e+01 : f32
      %139 = vector.broadcast %cst_71 : f32 to vector<1x16xf32>
      %140 = arith.divf %138, %139 : vector<1x16xf32>
      %141 = vector.broadcast %133 : vector<1x16xf32> to vector<40x16xf32>
      %142 = arith.subf %129, %141 : vector<40x16xf32>
      %cst_72 = arith.constant 9.99999974E-6 : f32
      %143 = vector.broadcast %cst_72 : f32 to vector<1x16xf32>
      %144 = arith.addf %140, %143 : vector<1x16xf32>
      %145 = math.rsqrt %144 : vector<1x16xf32>
      %146 = vector.broadcast %145 : vector<1x16xf32> to vector<40x16xf32>
      %147 = arith.mulf %142, %146 : vector<40x16xf32>
      %c10 = arith.constant 10 : index
      %c0_73 = arith.constant 0 : index
      %148 = vector.load %arg6[%c10, %c0_73] : memref<20x16xf32, #tpu.memory_space<vmem>>, vector<1x16xf32>
      %149 = vector.broadcast %148 : vector<1x16xf32> to vector<40x16xf32>
      %150 = arith.mulf %147, %149 : vector<40x16xf32>
      %c11 = arith.constant 11 : index
      %c0_74 = arith.constant 0 : index
      %151 = vector.load %arg6[%c11, %c0_74] : memref<20x16xf32, #tpu.memory_space<vmem>>, vector<1x16xf32>
      %152 = vector.broadcast %151 : vector<1x16xf32> to vector<40x16xf32>
      %153 = arith.addf %150, %152 : vector<40x16xf32>
      %154 = arith.truncf %153 : vector<40x16xf32> to vector<40x16xbf16>
      %cst_75 = arith.constant dense<0.000000e+00> : vector<8x16xf32>
      %155 = tpu.matmul %7, %154, %cst_75 {dimension_numbers = #tpu.dot_dimension_numbers<[1], [0], [0], [1], [0, 0, 1, 1], [], []>} : vector<8x40xbf16>, vector<40x16xbf16>, vector<8x16xf32> -> vector<8x16xf32>
      %156 = arith.truncf %155 : vector<8x16xf32> to vector<8x16xbf16>
      %c32 = arith.constant 32 : index
      %c0_76 = arith.constant 0 : index
      %157 = vector.load %arg11[%c32, %c0_76] : memref<128x64xbf16, #tpu.memory_space<vmem>>, vector<16x64xbf16>
      %cst_77 = arith.constant dense<0.000000e+00> : vector<8x64xf32>
      %158 = tpu.matmul %156, %157, %cst_77 {dimension_numbers = #tpu.dot_dimension_numbers<[1], [0], [0], [1], [0, 0, 1, 1], [], []>} : vector<8x16xbf16>, vector<16x64xbf16>, vector<8x64xf32> -> vector<8x64xf32>
      %159 = arith.addf %109, %158 : vector<8x64xf32>
      %160 = arith.truncf %153 : vector<40x16xf32> to vector<40x16xbf16>
      %cst_78 = arith.constant dense<0.000000e+00> : vector<40x16xf32>
      %161 = tpu.matmul %6, %160, %cst_78 {dimension_numbers = #tpu.dot_dimension_numbers<[1], [0], [0], [1], [0, 0, 1, 1], [], []>} : vector<40x40xbf16>, vector<40x16xbf16>, vector<40x16xf32> -> vector<40x16xf32>
      %162 = arith.truncf %161 : vector<40x16xf32> to vector<40x16xbf16>
      %c3_79 = arith.constant 3 : index
      %c0_80 = arith.constant 0 : index
      %c0_81 = arith.constant 0 : index
      %163 = vector.load %arg4[%c3_79, %c0_80, %c0_81] : memref<5x16x16xbf16, #tpu.memory_space<vmem>>, vector<1x16x16xbf16>
      %164 = vector.shape_cast %163 : vector<1x16x16xbf16> to vector<16x16xbf16>
      %cst_82 = arith.constant dense<0.000000e+00> : vector<40x16xf32>
      %165 = tpu.matmul %162, %164, %cst_82 {dimension_numbers = #tpu.dot_dimension_numbers<[1], [0], [0], [1], [0, 0, 1, 1], [], []>} : vector<40x16xbf16>, vector<16x16xbf16>, vector<40x16xf32> -> vector<40x16xf32>
      %c12 = arith.constant 12 : index
      %c0_83 = arith.constant 0 : index
      %166 = vector.load %arg6[%c12, %c0_83] : memref<20x16xf32, #tpu.memory_space<vmem>>, vector<1x16xf32>
      %167 = vector.broadcast %166 : vector<1x16xf32> to vector<40x16xf32>
      %168 = arith.addf %165, %167 : vector<40x16xf32>
      %cst_84 = arith.constant 0.000000e+00 : f32
      %169 = vector.broadcast %cst_84 : f32 to vector<40x16xf32>
      %170 = arith.maximumf %168, %169 : vector<40x16xf32>
      %171 = arith.truncf %170 : vector<40x16xf32> to vector<40x16xbf16>
      %c3_85 = arith.constant 3 : index
      %c0_86 = arith.constant 0 : index
      %c0_87 = arith.constant 0 : index
      %172 = vector.load %arg5[%c3_85, %c0_86, %c0_87] : memref<5x16x16xbf16, #tpu.memory_space<vmem>>, vector<1x16x16xbf16>
      %173 = vector.shape_cast %172 : vector<1x16x16xbf16> to vector<16x16xbf16>
      %cst_88 = arith.constant dense<0.000000e+00> : vector<40x16xf32>
      %174 = tpu.matmul %171, %173, %cst_88 {dimension_numbers = #tpu.dot_dimension_numbers<[1], [0], [0], [1], [0, 0, 1, 1], [], []>} : vector<40x16xbf16>, vector<16x16xbf16>, vector<40x16xf32> -> vector<40x16xf32>
      %c13 = arith.constant 13 : index
      %c0_89 = arith.constant 0 : index
      %175 = vector.load %arg6[%c13, %c0_89] : memref<20x16xf32, #tpu.memory_space<vmem>>, vector<1x16xf32>
      %176 = vector.broadcast %175 : vector<1x16xf32> to vector<40x16xf32>
      %177 = arith.addf %174, %176 : vector<40x16xf32>
      %cst_90 = arith.constant 0.000000e+00 : f32
      %178 = vector.broadcast %cst_90 : f32 to vector<40x16xf32>
      %179 = arith.maximumf %177, %178 : vector<40x16xf32>
      %cst_91 = arith.constant dense<0.000000e+00> : vector<16xf32>
      %180 = vector.multi_reduction <add>, %179, %cst_91 [0] : vector<40x16xf32> to vector<16xf32>
      %181 = vector.shape_cast %180 : vector<16xf32> to vector<1x16xf32>
      %cst_92 = arith.constant 4.000000e+01 : f32
      %182 = vector.broadcast %cst_92 : f32 to vector<1x16xf32>
      %183 = arith.divf %181, %182 : vector<1x16xf32>
      %184 = vector.broadcast %183 : vector<1x16xf32> to vector<40x16xf32>
      %185 = arith.subf %179, %184 : vector<40x16xf32>
      %186 = arith.mulf %185, %185 : vector<40x16xf32>
      %cst_93 = arith.constant dense<0.000000e+00> : vector<16xf32>
      %187 = vector.multi_reduction <add>, %186, %cst_93 [0] : vector<40x16xf32> to vector<16xf32>
      %188 = vector.shape_cast %187 : vector<16xf32> to vector<1x16xf32>
      %cst_94 = arith.constant 4.000000e+01 : f32
      %189 = vector.broadcast %cst_94 : f32 to vector<1x16xf32>
      %190 = arith.divf %188, %189 : vector<1x16xf32>
      %191 = vector.broadcast %183 : vector<1x16xf32> to vector<40x16xf32>
      %192 = arith.subf %179, %191 : vector<40x16xf32>
      %cst_95 = arith.constant 9.99999974E-6 : f32
      %193 = vector.broadcast %cst_95 : f32 to vector<1x16xf32>
      %194 = arith.addf %190, %193 : vector<1x16xf32>
      %195 = math.rsqrt %194 : vector<1x16xf32>
      %196 = vector.broadcast %195 : vector<1x16xf32> to vector<40x16xf32>
      %197 = arith.mulf %192, %196 : vector<40x16xf32>
      %c14 = arith.constant 14 : index
      %c0_96 = arith.constant 0 : index
      %198 = vector.load %arg6[%c14, %c0_96] : memref<20x16xf32, #tpu.memory_space<vmem>>, vector<1x16xf32>
      %199 = vector.broadcast %198 : vector<1x16xf32> to vector<40x16xf32>
      %200 = arith.mulf %197, %199 : vector<40x16xf32>
      %c15 = arith.constant 15 : index
      %c0_97 = arith.constant 0 : index
      %201 = vector.load %arg6[%c15, %c0_97] : memref<20x16xf32, #tpu.memory_space<vmem>>, vector<1x16xf32>
      %202 = vector.broadcast %201 : vector<1x16xf32> to vector<40x16xf32>
      %203 = arith.addf %200, %202 : vector<40x16xf32>
      %204 = arith.truncf %203 : vector<40x16xf32> to vector<40x16xbf16>
      %cst_98 = arith.constant dense<0.000000e+00> : vector<8x16xf32>
      %205 = tpu.matmul %7, %204, %cst_98 {dimension_numbers = #tpu.dot_dimension_numbers<[1], [0], [0], [1], [0, 0, 1, 1], [], []>} : vector<8x40xbf16>, vector<40x16xbf16>, vector<8x16xf32> -> vector<8x16xf32>
      %206 = arith.truncf %205 : vector<8x16xf32> to vector<8x16xbf16>
      %c48 = arith.constant 48 : index
      %c0_99 = arith.constant 0 : index
      %207 = vector.load %arg11[%c48, %c0_99] : memref<128x64xbf16, #tpu.memory_space<vmem>>, vector<16x64xbf16>
      %cst_100 = arith.constant dense<0.000000e+00> : vector<8x64xf32>
      %208 = tpu.matmul %206, %207, %cst_100 {dimension_numbers = #tpu.dot_dimension_numbers<[1], [0], [0], [1], [0, 0, 1, 1], [], []>} : vector<8x16xbf16>, vector<16x64xbf16>, vector<8x64xf32> -> vector<8x64xf32>
      %209 = arith.addf %159, %208 : vector<8x64xf32>
      %210 = arith.truncf %203 : vector<40x16xf32> to vector<40x16xbf16>
      %cst_101 = arith.constant dense<0.000000e+00> : vector<40x16xf32>
      %211 = tpu.matmul %6, %210, %cst_101 {dimension_numbers = #tpu.dot_dimension_numbers<[1], [0], [0], [1], [0, 0, 1, 1], [], []>} : vector<40x40xbf16>, vector<40x16xbf16>, vector<40x16xf32> -> vector<40x16xf32>
      %212 = arith.truncf %211 : vector<40x16xf32> to vector<40x16xbf16>
      %c4_102 = arith.constant 4 : index
      %c0_103 = arith.constant 0 : index
      %c0_104 = arith.constant 0 : index
      %213 = vector.load %arg4[%c4_102, %c0_103, %c0_104] : memref<5x16x16xbf16, #tpu.memory_space<vmem>>, vector<1x16x16xbf16>
      %214 = vector.shape_cast %213 : vector<1x16x16xbf16> to vector<16x16xbf16>
      %cst_105 = arith.constant dense<0.000000e+00> : vector<40x16xf32>
      %215 = tpu.matmul %212, %214, %cst_105 {dimension_numbers = #tpu.dot_dimension_numbers<[1], [0], [0], [1], [0, 0, 1, 1], [], []>} : vector<40x16xbf16>, vector<16x16xbf16>, vector<40x16xf32> -> vector<40x16xf32>
      %c16_106 = arith.constant 16 : index
      %c0_107 = arith.constant 0 : index
      %216 = vector.load %arg6[%c16_106, %c0_107] : memref<20x16xf32, #tpu.memory_space<vmem>>, vector<1x16xf32>
      %217 = vector.broadcast %216 : vector<1x16xf32> to vector<40x16xf32>
      %218 = arith.addf %215, %217 : vector<40x16xf32>
      %cst_108 = arith.constant 0.000000e+00 : f32
      %219 = vector.broadcast %cst_108 : f32 to vector<40x16xf32>
      %220 = arith.maximumf %218, %219 : vector<40x16xf32>
      %221 = arith.truncf %220 : vector<40x16xf32> to vector<40x16xbf16>
      %c4_109 = arith.constant 4 : index
      %c0_110 = arith.constant 0 : index
      %c0_111 = arith.constant 0 : index
      %222 = vector.load %arg5[%c4_109, %c0_110, %c0_111] : memref<5x16x16xbf16, #tpu.memory_space<vmem>>, vector<1x16x16xbf16>
      %223 = vector.shape_cast %222 : vector<1x16x16xbf16> to vector<16x16xbf16>
      %cst_112 = arith.constant dense<0.000000e+00> : vector<40x16xf32>
      %224 = tpu.matmul %221, %223, %cst_112 {dimension_numbers = #tpu.dot_dimension_numbers<[1], [0], [0], [1], [0, 0, 1, 1], [], []>} : vector<40x16xbf16>, vector<16x16xbf16>, vector<40x16xf32> -> vector<40x16xf32>
      %c17 = arith.constant 17 : index
      %c0_113 = arith.constant 0 : index
      %225 = vector.load %arg6[%c17, %c0_113] : memref<20x16xf32, #tpu.memory_space<vmem>>, vector<1x16xf32>
      %226 = vector.broadcast %225 : vector<1x16xf32> to vector<40x16xf32>
      %227 = arith.addf %224, %226 : vector<40x16xf32>
      %cst_114 = arith.constant 0.000000e+00 : f32
      %228 = vector.broadcast %cst_114 : f32 to vector<40x16xf32>
      %229 = arith.maximumf %227, %228 : vector<40x16xf32>
      %cst_115 = arith.constant dense<0.000000e+00> : vector<16xf32>
      %230 = vector.multi_reduction <add>, %229, %cst_115 [0] : vector<40x16xf32> to vector<16xf32>
      %231 = vector.shape_cast %230 : vector<16xf32> to vector<1x16xf32>
      %cst_116 = arith.constant 4.000000e+01 : f32
      %232 = vector.broadcast %cst_116 : f32 to vector<1x16xf32>
      %233 = arith.divf %231, %232 : vector<1x16xf32>
      %234 = vector.broadcast %233 : vector<1x16xf32> to vector<40x16xf32>
      %235 = arith.subf %229, %234 : vector<40x16xf32>
      %236 = arith.mulf %235, %235 : vector<40x16xf32>
      %cst_117 = arith.constant dense<0.000000e+00> : vector<16xf32>
      %237 = vector.multi_reduction <add>, %236, %cst_117 [0] : vector<40x16xf32> to vector<16xf32>
      %238 = vector.shape_cast %237 : vector<16xf32> to vector<1x16xf32>
      %cst_118 = arith.constant 4.000000e+01 : f32
      %239 = vector.broadcast %cst_118 : f32 to vector<1x16xf32>
      %240 = arith.divf %238, %239 : vector<1x16xf32>
      %241 = vector.broadcast %233 : vector<1x16xf32> to vector<40x16xf32>
      %242 = arith.subf %229, %241 : vector<40x16xf32>
      %cst_119 = arith.constant 9.99999974E-6 : f32
      %243 = vector.broadcast %cst_119 : f32 to vector<1x16xf32>
      %244 = arith.addf %240, %243 : vector<1x16xf32>
      %245 = math.rsqrt %244 : vector<1x16xf32>
      %246 = vector.broadcast %245 : vector<1x16xf32> to vector<40x16xf32>
      %247 = arith.mulf %242, %246 : vector<40x16xf32>
      %c18 = arith.constant 18 : index
      %c0_120 = arith.constant 0 : index
      %248 = vector.load %arg6[%c18, %c0_120] : memref<20x16xf32, #tpu.memory_space<vmem>>, vector<1x16xf32>
      %249 = vector.broadcast %248 : vector<1x16xf32> to vector<40x16xf32>
      %250 = arith.mulf %247, %249 : vector<40x16xf32>
      %c19 = arith.constant 19 : index
      %c0_121 = arith.constant 0 : index
      %251 = vector.load %arg6[%c19, %c0_121] : memref<20x16xf32, #tpu.memory_space<vmem>>, vector<1x16xf32>
      %252 = vector.broadcast %251 : vector<1x16xf32> to vector<40x16xf32>
      %253 = arith.addf %250, %252 : vector<40x16xf32>
      %254 = arith.truncf %253 : vector<40x16xf32> to vector<40x16xbf16>
      %cst_122 = arith.constant dense<0.000000e+00> : vector<8x16xf32>
      %255 = tpu.matmul %7, %254, %cst_122 {dimension_numbers = #tpu.dot_dimension_numbers<[1], [0], [0], [1], [0, 0, 1, 1], [], []>} : vector<8x40xbf16>, vector<40x16xbf16>, vector<8x16xf32> -> vector<8x16xf32>
      %256 = arith.truncf %255 : vector<8x16xf32> to vector<8x16xbf16>
      %c64 = arith.constant 64 : index
      %c0_123 = arith.constant 0 : index
      %257 = vector.load %arg11[%c64, %c0_123] : memref<128x64xbf16, #tpu.memory_space<vmem>>, vector<16x64xbf16>
      %cst_124 = arith.constant dense<0.000000e+00> : vector<8x64xf32>
      %258 = tpu.matmul %256, %257, %cst_124 {dimension_numbers = #tpu.dot_dimension_numbers<[1], [0], [0], [1], [0, 0, 1, 1], [], []>} : vector<8x16xbf16>, vector<16x64xbf16>, vector<8x64xf32> -> vector<8x64xf32>
      %259 = arith.addf %209, %258 : vector<8x64xf32>
      %c0_125 = arith.constant 0 : index
      %c0_126 = arith.constant 0 : index
      %260 = vector.load %arg12[%c0_125, %c0_126] : memref<3x64xf32, #tpu.memory_space<vmem>>, vector<1x64xf32>
      %c1_127 = arith.constant 1 : index
      %c0_128 = arith.constant 0 : index
      %261 = vector.load %arg12[%c1_127, %c0_128] : memref<3x64xf32, #tpu.memory_space<vmem>>, vector<1x64xf32>
      %c2_129 = arith.constant 2 : index
      %c0_130 = arith.constant 0 : index
      %262 = vector.load %arg12[%c2_129, %c0_130] : memref<3x64xf32, #tpu.memory_space<vmem>>, vector<1x64xf32>
      %263 = vector.broadcast %260 : vector<1x64xf32> to vector<8x64xf32>
      %264 = arith.addf %259, %263 : vector<8x64xf32>
      %cst_131 = arith.constant dense<0.000000e+00> : vector<64xf32>
      %265 = vector.multi_reduction <add>, %264, %cst_131 [0] : vector<8x64xf32> to vector<64xf32>
      %266 = vector.shape_cast %265 : vector<64xf32> to vector<1x64xf32>
      %cst_132 = arith.constant 8.000000e+00 : f32
      %267 = vector.broadcast %cst_132 : f32 to vector<1x64xf32>
      %268 = arith.divf %266, %267 : vector<1x64xf32>
      %269 = vector.broadcast %268 : vector<1x64xf32> to vector<8x64xf32>
      %270 = arith.subf %264, %269 : vector<8x64xf32>
      %271 = arith.mulf %270, %270 : vector<8x64xf32>
      %cst_133 = arith.constant dense<0.000000e+00> : vector<64xf32>
      %272 = vector.multi_reduction <add>, %271, %cst_133 [0] : vector<8x64xf32> to vector<64xf32>
      %273 = vector.shape_cast %272 : vector<64xf32> to vector<1x64xf32>
      %cst_134 = arith.constant 8.000000e+00 : f32
      %274 = vector.broadcast %cst_134 : f32 to vector<1x64xf32>
      %275 = arith.divf %273, %274 : vector<1x64xf32>
      %276 = vector.broadcast %268 : vector<1x64xf32> to vector<8x64xf32>
      %277 = arith.subf %264, %276 : vector<8x64xf32>
      %cst_135 = arith.constant 9.99999974E-6 : f32
      %278 = vector.broadcast %cst_135 : f32 to vector<1x64xf32>
      %279 = arith.addf %275, %278 : vector<1x64xf32>
      %280 = math.rsqrt %279 : vector<1x64xf32>
      %281 = vector.broadcast %280 : vector<1x64xf32> to vector<8x64xf32>
      %282 = arith.mulf %277, %281 : vector<8x64xf32>
      %283 = vector.broadcast %261 : vector<1x64xf32> to vector<8x64xf32>
      %284 = arith.mulf %282, %283 : vector<8x64xf32>
      %285 = vector.broadcast %262 : vector<1x64xf32> to vector<8x64xf32>
      %286 = arith.addf %284, %285 : vector<8x64xf32>
      %cst_136 = arith.constant 0.000000e+00 : f32
      %287 = vector.broadcast %cst_136 : f32 to vector<8x64xf32>
      %288 = arith.maximumf %286, %287 : vector<8x64xf32>
      %289 = arith.truncf %288 : vector<8x64xf32> to vector<8x64xbf16>
      %c0_137 = arith.constant 0 : index
      %c0_138 = arith.constant 0 : index
      %290 = vector.load %arg13[%c0_137, %c0_138] : memref<64x96xbf16, #tpu.memory_space<vmem>>, vector<64x96xbf16>
      %cst_139 = arith.constant dense<0.000000e+00> : vector<8x96xf32>
      %291 = tpu.matmul %289, %290, %cst_139 {dimension_numbers = #tpu.dot_dimension_numbers<[1], [0], [0], [1], [0, 0, 1, 1], [], []>} : vector<8x64xbf16>, vector<64x96xbf16>, vector<8x96xf32> -> vector<8x96xf32>
      %292 = arith.mulf %291, %291 : vector<8x96xf32>
      %cst_140 = arith.constant dense<0.000000e+00> : vector<8xf32>
      %293 = vector.multi_reduction <add>, %292, %cst_140 [1] : vector<8x96xf32> to vector<8xf32>
      %294 = vector.shape_cast %293 : vector<8xf32> to vector<8x1xf32>
      %295 = math.sqrt %294 : vector<8x1xf32>
      %cst_141 = arith.constant 9.99999996E-13 : f32
      %296 = vector.broadcast %cst_141 : f32 to vector<8x1xf32>
      %297 = arith.maximumf %295, %296 : vector<8x1xf32>
      %298 = vector.broadcast %297 : vector<8x1xf32> to vector<8x96xf32>
      %299 = arith.divf %291, %298 : vector<8x96xf32>
      %c0_142 = arith.constant 0 : index
      %c0_143 = arith.constant 0 : index
      %c0_144 = arith.constant 0 : index
      %300 = vector.load %arg14[%c0_142, %c0_143, %c0_144] : memref<1x8x96xf32, #tpu.memory_space<vmem>>, vector<1x8x96xf32>
      %301 = vector.shape_cast %300 : vector<1x8x96xf32> to vector<8x96xf32>
      %302 = vector.shape_cast %299 : vector<8x96xf32> to vector<1x8x96xf32>
      tpu.vector_store %arg14[%c0_142, %c0_143, %c0_144], %302 {strides = array<i32>} : memref<1x8x96xf32, #tpu.memory_space<vmem>>, vector<1x8x96xf32>,
    } else {
    }
    %c1_i32 = arith.constant 1 : i32
    %3 = arith.cmpi eq, %arg0, %c1_i32 : i32
    %4 = arith.extui %3 : i1 to i32
    %c0_i32_1 = arith.constant 0 : i32
    %5 = arith.cmpi ne, %4, %c0_i32_1 : i32
    scf.if %5 {
      %c0 = arith.constant 0 : index
      %c0_2 = arith.constant 0 : index
      %6 = vector.load %arg7[%c0, %c0_2] : memref<64x16xf32, #tpu.memory_space<vmem>>, vector<64x16xf32>
      %7 = arith.truncf %6 : vector<64x16xf32> to vector<64x16xbf16>
      %c0_3 = arith.constant 0 : index
      %c0_4 = arith.constant 0 : index
      %8 = vector.load %arg8[%c0_3, %c0_4] : memref<16x512xbf16, #tpu.memory_space<vmem>>, vector<16x512xbf16>
      %cst = arith.constant dense<0.000000e+00> : vector<64x512xf32>
      %9 = tpu.matmul %7, %8, %cst {dimension_numbers = #tpu.dot_dimension_numbers<[1], [0], [0], [1], [0, 0, 1, 1], [], []>} : vector<64x16xbf16>, vector<16x512xbf16>, vector<64x512xf32> -> vector<64x512xf32>
      %c0_5 = arith.constant 0 : index
      %c0_6 = arith.constant 0 : index
      %10 = vector.load %arg10[%c0_5, %c0_6] : memref<1x512xf32, #tpu.memory_space<vmem>>, vector<1x512xf32>
      %11 = vector.broadcast %10 : vector<1x512xf32> to vector<64x512xf32>
      %12 = arith.addf %9, %11 : vector<64x512xf32>
      %c0_7 = arith.constant 0 : index
      %c0_8 = arith.constant 0 : index
      %13 = vector.load %arg15[%c0_7, %c0_8] : memref<64x512xf32, #tpu.memory_space<vmem>>, vector<64x512xf32>
      tpu.vector_store %arg15[%c0_7, %c0_8], %12 {strides = array<i32>} : memref<64x512xf32, #tpu.memory_space<vmem>>, vector<64x512xf32>,
      %cst_9 = arith.constant 0.000000e+00 : f32
      %14 = vector.broadcast %cst_9 : f32 to vector<8x128xf32>
      %cst_10 = arith.constant 0.000000e+00 : f32
      %15 = vector.broadcast %cst_10 : f32 to vector<8x128xf32>
      %c0_11 = arith.constant 0 : index
      %c0_12 = arith.constant 0 : index
      %16 = vector.load %arg15[%c0_11, %c0_12] : memref<64x512xf32, #tpu.memory_space<vmem>>, vector<8x512xf32>
      %17 = arith.truncf %14 : vector<8x128xf32> to vector<8x128xbf16>
      %c0_13 = arith.constant 0 : index
      %c0_14 = arith.constant 0 : index
      %18 = vector.load %arg9[%c0_13, %c0_14] : memref<128x512xbf16, #tpu.memory_space<vmem>>, vector<128x512xbf16>
      %cst_15 = arith.constant dense<0.000000e+00> : vector<8x512xf32>
      %19 = tpu.matmul %17, %18, %cst_15 {dimension_numbers = #tpu.dot_dimension_numbers<[1], [0], [0], [1], [0, 0, 1, 1], [], []>} : vector<8x128xbf16>, vector<128x512xbf16>, vector<8x512xf32> -> vector<8x512xf32>
      %20 = arith.addf %16, %19 : vector<8x512xf32>
      %21 = vector.extract_strided_slice %20 {offsets = [0, 0], sizes = [8, 128], strides = [1, 1]} : vector<8x512xf32> to vector<8x128xf32>
      %22 = arith.negf %21 : vector<8x128xf32>
      %23 = math.exp %22 : vector<8x128xf32>
      %cst_16 = arith.constant 1.000000e+00 : f32
      %24 = vector.broadcast %cst_16 : f32 to vector<8x128xf32>
      %25 = arith.addf %24, %23 : vector<8x128xf32>
      %26 = arith.divf %24, %25 : vector<8x128xf32>
      %27 = vector.extract_strided_slice %20 {offsets = [0, 128], sizes = [8, 128], strides = [1, 1]} : vector<8x512xf32> to vector<8x128xf32>
      %28 = arith.negf %27 : vector<8x128xf32>
      %29 = math.exp %28 : vector<8x128xf32>
      %cst_17 = arith.constant 1.000000e+00 : f32
      %30 = vector.broadcast %cst_17 : f32 to vector<8x128xf32>
      %31 = arith.addf %30, %29 : vector<8x128xf32>
      %32 = arith.divf %30, %31 : vector<8x128xf32>
      %33 = vector.extract_strided_slice %20 {offsets = [0, 256], sizes = [8, 128], strides = [1, 1]} : vector<8x512xf32> to vector<8x128xf32>
      %34 = math.tanh %33 : vector<8x128xf32>
      %35 = vector.extract_strided_slice %20 {offsets = [0, 384], sizes = [8, 128], strides = [1, 1]} : vector<8x512xf32> to vector<8x128xf32>
      %36 = arith.negf %35 : vector<8x128xf32>
      %37 = math.exp %36 : vector<8x128xf32>
      %cst_18 = arith.constant 1.000000e+00 : f32
      %38 = vector.broadcast %cst_18 : f32 to vector<8x128xf32>
      %39 = arith.addf %38, %37 : vector<8x128xf32>
      %40 = arith.divf %38, %39 : vector<8x128xf32>
      %41 = arith.mulf %32, %15 : vector<8x128xf32>
      %42 = arith.mulf %26, %34 : vector<8x128xf32>
      %43 = arith.addf %41, %42 : vector<8x128xf32>
      %44 = math.tanh %43 : vector<8x128xf32>
      %45 = arith.mulf %40, %44 : vector<8x128xf32>
      %c8 = arith.constant 8 : index
      %c0_19 = arith.constant 0 : index
      %46 = vector.load %arg15[%c8, %c0_19] : memref<64x512xf32, #tpu.memory_space<vmem>>, vector<8x512xf32>
      %47 = arith.truncf %45 : vector<8x128xf32> to vector<8x128xbf16>
      %c0_20 = arith.constant 0 : index
      %c0_21 = arith.constant 0 : index
      %48 = vector.load %arg9[%c0_20, %c0_21] : memref<128x512xbf16, #tpu.memory_space<vmem>>, vector<128x512xbf16>
      %cst_22 = arith.constant dense<0.000000e+00> : vector<8x512xf32>
      %49 = tpu.matmul %47, %48, %cst_22 {dimension_numbers = #tpu.dot_dimension_numbers<[1], [0], [0], [1], [0, 0, 1, 1], [], []>} : vector<8x128xbf16>, vector<128x512xbf16>, vector<8x512xf32> -> vector<8x512xf32>
      %50 = arith.addf %46, %49 : vector<8x512xf32>
      %51 = vector.extract_strided_slice %50 {offsets = [0, 0], sizes = [8, 128], strides = [1, 1]} : vector<8x512xf32> to vector<8x128xf32>
      %52 = arith.negf %51 : vector<8x128xf32>
      %53 = math.exp %52 : vector<8x128xf32>
      %cst_23 = arith.constant 1.000000e+00 : f32
      %54 = vector.broadcast %cst_23 : f32 to vector<8x128xf32>
      %55 = arith.addf %54, %53 : vector<8x128xf32>
      %56 = arith.divf %54, %55 : vector<8x128xf32>
      %57 = vector.extract_strided_slice %50 {offsets = [0, 128], sizes = [8, 128], strides = [1, 1]} : vector<8x512xf32> to vector<8x128xf32>
      %58 = arith.negf %57 : vector<8x128xf32>
      %59 = math.exp %58 : vector<8x128xf32>
      %cst_24 = arith.constant 1.000000e+00 : f32
      %60 = vector.broadcast %cst_24 : f32 to vector<8x128xf32>
      %61 = arith.addf %60, %59 : vector<8x128xf32>
      %62 = arith.divf %60, %61 : vector<8x128xf32>
      %63 = vector.extract_strided_slice %50 {offsets = [0, 256], sizes = [8, 128], strides = [1, 1]} : vector<8x512xf32> to vector<8x128xf32>
      %64 = math.tanh %63 : vector<8x128xf32>
      %65 = vector.extract_strided_slice %50 {offsets = [0, 384], sizes = [8, 128], strides = [1, 1]} : vector<8x512xf32> to vector<8x128xf32>
      %66 = arith.negf %65 : vector<8x128xf32>
      %67 = math.exp %66 : vector<8x128xf32>
      %cst_25 = arith.constant 1.000000e+00 : f32
      %68 = vector.broadcast %cst_25 : f32 to vector<8x128xf32>
      %69 = arith.addf %68, %67 : vector<8x128xf32>
      %70 = arith.divf %68, %69 : vector<8x128xf32>
      %71 = arith.mulf %62, %43 : vector<8x128xf32>
      %72 = arith.mulf %56, %64 : vector<8x128xf32>
      %73 = arith.addf %71, %72 : vector<8x128xf32>
      %74 = math.tanh %73 : vector<8x128xf32>
      %75 = arith.mulf %70, %74 : vector<8x128xf32>
      %c16 = arith.constant 16 : index
      %c0_26 = arith.constant 0 : index
      %76 = vector.load %arg15[%c16, %c0_26] : memref<64x512xf32, #tpu.memory_space<vmem>>, vector<8x512xf32>
      %77 = arith.truncf %75 : vector<8x128xf32> to vector<8x128xbf16>
      %c0_27 = arith.constant 0 : index
      %c0_28 = arith.constant 0 : index
      %78 = vector.load %arg9[%c0_27, %c0_28] : memref<128x512xbf16, #tpu.memory_space<vmem>>, vector<128x512xbf16>
      %cst_29 = arith.constant dense<0.000000e+00> : vector<8x512xf32>
      %79 = tpu.matmul %77, %78, %cst_29 {dimension_numbers = #tpu.dot_dimension_numbers<[1], [0], [0], [1], [0, 0, 1, 1], [], []>} : vector<8x128xbf16>, vector<128x512xbf16>, vector<8x512xf32> -> vector<8x512xf32>
      %80 = arith.addf %76, %79 : vector<8x512xf32>
      %81 = vector.extract_strided_slice %80 {offsets = [0, 0], sizes = [8, 128], strides = [1, 1]} : vector<8x512xf32> to vector<8x128xf32>
      %82 = arith.negf %81 : vector<8x128xf32>
      %83 = math.exp %82 : vector<8x128xf32>
      %cst_30 = arith.constant 1.000000e+00 : f32
      %84 = vector.broadcast %cst_30 : f32 to vector<8x128xf32>
      %85 = arith.addf %84, %83 : vector<8x128xf32>
      %86 = arith.divf %84, %85 : vector<8x128xf32>
      %87 = vector.extract_strided_slice %80 {offsets = [0, 128], sizes = [8, 128], strides = [1, 1]} : vector<8x512xf32> to vector<8x128xf32>
      %88 = arith.negf %87 : vector<8x128xf32>
      %89 = math.exp %88 : vector<8x128xf32>
      %cst_31 = arith.constant 1.000000e+00 : f32
      %90 = vector.broadcast %cst_31 : f32 to vector<8x128xf32>
      %91 = arith.addf %90, %89 : vector<8x128xf32>
      %92 = arith.divf %90, %91 : vector<8x128xf32>
      %93 = vector.extract_strided_slice %80 {offsets = [0, 256], sizes = [8, 128], strides = [1, 1]} : vector<8x512xf32> to vector<8x128xf32>
      %94 = math.tanh %93 : vector<8x128xf32>
      %95 = vector.extract_strided_slice %80 {offsets = [0, 384], sizes = [8, 128], strides = [1, 1]} : vector<8x512xf32> to vector<8x128xf32>
      %96 = arith.negf %95 : vector<8x128xf32>
      %97 = math.exp %96 : vector<8x128xf32>
      %cst_32 = arith.constant 1.000000e+00 : f32
      %98 = vector.broadcast %cst_32 : f32 to vector<8x128xf32>
      %99 = arith.addf %98, %97 : vector<8x128xf32>
      %100 = arith.divf %98, %99 : vector<8x128xf32>
      %101 = arith.mulf %92, %73 : vector<8x128xf32>
      %102 = arith.mulf %86, %94 : vector<8x128xf32>
      %103 = arith.addf %101, %102 : vector<8x128xf32>
      %104 = math.tanh %103 : vector<8x128xf32>
      %105 = arith.mulf %100, %104 : vector<8x128xf32>
      %c24 = arith.constant 24 : index
      %c0_33 = arith.constant 0 : index
      %106 = vector.load %arg15[%c24, %c0_33] : memref<64x512xf32, #tpu.memory_space<vmem>>, vector<8x512xf32>
      %107 = arith.truncf %105 : vector<8x128xf32> to vector<8x128xbf16>
      %c0_34 = arith.constant 0 : index
      %c0_35 = arith.constant 0 : index
      %108 = vector.load %arg9[%c0_34, %c0_35] : memref<128x512xbf16, #tpu.memory_space<vmem>>, vector<128x512xbf16>
      %cst_36 = arith.constant dense<0.000000e+00> : vector<8x512xf32>
      %109 = tpu.matmul %107, %108, %cst_36 {dimension_numbers = #tpu.dot_dimension_numbers<[1], [0], [0], [1], [0, 0, 1, 1], [], []>} : vector<8x128xbf16>, vector<128x512xbf16>, vector<8x512xf32> -> vector<8x512xf32>
      %110 = arith.addf %106, %109 : vector<8x512xf32>
      %111 = vector.extract_strided_slice %110 {offsets = [0, 0], sizes = [8, 128], strides = [1, 1]} : vector<8x512xf32> to vector<8x128xf32>
      %112 = arith.negf %111 : vector<8x128xf32>
      %113 = math.exp %112 : vector<8x128xf32>
      %cst_37 = arith.constant 1.000000e+00 : f32
      %114 = vector.broadcast %cst_37 : f32 to vector<8x128xf32>
      %115 = arith.addf %114, %113 : vector<8x128xf32>
      %116 = arith.divf %114, %115 : vector<8x128xf32>
      %117 = vector.extract_strided_slice %110 {offsets = [0, 128], sizes = [8, 128], strides = [1, 1]} : vector<8x512xf32> to vector<8x128xf32>
      %118 = arith.negf %117 : vector<8x128xf32>
      %119 = math.exp %118 : vector<8x128xf32>
      %cst_38 = arith.constant 1.000000e+00 : f32
      %120 = vector.broadcast %cst_38 : f32 to vector<8x128xf32>
      %121 = arith.addf %120, %119 : vector<8x128xf32>
      %122 = arith.divf %120, %121 : vector<8x128xf32>
      %123 = vector.extract_strided_slice %110 {offsets = [0, 256], sizes = [8, 128], strides = [1, 1]} : vector<8x512xf32> to vector<8x128xf32>
      %124 = math.tanh %123 : vector<8x128xf32>
      %125 = vector.extract_strided_slice %110 {offsets = [0, 384], sizes = [8, 128], strides = [1, 1]} : vector<8x512xf32> to vector<8x128xf32>
      %126 = arith.negf %125 : vector<8x128xf32>
      %127 = math.exp %126 : vector<8x128xf32>
      %cst_39 = arith.constant 1.000000e+00 : f32
      %128 = vector.broadcast %cst_39 : f32 to vector<8x128xf32>
      %129 = arith.addf %128, %127 : vector<8x128xf32>
      %130 = arith.divf %128, %129 : vector<8x128xf32>
      %131 = arith.mulf %122, %103 : vector<8x128xf32>
      %132 = arith.mulf %116, %124 : vector<8x128xf32>
      %133 = arith.addf %131, %132 : vector<8x128xf32>
      %134 = math.tanh %133 : vector<8x128xf32>
      %135 = arith.mulf %130, %134 : vector<8x128xf32>
      %c32 = arith.constant 32 : index
      %c0_40 = arith.constant 0 : index
      %136 = vector.load %arg15[%c32, %c0_40] : memref<64x512xf32, #tpu.memory_space<vmem>>, vector<8x512xf32>
      %137 = arith.truncf %135 : vector<8x128xf32> to vector<8x128xbf16>
      %c0_41 = arith.constant 0 : index
      %c0_42 = arith.constant 0 : index
      %138 = vector.load %arg9[%c0_41, %c0_42] : memref<128x512xbf16, #tpu.memory_space<vmem>>, vector<128x512xbf16>
      %cst_43 = arith.constant dense<0.000000e+00> : vector<8x512xf32>
      %139 = tpu.matmul %137, %138, %cst_43 {dimension_numbers = #tpu.dot_dimension_numbers<[1], [0], [0], [1], [0, 0, 1, 1], [], []>} : vector<8x128xbf16>, vector<128x512xbf16>, vector<8x512xf32> -> vector<8x512xf32>
      %140 = arith.addf %136, %139 : vector<8x512xf32>
      %141 = vector.extract_strided_slice %140 {offsets = [0, 0], sizes = [8, 128], strides = [1, 1]} : vector<8x512xf32> to vector<8x128xf32>
      %142 = arith.negf %141 : vector<8x128xf32>
      %143 = math.exp %142 : vector<8x128xf32>
      %cst_44 = arith.constant 1.000000e+00 : f32
      %144 = vector.broadcast %cst_44 : f32 to vector<8x128xf32>
      %145 = arith.addf %144, %143 : vector<8x128xf32>
      %146 = arith.divf %144, %145 : vector<8x128xf32>
      %147 = vector.extract_strided_slice %140 {offsets = [0, 128], sizes = [8, 128], strides = [1, 1]} : vector<8x512xf32> to vector<8x128xf32>
      %148 = arith.negf %147 : vector<8x128xf32>
      %149 = math.exp %148 : vector<8x128xf32>
      %cst_45 = arith.constant 1.000000e+00 : f32
      %150 = vector.broadcast %cst_45 : f32 to vector<8x128xf32>
      %151 = arith.addf %150, %149 : vector<8x128xf32>
      %152 = arith.divf %150, %151 : vector<8x128xf32>
      %153 = vector.extract_strided_slice %140 {offsets = [0, 256], sizes = [8, 128], strides = [1, 1]} : vector<8x512xf32> to vector<8x128xf32>
      %154 = math.tanh %153 : vector<8x128xf32>
      %155 = vector.extract_strided_slice %140 {offsets = [0, 384], sizes = [8, 128], strides = [1, 1]} : vector<8x512xf32> to vector<8x128xf32>
      %156 = arith.negf %155 : vector<8x128xf32>
      %157 = math.exp %156 : vector<8x128xf32>
      %cst_46 = arith.constant 1.000000e+00 : f32
      %158 = vector.broadcast %cst_46 : f32 to vector<8x128xf32>
      %159 = arith.addf %158, %157 : vector<8x128xf32>
      %160 = arith.divf %158, %159 : vector<8x128xf32>
      %161 = arith.mulf %152, %133 : vector<8x128xf32>
      %162 = arith.mulf %146, %154 : vector<8x128xf32>
      %163 = arith.addf %161, %162 : vector<8x128xf32>
      %164 = math.tanh %163 : vector<8x128xf32>
      %165 = arith.mulf %160, %164 : vector<8x128xf32>
      %c40 = arith.constant 40 : index
      %c0_47 = arith.constant 0 : index
      %166 = vector.load %arg15[%c40, %c0_47] : memref<64x512xf32, #tpu.memory_space<vmem>>, vector<8x512xf32>
      %167 = arith.truncf %165 : vector<8x128xf32> to vector<8x128xbf16>
      %c0_48 = arith.constant 0 : index
      %c0_49 = arith.constant 0 : index
      %168 = vector.load %arg9[%c0_48, %c0_49] : memref<128x512xbf16, #tpu.memory_space<vmem>>, vector<128x512xbf16>
      %cst_50 = arith.constant dense<0.000000e+00> : vector<8x512xf32>
      %169 = tpu.matmul %167, %168, %cst_50 {dimension_numbers = #tpu.dot_dimension_numbers<[1], [0], [0], [1], [0, 0, 1, 1], [], []>} : vector<8x128xbf16>, vector<128x512xbf16>, vector<8x512xf32> -> vector<8x512xf32>
      %170 = arith.addf %166, %169 : vector<8x512xf32>
      %171 = vector.extract_strided_slice %170 {offsets = [0, 0], sizes = [8, 128], strides = [1, 1]} : vector<8x512xf32> to vector<8x128xf32>
      %172 = arith.negf %171 : vector<8x128xf32>
      %173 = math.exp %172 : vector<8x128xf32>
      %cst_51 = arith.constant 1.000000e+00 : f32
      %174 = vector.broadcast %cst_51 : f32 to vector<8x128xf32>
      %175 = arith.addf %174, %173 : vector<8x128xf32>
      %176 = arith.divf %174, %175 : vector<8x128xf32>
      %177 = vector.extract_strided_slice %170 {offsets = [0, 128], sizes = [8, 128], strides = [1, 1]} : vector<8x512xf32> to vector<8x128xf32>
      %178 = arith.negf %177 : vector<8x128xf32>
      %179 = math.exp %178 : vector<8x128xf32>
      %cst_52 = arith.constant 1.000000e+00 : f32
      %180 = vector.broadcast %cst_52 : f32 to vector<8x128xf32>
      %181 = arith.addf %180, %179 : vector<8x128xf32>
      %182 = arith.divf %180, %181 : vector<8x128xf32>
      %183 = vector.extract_strided_slice %170 {offsets = [0, 256], sizes = [8, 128], strides = [1, 1]} : vector<8x512xf32> to vector<8x128xf32>
      %184 = math.tanh %183 : vector<8x128xf32>
      %185 = vector.extract_strided_slice %170 {offsets = [0, 384], sizes = [8, 128], strides = [1, 1]} : vector<8x512xf32> to vector<8x128xf32>
      %186 = arith.negf %185 : vector<8x128xf32>
      %187 = math.exp %186 : vector<8x128xf32>
      %cst_53 = arith.constant 1.000000e+00 : f32
      %188 = vector.broadcast %cst_53 : f32 to vector<8x128xf32>
      %189 = arith.addf %188, %187 : vector<8x128xf32>
      %190 = arith.divf %188, %189 : vector<8x128xf32>
      %191 = arith.mulf %182, %163 : vector<8x128xf32>
      %192 = arith.mulf %176, %184 : vector<8x128xf32>
      %193 = arith.addf %191, %192 : vector<8x128xf32>
      %194 = math.tanh %193 : vector<8x128xf32>
      %195 = arith.mulf %190, %194 : vector<8x128xf32>
      %c48 = arith.constant 48 : index
      %c0_54 = arith.constant 0 : index
      %196 = vector.load %arg15[%c48, %c0_54] : memref<64x512xf32, #tpu.memory_space<vmem>>, vector<8x512xf32>
      %197 = arith.truncf %195 : vector<8x128xf32> to vector<8x128xbf16>
      %c0_55 = arith.constant 0 : index
      %c0_56 = arith.constant 0 : index
      %198 = vector.load %arg9[%c0_55, %c0_56] : memref<128x512xbf16, #tpu.memory_space<vmem>>, vector<128x512xbf16>
      %cst_57 = arith.constant dense<0.000000e+00> : vector<8x512xf32>
      %199 = tpu.matmul %197, %198, %cst_57 {dimension_numbers = #tpu.dot_dimension_numbers<[1], [0], [0], [1], [0, 0, 1, 1], [], []>} : vector<8x128xbf16>, vector<128x512xbf16>, vector<8x512xf32> -> vector<8x512xf32>
      %200 = arith.addf %196, %199 : vector<8x512xf32>
      %201 = vector.extract_strided_slice %200 {offsets = [0, 0], sizes = [8, 128], strides = [1, 1]} : vector<8x512xf32> to vector<8x128xf32>
      %202 = arith.negf %201 : vector<8x128xf32>
      %203 = math.exp %202 : vector<8x128xf32>
      %cst_58 = arith.constant 1.000000e+00 : f32
      %204 = vector.broadcast %cst_58 : f32 to vector<8x128xf32>
      %205 = arith.addf %204, %203 : vector<8x128xf32>
      %206 = arith.divf %204, %205 : vector<8x128xf32>
      %207 = vector.extract_strided_slice %200 {offsets = [0, 128], sizes = [8, 128], strides = [1, 1]} : vector<8x512xf32> to vector<8x128xf32>
      %208 = arith.negf %207 : vector<8x128xf32>
      %209 = math.exp %208 : vector<8x128xf32>
      %cst_59 = arith.constant 1.000000e+00 : f32
      %210 = vector.broadcast %cst_59 : f32 to vector<8x128xf32>
      %211 = arith.addf %210, %209 : vector<8x128xf32>
      %212 = arith.divf %210, %211 : vector<8x128xf32>
      %213 = vector.extract_strided_slice %200 {offsets = [0, 256], sizes = [8, 128], strides = [1, 1]} : vector<8x512xf32> to vector<8x128xf32>
      %214 = math.tanh %213 : vector<8x128xf32>
      %215 = vector.extract_strided_slice %200 {offsets = [0, 384], sizes = [8, 128], strides = [1, 1]} : vector<8x512xf32> to vector<8x128xf32>
      %216 = arith.negf %215 : vector<8x128xf32>
      %217 = math.exp %216 : vector<8x128xf32>
      %cst_60 = arith.constant 1.000000e+00 : f32
      %218 = vector.broadcast %cst_60 : f32 to vector<8x128xf32>
      %219 = arith.addf %218, %217 : vector<8x128xf32>
      %220 = arith.divf %218, %219 : vector<8x128xf32>
      %221 = arith.mulf %212, %193 : vector<8x128xf32>
      %222 = arith.mulf %206, %214 : vector<8x128xf32>
      %223 = arith.addf %221, %222 : vector<8x128xf32>
      %224 = math.tanh %223 : vector<8x128xf32>
      %225 = arith.mulf %220, %224 : vector<8x128xf32>
      %c56 = arith.constant 56 : index
      %c0_61 = arith.constant 0 : index
      %226 = vector.load %arg15[%c56, %c0_61] : memref<64x512xf32, #tpu.memory_space<vmem>>, vector<8x512xf32>
      %227 = arith.truncf %225 : vector<8x128xf32> to vector<8x128xbf16>
      %c0_62 = arith.constant 0 : index
      %c0_63 = arith.constant 0 : index
      %228 = vector.load %arg9[%c0_62, %c0_63] : memref<128x512xbf16, #tpu.memory_space<vmem>>, vector<128x512xbf16>
      %cst_64 = arith.constant dense<0.000000e+00> : vector<8x512xf32>
      %229 = tpu.matmul %227, %228, %cst_64 {dimension_numbers = #tpu.dot_dimension_numbers<[1], [0], [0], [1], [0, 0, 1, 1], [], []>} : vector<8x128xbf16>, vector<128x512xbf16>, vector<8x512xf32> -> vector<8x512xf32>
      %230 = arith.addf %226, %229 : vector<8x512xf32>
      %231 = vector.extract_strided_slice %230 {offsets = [0, 0], sizes = [8, 128], strides = [1, 1]} : vector<8x512xf32> to vector<8x128xf32>
      %232 = arith.negf %231 : vector<8x128xf32>
      %233 = math.exp %232 : vector<8x128xf32>
      %cst_65 = arith.constant 1.000000e+00 : f32
      %234 = vector.broadcast %cst_65 : f32 to vector<8x128xf32>
      %235 = arith.addf %234, %233 : vector<8x128xf32>
      %236 = arith.divf %234, %235 : vector<8x128xf32>
      %237 = vector.extract_strided_slice %230 {offsets = [0, 128], sizes = [8, 128], strides = [1, 1]} : vector<8x512xf32> to vector<8x128xf32>
      %238 = arith.negf %237 : vector<8x128xf32>
      %239 = math.exp %238 : vector<8x128xf32>
      %cst_66 = arith.constant 1.000000e+00 : f32
      %240 = vector.broadcast %cst_66 : f32 to vector<8x128xf32>
      %241 = arith.addf %240, %239 : vector<8x128xf32>
      %242 = arith.divf %240, %241 : vector<8x128xf32>
      %243 = vector.extract_strided_slice %230 {offsets = [0, 256], sizes = [8, 128], strides = [1, 1]} : vector<8x512xf32> to vector<8x128xf32>
      %244 = math.tanh %243 : vector<8x128xf32>
      %245 = vector.extract_strided_slice %230 {offsets = [0, 384], sizes = [8, 128], strides = [1, 1]} : vector<8x512xf32> to vector<8x128xf32>
      %246 = arith.negf %245 : vector<8x128xf32>
      %247 = math.exp %246 : vector<8x128xf32>
      %cst_67 = arith.constant 1.000000e+00 : f32
      %248 = vector.broadcast %cst_67 : f32 to vector<8x128xf32>
      %249 = arith.addf %248, %247 : vector<8x128xf32>
      %250 = arith.divf %248, %249 : vector<8x128xf32>
      %251 = arith.mulf %242, %223 : vector<8x128xf32>
      %252 = arith.mulf %236, %244 : vector<8x128xf32>
      %253 = arith.addf %251, %252 : vector<8x128xf32>
      %254 = math.tanh %253 : vector<8x128xf32>
      %255 = arith.mulf %250, %254 : vector<8x128xf32>
      %256 = arith.truncf %255 : vector<8x128xf32> to vector<8x128xbf16>
      %c0_68 = arith.constant 0 : index
      %c0_69 = arith.constant 0 : index
      %257 = vector.load %arg11[%c0_68, %c0_69] : memref<128x64xbf16, #tpu.memory_space<vmem>>, vector<128x64xbf16>
      %cst_70 = arith.constant dense<0.000000e+00> : vector<8x64xf32>
      %258 = tpu.matmul %256, %257, %cst_70 {dimension_numbers = #tpu.dot_dimension_numbers<[1], [0], [0], [1], [0, 0, 1, 1], [], []>} : vector<8x128xbf16>, vector<128x64xbf16>, vector<8x64xf32> -> vector<8x64xf32>
      %c0_71 = arith.constant 0 : index
      %c0_72 = arith.constant 0 : index
      %259 = vector.load %arg12[%c0_71, %c0_72] : memref<3x64xf32, #tpu.memory_space<vmem>>, vector<1x64xf32>
      %c1 = arith.constant 1 : index
      %c0_73 = arith.constant 0 : index
      %260 = vector.load %arg12[%c1, %c0_73] : memref<3x64xf32, #tpu.memory_space<vmem>>, vector<1x64xf32>
      %c2 = arith.constant 2 : index
      %c0_74 = arith.constant 0 : index
      %261 = vector.load %arg12[%c2, %c0_74] : memref<3x64xf32, #tpu.memory_space<vmem>>, vector<1x64xf32>
      %262 = vector.broadcast %259 : vector<1x64xf32> to vector<8x64xf32>
      %263 = arith.addf %258, %262 : vector<8x64xf32>
      %cst_75 = arith.constant dense<0.000000e+00> : vector<64xf32>
      %264 = vector.multi_reduction <add>, %263, %cst_75 [0] : vector<8x64xf32> to vector<64xf32>
      %265 = vector.shape_cast %264 : vector<64xf32> to vector<1x64xf32>
      %cst_76 = arith.constant 8.000000e+00 : f32
      %266 = vector.broadcast %cst_76 : f32 to vector<1x64xf32>
      %267 = arith.divf %265, %266 : vector<1x64xf32>
      %268 = vector.broadcast %267 : vector<1x64xf32> to vector<8x64xf32>
      %269 = arith.subf %263, %268 : vector<8x64xf32>
      %270 = arith.mulf %269, %269 : vector<8x64xf32>
      %cst_77 = arith.constant dense<0.000000e+00> : vector<64xf32>
      %271 = vector.multi_reduction <add>, %270, %cst_77 [0] : vector<8x64xf32> to vector<64xf32>
      %272 = vector.shape_cast %271 : vector<64xf32> to vector<1x64xf32>
      %cst_78 = arith.constant 8.000000e+00 : f32
      %273 = vector.broadcast %cst_78 : f32 to vector<1x64xf32>
      %274 = arith.divf %272, %273 : vector<1x64xf32>
      %275 = vector.broadcast %267 : vector<1x64xf32> to vector<8x64xf32>
      %276 = arith.subf %263, %275 : vector<8x64xf32>
      %cst_79 = arith.constant 9.99999974E-6 : f32
      %277 = vector.broadcast %cst_79 : f32 to vector<1x64xf32>
      %278 = arith.addf %274, %277 : vector<1x64xf32>
      %279 = math.rsqrt %278 : vector<1x64xf32>
      %280 = vector.broadcast %279 : vector<1x64xf32> to vector<8x64xf32>
      %281 = arith.mulf %276, %280 : vector<8x64xf32>
      %282 = vector.broadcast %260 : vector<1x64xf32> to vector<8x64xf32>
      %283 = arith.mulf %281, %282 : vector<8x64xf32>
      %284 = vector.broadcast %261 : vector<1x64xf32> to vector<8x64xf32>
      %285 = arith.addf %283, %284 : vector<8x64xf32>
      %cst_80 = arith.constant 0.000000e+00 : f32
      %286 = vector.broadcast %cst_80 : f32 to vector<8x64xf32>
      %287 = arith.maximumf %285, %286 : vector<8x64xf32>
      %288 = arith.truncf %287 : vector<8x64xf32> to vector<8x64xbf16>
      %c0_81 = arith.constant 0 : index
      %c0_82 = arith.constant 0 : index
      %289 = vector.load %arg13[%c0_81, %c0_82] : memref<64x96xbf16, #tpu.memory_space<vmem>>, vector<64x96xbf16>
      %cst_83 = arith.constant dense<0.000000e+00> : vector<8x96xf32>
      %290 = tpu.matmul %288, %289, %cst_83 {dimension_numbers = #tpu.dot_dimension_numbers<[1], [0], [0], [1], [0, 0, 1, 1], [], []>} : vector<8x64xbf16>, vector<64x96xbf16>, vector<8x96xf32> -> vector<8x96xf32>
      %291 = arith.mulf %290, %290 : vector<8x96xf32>
      %cst_84 = arith.constant dense<0.000000e+00> : vector<8xf32>
      %292 = vector.multi_reduction <add>, %291, %cst_84 [1] : vector<8x96xf32> to vector<8xf32>
      %293 = vector.shape_cast %292 : vector<8xf32> to vector<8x1xf32>
      %294 = math.sqrt %293 : vector<8x1xf32>
      %cst_85 = arith.constant 9.99999996E-13 : f32
      %295 = vector.broadcast %cst_85 : f32 to vector<8x1xf32>
      %296 = arith.maximumf %294, %295 : vector<8x1xf32>
      %297 = vector.broadcast %296 : vector<8x1xf32> to vector<8x96xf32>
      %298 = arith.divf %290, %297 : vector<8x96xf32>
      %c0_86 = arith.constant 0 : index
      %c0_87 = arith.constant 0 : index
      %c0_88 = arith.constant 0 : index
      %299 = vector.load %arg14[%c0_86, %c0_87, %c0_88] : memref<1x8x96xf32, #tpu.memory_space<vmem>>, vector<1x8x96xf32>
      %300 = vector.shape_cast %299 : vector<1x8x96xf32> to vector<8x96xf32>
      %301 = vector.shape_cast %298 : vector<8x96xf32> to vector<1x8x96xf32>
      tpu.vector_store %arg14[%c0_86, %c0_87, %c0_88], %301 {strides = array<i32>} : memref<1x8x96xf32, #tpu.memory_space<vmem>>, vector<1x8x96xf32>,
    } else {
    }
    return
  }
  func.func @transform_0(%arg0: i32) -> (i32, i32) {
    %c0_i32 = arith.constant 0 : i32
    %c0_i32_0 = arith.constant 0 : i32
    %c0_i32_1 = arith.constant 0 : i32
    return %c0_i32, %c0_i32_0 : i32, i32
  }
  func.func @transform_1(%arg0: i32) -> (i32, i32) {
    %c0_i32 = arith.constant 0 : i32
    %c0_i32_0 = arith.constant 0 : i32
    %c0_i32_1 = arith.constant 0 : i32
    return %c0_i32, %c0_i32_0 : i32, i32
  }
  func.func @transform_2(%arg0: i32) -> (i32, i32) {
    %c0_i32 = arith.constant 0 : i32
    %c0_i32_0 = arith.constant 0 : i32
    %c0_i32_1 = arith.constant 0 : i32
    return %c0_i32, %c0_i32_0 : i32, i32
  }
  func.func @transform_3(%arg0: i32) -> (i32, i32, i32) {
    %c0_i32 = arith.constant 0 : i32
    %c0_i32_0 = arith.constant 0 : i32
    %c0_i32_1 = arith.constant 0 : i32
    %c0_i32_2 = arith.constant 0 : i32
    return %c0_i32, %c0_i32_0, %c0_i32_1 : i32, i32, i32
  }
  func.func @transform_4(%arg0: i32) -> (i32, i32, i32) {
    %c0_i32 = arith.constant 0 : i32
    %c0_i32_0 = arith.constant 0 : i32
    %c0_i32_1 = arith.constant 0 : i32
    %c0_i32_2 = arith.constant 0 : i32
    return %c0_i32, %c0_i32_0, %c0_i32_1 : i32, i32, i32
  }
  func.func @transform_5(%arg0: i32) -> (i32, i32) {
    %c0_i32 = arith.constant 0 : i32
    %c0_i32_0 = arith.constant 0 : i32
    %c0_i32_1 = arith.constant 0 : i32
    return %c0_i32, %c0_i32_0 : i32, i32
  }
  func.func @transform_6(%arg0: i32) -> (i32, i32) {
    %c0_i32 = arith.constant 0 : i32
    %c0_i32_0 = arith.constant 0 : i32
    %c0_i32_1 = arith.constant 0 : i32
    return %c0_i32, %c0_i32_0 : i32, i32
  }
  func.func @transform_7(%arg0: i32) -> (i32, i32) {
    %c0_i32 = arith.constant 0 : i32
    %c0_i32_0 = arith.constant 0 : i32
    %c0_i32_1 = arith.constant 0 : i32
    return %c0_i32, %c0_i32_0 : i32, i32
  }
  func.func @transform_8(%arg0: i32) -> (i32, i32) {
    %c0_i32 = arith.constant 0 : i32
    %c0_i32_0 = arith.constant 0 : i32
    %c0_i32_1 = arith.constant 0 : i32
    return %c0_i32, %c0_i32_0 : i32, i32
  }
  func.func @transform_9(%arg0: i32) -> (i32, i32) {
    %c0_i32 = arith.constant 0 : i32
    %c0_i32_0 = arith.constant 0 : i32
    %c0_i32_1 = arith.constant 0 : i32
    return %c0_i32, %c0_i32_0 : i32, i32
  }
  func.func @transform_10(%arg0: i32) -> (i32, i32) {
    %c0_i32 = arith.constant 0 : i32
    %c0_i32_0 = arith.constant 0 : i32
    %c0_i32_1 = arith.constant 0 : i32
    return %c0_i32, %c0_i32_0 : i32, i32
  }
  func.func @transform_11(%arg0: i32) -> (i32, i32) {
    %c0_i32 = arith.constant 0 : i32
    %c0_i32_0 = arith.constant 0 : i32
    %c0_i32_1 = arith.constant 0 : i32
    return %c0_i32, %c0_i32_0 : i32, i32
  }
  func.func @transform_12(%arg0: i32) -> (i32, i32) {
    %c0_i32 = arith.constant 0 : i32
    %c0_i32_0 = arith.constant 0 : i32
    %c0_i32_1 = arith.constant 0 : i32
    return %c0_i32, %c0_i32_0 : i32, i32
  }
  func.func @transform_13(%arg0: i32) -> (i32, i32, i32) {
    %c0_i32 = arith.constant 0 : i32
    %c0_i32_0 = arith.constant 0 : i32
    %c0_i32_1 = arith.constant 0 : i32
    return %arg0, %c0_i32, %c0_i32_0 : i32, i32, i32
  }
}

</mosaic_0001>

<bundles_post_ra>
// kernel: net_forward.1
= control target key start
LH: loop header
LB: loop body
LE: loop exit
PB: predicated region body
PF: predicated region fallthrough
CT: control target
= control target key end

     0   :  { %s5286_s25 = smov 0   ;;  %s6646_s0 = inlined_call_operand.vmem [shape: bf16[40,40], index: 0, kind: input, shape index: {}]   ;;  %s6647_s1 = inlined_call_operand.vmem [shape: f32[40,16], index: 1, kind: input, shape index: {}]   ;;  %s6648_s2 = inlined_call_operand.vmem [shape: bf16[8,40], index: 2, kind: input, shape index: {}]   ;;  %s6649_s3 = inlined_call_operand.vmem [shape: bf16[5,16,16], index: 3, kind: input, shape index: {}]   ;;  %s6650_s4 = inlined_call_operand.vmem [shape: bf16[5,16,16], index: 4, kind: input, shape index: {}]   ;;  %s6651_s5 = inlined_call_operand.vmem [shape: f32[20,16], index: 5, kind: input, shape index: {}]   ;;  %s6652_s6 = inlined_call_operand.vmem [shape: f32[64,16], index: 6, kind: input, shape index: {}]   ;;  %s6653_s7 = inlined_call_operand.vmem [shape: bf16[16,512], index: 7, kind: input, shape index: {}]   ;;  %s6654_s8 = inlined_call_operand.vmem [shape: bf16[128,512], index: 8, kind: input, shape index: {}]   ;;  %s6655_s9 = inlined_call_operand.vmem [shape: f32[1,512], index: 9, kind: input, shape index: {}]   ;;  %s6656_s10 = inlined_call_operand.vmem [shape: bf16[128,64], index: 10, kind: input, shape index: {}]   ;;  %s6657_s11 = inlined_call_operand.vmem [shape: f32[3,64], index: 11, kind: input, shape index: {}]   ;;  %s6658_s12 = inlined_call_operand.vmem [shape: bf16[64,96], index: 12, kind: input, shape index: {}]   ;;  %s6659_s13 = inlined_call_operand.vmem [shape: f32[2,8,96], index: 13, kind: output, shape index: {}]  }
   0x1 LB: > { %s5292_s26 = sadd.s32 4294967295, %s5209_s25   ;;  %p4236_p0 = scmp.ge.s32.totalorder %s5209_s25, 1  ;;  %s5209_s25 = sphi %s5286_s25, %s23_s25  }
   0x2   : > { %p377_p1 = scmp.lt.s32.totalorder %s5209_s25, 3 }
   0x4   : > { %p378_p2 = pnand %p4236_p0, %p377_p1 }
   0x5   : > { %p415_p3 = scmp.lt.s32.totalorder (!%p378_p2), %s5292_s26, 1  ;;  %p4238_p4 = scmp.ne.s32.totalorder (!%p378_p2), %s5292_s26, 0 }
   0x6   : > { %381 = sbr.rel (%p378_p2) target bundleno = 7655 (0x1de7), region = 72 }
   0xd   : > { %s416_s27 = scalar_select %p415_p3, %s5292_s26, 1 }
   0xe   : > { %423 = sbr.rel (%p4238_p4) target bundleno = 4869 (0x1305), region = 76  ;;  %v430_v0 = vld [vmem:[%s6647_s1] sm:$0xff] (!%p4238_p4)  ;;  %v431_v1 = vld [vmem:[%s6647_s1 + $0x8] sm:$0xff] (!%p4238_p4)  ;;  %v432_v2 = vld [vmem:[%s6647_s1 + $0x10] sm:$0xff] (!%p4238_p4)  ;;  %v5211_v3 = vmov (!%p4238_p4), 0.0   ;;  %vm461_vm0 = vcmask (!%p4238_p4), 1043456  }
   0xf   : > { %s4237_s28 = sshll.u32 %s416_s27, 3  ;;  %4562 = vmatprep.subr.bf16.mxu0 (!%p4238_p4), %v5211_v3  ;;  %v435_v4 = vpack.c.bf16 (!%p4238_p4), %v431_v1, %v430_v0  ;;  %v433_v5 = vld [vmem:[%s6647_s1 + $0x18] sm:$0xff] (!%p4238_p4)  ;;  %v434_v6 = vld [vmem:[%s6647_s1 + $0x20] sm:$0xff] (!%p4238_p4)  ;;  %vm5212_vm1 = vmmov (!%p4238_p4), 0   ;;  %4580 = vmatprep.subr.bf16.mxu1 (!%p4238_p4), %v5211_v3  ;;  %vm451_vm2 = vcmask (!%p4238_p4), 326656   ;;  %v5341_v11 = vld [vmem:[%s6646_s0 + $0x8] sm:$0xff] (!%p4238_p4)  }
  0x10   : > { %s5301_s14 = scalar_lea.vmem %s6659_s13, %s4237_s28  ;;  %4568 = vmatprep.mubr.msk.bf16.mxu0 (!%p4238_p4), %vm5212_vm1, %v5211_v3  ;;  %v437_v7 = vpack.c.bf16 (!%p4238_p4), %v434_v6, %v434_v6  ;;  %4582 = vmatprep.mubr.msk.bf16.mxu1 (!%p4238_p4), %vm5212_vm1, %v5211_v3  ;;  %v436_v8 = vpack.c.bf16 (!%p4238_p4), %v433_v5, %v432_v2  ;;  %v5331_v10 = vld [vmem:[%s6646_s0] sm:$0xff] (!%p4238_p4)   ;;  %v5350_v12 = vld [vmem:[%s6646_s0 + $0x10] ss:$0 sps:$4 sm:$0xff] (!%p4238_p4)   ;;  %vm537_vm3 = vcmask (!%p4238_p4), 130048   ;;  %vm2464_vm4 = vcmask (!%p4238_p4), 523264  }
  0x11   : > { %4563 = vmatpush3.bf16.msra.mxu0 (!%p4238_p4), %v435_v4  ;;  %v4932_v13 = vld [vmem:[%s6649_s3] sm:$0xff] (!%p4238_p4)   ;;  %vm2575_vm5 = vcmask (!%p4238_p4), 785408  }
  0x12   : > { %4564 = vmatprep.subr.bf16.mxu0 (!%p4238_p4), %v5211_v3  ;;  %v463_v9 = vsel (!%p4238_p4), %vm461_vm0, %v437_v7, 0  ;;  %4581 = vmatpush3.bf16.msra.mxu1 (!%p4238_p4), %v4932_v13  ;;  %v4933_v17 = vld [vmem:[%s6650_s4] sm:$0xff] (!%p4238_p4)  }
  0x13   : > { %4594 = vmatprep.subr.bf16.mxu1 (!%p4238_p4), %v5211_v3  ;;  %v4245_v30 = vld [vmem:[%s6651_s5] ss:$0 sm:$0xff] (!%p4238_p4)  ;;  %v4250_v56 = vld [vmem:[%s6651_s5 + $0x1] ss:$0 sm:$0xff] (!%p4238_p4) }
  0x15   : > { %4565 = vmatpush3.bf16.msra.mxu0 %v436_v8 }
  0x16   : > { %4566 = vmatprep.subr.bf16.mxu0 %v5211_v3 }
  0x19   : > { %4567 = vmatpush3.bf16.msra.mxu0 %v463_v9 }
  0x1a   : > { %4618 = vmatprep.subr.bf16.mxu0 %v5211_v3 }
  0x1c   : > { %4569 = vmatmul.mubr.msk.bf16.vlgmr.msra.gmra.mrb[0].mxu0 %vm451_vm2, %v5331_v10 }
  0x1d   : > { %4572 = vmatprep.mubr.msk.bf16.mxu0 %vm5212_vm1, %v5211_v3 }
  0x24   : > { %4573 = vmatmul.mubr.msk.bf16.gmra.mrb[4].mxu0 %vm451_vm2, %v5341_v11 }
  0x25   : > { %4576 = vmatprep.mubr.msk.bf16.mxu0 %vm5212_vm1, %v5211_v3 }
  0x2c   : > { %4577 = vmatmul.mubr.msk.bf16.gmra.mrb[8].mxu0 %vm451_vm2, %v5350_v12 }
  0x2d   : > { %4624 = vmatprep.mubr.msk.bf16.mxu0 %vm5212_vm1, %v5211_v3 }
  0xef   : > { %v499_v14 = vpop.f32.mrb[0].mxu0 }
  0xf0   : > { %v4570_v15 = vpop.f32.mrb[1].mxu0 }
  0xf1   : > { %v502_v16 = vpop.f32.mrb[2].mxu0 }
  0xf2   : > { %v521_v18 = vpack.c.bf16 %v502_v16, %v499_v14  ;;  %v4571_v19 = vpop.f32.mrb[3].mxu0 }
  0xf4   : > { %4583 = vmatmul.mubr.msk.bf16.vlgmr.msra.gmra.mrb[0].mxu1 %vm537_vm3, %v521_v18 }
  0xf5   : > { %4586 = vmatprep.mubr.msk.bf16.mxu1 %vm5212_vm1, %v5211_v3  ;;  %4595 = vmatpush3.bf16.msra.mxu1 %v4933_v17 }
  0xf6   : > { %4608 = vmatprep.subr.bf16.mxu1 %v5211_v3 }
  0xf7   : > { %v507_v20 = vpop.f32.mrb[4].mxu0 }
  0xf8   : > { %v4574_v21 = vpop.f32.mrb[5].mxu0 }
  0xf9   : > { %v510_v22 = vpop.f32.mrb[6].mxu0 }
  0xfa   : > { %v522_v23 = vpack.c.bf16 %v510_v22, %v507_v20  ;;  %v4575_v24 = vpop.f32.mrb[7].mxu0 }
  0xfc   : > { %4587 = vmatmul.mubr.msk.bf16.gmra.mrb[4].mxu1 %vm537_vm3, %v522_v23 }
  0xfd   : > { %4590 = vmatprep.mubr.msk.bf16.mxu1 %vm5212_vm1, %v5211_v3 }
  0xff   : > { %v515_v25 = vpop.f32.mrb[8].mxu0 }
 0x100   : > { %v523_v26 = vpack.c.bf16 %v515_v25, %v515_v25  ;;  %v4578_v27 = vpop.f32.mrb[9].mxu0 }
 0x101   : > { %v518_v28 = vpop.f32.mrb[10].mxu0 }
 0x102   : > { %v4579_v29 = vpop.f32.mrb[11].mxu0 }
 0x104   : > { %4591 = vmatmul.mubr.msk.bf16.gmra.mrb[8].mxu1 %vm537_vm3, %v523_v26 }
 0x105   : > { %4596 = vmatprep.mubr.msk.bf16.mxu1 %vm5212_vm1, %v5211_v3 }
 0x1c7   : > { %v581_v31 = vpop.f32.mrb[0].mxu1 }
 0x1c8   : > { %v582_v32 = vadd.f32 %v4245_v30, %v581_v31  ;;  %v4584_v33 = vpop.f32.mrb[1].mxu1 }
 0x1c9   : > { %v584_v34 = vpop.f32.mrb[2].mxu1 }
 0x1ca   : > { %v585_v35 = vadd.f32 %v4245_v30, %v584_v34  ;;  %v4585_v36 = vpop.f32.mrb[3].mxu1  ;;  %v603_v37 = vmax.f32 %v582_v32, 0.0 }
 0x1cc   : > { %v604_v38 = vmax.f32 %v585_v35, 0.0 }
 0x1ce   : > { %v608_v39 = vpack.c.bf16 %v604_v38, %v603_v37 }
 0x1cf   : > { %v589_v40 = vpop.f32.mrb[4].mxu1 }
 0x1d0   : > { %v590_v41 = vadd.f32 %v4245_v30, %v589_v40  ;;  %v4588_v42 = vpop.f32.mrb[5].mxu1  ;;  %4597 = vmatmul.mubr.msk.bf16.vlgmr.msra.gmra.mrb[12].mxu1 %vm537_vm3, %v608_v39 }
 0x1d1   : > { %v592_v43 = vpop.f32.mrb[6].mxu1  ;;  %4600 = vmatprep.mubr.msk.bf16.mxu1 %vm5212_vm1, %v5211_v3 }
 0x1d2   : > { %v593_v44 = vadd.f32 %v4245_v30, %v592_v43  ;;  %v4589_v45 = vpop.f32.mrb[7].mxu1  ;;  %v605_v46 = vmax.f32 %v590_v41, 0.0 }
 0x1d4   : > { %v606_v47 = vmax.f32 %v593_v44, 0.0 }
 0x1d6   : > { %v609_v48 = vpack.c.bf16 %v606_v47, %v605_v46 }
 0x1d7   : > { %v597_v49 = vpop.f32.mrb[8].mxu1 }
 0x1d8   : > { %v598_v50 = vadd.f32 %v4245_v30, %v597_v49  ;;  %v4592_v51 = vpop.f32.mrb[9].mxu1  ;;  %4601 = vmatmul.mubr.msk.bf16.gmra.mrb[16].mxu1 %vm537_vm3, %v609_v48 }
 0x1d9   : > { %v600_v52 = vpop.f32.mrb[10].mxu1  ;;  %4604 = vmatprep.mubr.msk.bf16.mxu1 %vm5212_vm1, %v5211_v3 }
 0x1da   : > { %v607_v53 = vmax.f32 %v598_v50, 0.0  ;;  %v4593_v54 = vpop.f32.mrb[11].mxu1 }
 0x1dc   : > { %v610_v55 = vpack.c.bf16 %v607_v53, %v607_v53 }
 0x1e0   : > { %4605 = vmatmul.mubr.msk.bf16.gmra.mrb[20].mxu1 %vm537_vm3, %v610_v55 }
 0x1e1   : > { %4614 = vmatprep.mubr.msk.bf16.mxu1 %vm5212_vm1, %v5211_v3 }
 0x2a3   : > { %v667_v57 = vpop.f32.mrb[12].mxu1 }
 0x2a4   : > { %v668_v58 = vadd.f32 %v4250_v56, %v667_v57  ;;  %v4598_v59 = vpop.f32.mrb[13].mxu1 }
 0x2a5   : > { %v670_v60 = vpop.f32.mrb[14].mxu1 }
 0x2a6   : > { %v689_v61 = vmax.f32 %v668_v58, 0.0  ;;  %v671_v62 = vadd.f32 %v4250_v56, %v670_v60  ;;  %v4599_v63 = vpop.f32.mrb[15].mxu1 }
 0x2a7   : > { %v4255_v63 = vld [vmem:[%s6651_s5 + $0x2] ss:$0 sm:$0xff] }
 0x2a8   : > { %v690_v0 = vmax.f32 %v671_v62, 0.0  ;;  %v694_v1 = vsel %vm537_vm3, %v689_v61, 0.0 }
 0x2aa   : > { %v695_v2 = vsel %vm537_vm3, %v690_v0, 0.0 }
 0x2ab   : > { %v696_v4 = vadd.f32 %v695_v2, %v694_v1  ;;  %v675_v5 = vpop.f32.mrb[16].mxu1 }
 0x2ac   : > { %v676_v6 = vadd.f32 %v4250_v56, %v675_v5  ;;  %v4602_v7 = vpop.f32.mrb[17].mxu1  ;;  %v4256_v5 = vld [vmem:[%s6651_s5 + $0x3] ss:$0 sm:$0xff] }
 0x2ad   : > { %v678_v8 = vpop.f32.mrb[18].mxu1 }
 0x2ae   : > { %v691_v9 = vmax.f32 %v676_v6, 0.0  ;;  %v679_v13 = vadd.f32 %v4250_v56, %v678_v8  ;;  %v4603_v14 = vpop.f32.mrb[19].mxu1 }
 0x2b0   : > { %v697_v15 = vsel %vm537_vm3, %v691_v9, 0.0  ;;  %v692_v16 = vmax.f32 %v679_v13, 0.0 }
 0x2b1   : > { %v698_v17 = vadd.f32 %v697_v15, %v696_v4 }
 0x2b2   : > { %v699_v18 = vsel %vm537_vm3, %v692_v16, 0.0 }
 0x2b3   : > { %v700_v19 = vadd.f32 %v699_v18, %v698_v17  ;;  %v683_v20 = vpop.f32.mrb[20].mxu1 }
 0x2b4   : > { %v684_v21 = vadd.f32 %v4250_v56, %v683_v20  ;;  %v4606_v22 = vpop.f32.mrb[21].mxu1 }
 0x2b5   : > { %v686_v23 = vpop.f32.mrb[22].mxu1 }
 0x2b6   : > { %v693_v24 = vmax.f32 %v684_v21, 0.0  ;;  %v4607_v25 = vpop.f32.mrb[23].mxu1 }
 0x2b7   : > { %v4934_v25 = vld [vmem:[%s6649_s3 + $0x8] sm:$0xff]  }
 0x2b8   : > { %v701_v26 = vsel %vm537_vm3, %v693_v24, 0.0 }
 0x2b9   : > { %v702_v27 = vadd.f32 %v701_v26, %v700_v19  ;;  %v4935_v26 = vld [vmem:[%s6650_s4 + $0x8] sm:$0xff]  }
 0x2bb   : > { %v703_v28 = vrot.slane %v702_v27, 4 }
 0x2bd   : > { %v704_v29 = vadd.f32 %v703_v28, %v702_v27 }
 0x2bf   : > { %v705_v30 = vrot.slane %v704_v29, 2 }
 0x2c1   : > { %v706_v31 = vadd.f32 %v705_v30, %v704_v29 }
 0x2c3   : > { %v707_v32 = vrot.slane %v706_v31, 1 }
 0x2c5   : > { %v708_v33 = vadd.f32 %v707_v32, %v706_v31 }
 0x2c7   : > { %v710_v34 = vmul.f32 0.025, %v708_v33 }
 0x2c9   : > { %v711_v35 = vsub.f32 %v689_v61, %v710_v34  ;;  %v712_v36 = vsub.f32 %v690_v0, %v710_v34  ;;  %v713_v37 = vsub.f32 %v691_v9, %v710_v34  ;;  %v714_v38 = vsub.f32 %v692_v16, %v710_v34 }
 0x2ca   : > { %v715_v39 = vsub.f32 %v693_v24, %v710_v34  ;;  %v5412_v24 = vld [vmem:[%s6648_s2] sm:$0xf] }
 0x2cb   : > { %v716_v40 = vmul.f32 %v711_v35, %v711_v35  ;;  %v717_v41 = vmul.f32 %v712_v36, %v712_v36  ;;  %v718_v42 = vmul.f32 %v713_v37, %v713_v37  ;;  %v719_v43 = vmul.f32 %v714_v38, %v714_v38 }
 0x2cc   : > { %v720_v47 = vmul.f32 %v715_v39, %v715_v39 }
 0x2cd   : > { %v721_v44 = vsel %vm537_vm3, %v716_v40, 0.0  ;;  %v722_v45 = vsel %vm537_vm3, %v717_v41, 0.0  ;;  %v724_v48 = vsel %vm537_vm3, %v718_v42, 0.0  ;;  %v726_v50 = vsel %vm537_vm3, %v719_v43, 0.0 }
 0x2ce   : > { %v723_v46 = vadd.f32 %v722_v45, %v721_v44  ;;  %v728_v52 = vsel %vm537_vm3, %v720_v47, 0.0 }
 0x2d0   : > { %v725_v49 = vadd.f32 %v724_v48, %v723_v46  ;;  %v4263_v46 = vld [vmem:[%s6651_s5 + $0x4] ss:$0 sm:$0xff] }
 0x2d2   : > { %v727_v51 = vadd.f32 %v726_v50, %v725_v49 }
 0x2d4   : > { %v729_v53 = vadd.f32 %v728_v52, %v727_v51 }
 0x2d6   : > { %v730_v54 = vrot.slane %v729_v53, 4 }
 0x2d8   : > { %v731_v55 = vadd.f32 %v730_v54, %v729_v53 }
 0x2da   : > { %v732_v56 = vrot.slane %v731_v55, 2 }
 0x2dc   : > { %v733_v57 = vadd.f32 %v732_v56, %v731_v55 }
 0x2de   : > { %v734_v58 = vrot.slane %v733_v57, 1 }
 0x2e0   : > { %v735_v59 = vadd.f32 %v734_v58, %v733_v57 }
 0x2e2   : > { %v736_v60 = vmul.f32 0.025, %v735_v59 }
 0x2e4   : > { %v737_v61 = vadd.f32 1e-05, %v736_v60 }
 0x2e6   : > { %4951 = vrsqrt.f32 %v737_v61 }
 0x2f0   : > { %v4952_v62 = vpop.eup %4951 }
 0x2f1   : > { %v743_v0 = vmul.f32 %v4952_v62, %v715_v39  ;;  %v739_v1 = vmul.f32 %v4952_v62, %v711_v35  ;;  %v740_v2 = vmul.f32 %v4952_v62, %v712_v36  ;;  %v741_v4 = vmul.f32 %v4952_v62, %v713_v37 }
 0x2f2   : > { %v742_v6 = vmul.f32 %v4952_v62, %v714_v38 }
 0x2f3   : > { %v749_v7 = vmul.f32 %v4255_v63, %v739_v1  ;;  %v750_v8 = vmul.f32 %v4255_v63, %v740_v2  ;;  %v751_v9 = vmul.f32 %v4255_v63, %v741_v4  ;;  %v753_v13 = vmul.f32 %v4255_v63, %v743_v0 }
 0x2f4   : > { %v752_v14 = vmul.f32 %v4255_v63, %v742_v6 }
 0x2f5   : > { %v759_v15 = vadd.f32 %v4256_v5, %v749_v7  ;;  %v760_v16 = vadd.f32 %v4256_v5, %v750_v8  ;;  %v761_v17 = vadd.f32 %v4256_v5, %v751_v9  ;;  %v763_v21 = vadd.f32 %v4256_v5, %v753_v13  ;;  %v4270_v9 = vld [vmem:[%s6651_s5 + $0x5] ss:$0 sm:$0xff] }
 0x2f6   : > { %v762_v18 = vadd.f32 %v4256_v5, %v752_v14 }
 0x2f7   : > { %v764_v19 = vpack.c.bf16 %v760_v16, %v759_v15  ;;  %v766_v22 = vpack.c.bf16 %v763_v21, %v763_v21 }
 0x2f8   : > { %v765_v20 = vpack.c.bf16 %v762_v18, %v761_v17 }
 0x2f9   : > { %4609 = vmatpush3.bf16.msra.mxu1 %v764_v19  ;;  %4619 = vmatpush3.bf16.msra.mxu0 %v764_v19  ;;  %v771_v23 = vsel %vm461_vm0, %v766_v22, 0 }
 0x2fa   : > { %4610 = vmatprep.subr.bf16.mxu1 %v5211_v3  ;;  %4620 = vmatprep.subr.bf16.mxu0 %v5211_v3 }
 0x2fd   : > { %4611 = vmatpush3.bf16.msra.mxu1 %v765_v20  ;;  %4621 = vmatpush3.bf16.msra.mxu0 %v765_v20 }
 0x2fe   : > { %4612 = vmatprep.subr.bf16.mxu1 %v5211_v3  ;;  %4622 = vmatprep.subr.bf16.mxu0 %v5211_v3 }
 0x301   : > { %4613 = vmatpush3.bf16.msra.mxu1 %v771_v23  ;;  %4623 = vmatpush3.bf16.msra.mxu0 %v771_v23 }
 0x302   : > { %4636 = vmatprep.subr.bf16.mxu1 %v5211_v3  ;;  %4650 = vmatprep.subr.bf16.mxu0 %v5211_v3 }
 0x304   : > { %4625 = vmatmul.mubr.msk.bf16.vlgmr.msra.gmra.mrb[12].mxu0 %vm451_vm2, %v5331_v10  ;;  %4615 = vmatmul.mubr.msk.bf16.vlgmr.msra.gmra.mrb[24].mxu1 %vm451_vm2, %v5412_v24 }
 0x305   : > { %4628 = vmatprep.mubr.msk.bf16.mxu0 %vm5212_vm1, %v5211_v3  ;;  %4638 = vmatprep.mubr.msk.bf16.mxu1 %vm5212_vm1, %v5211_v3 }
 0x306   : > { %4637 = vmatpush3.bf16.msra.mxu1 %v4934_v25  ;;  %4651 = vmatpush3.bf16.msra.mxu0 %v4935_v26 }
 0x307   : > { %4664 = vmatprep.subr.bf16.mxu1 %v5211_v3  ;;  %4686 = vmatprep.subr.bf16.mxu0 %v5211_v3 }
 0x30c   : > { %4629 = vmatmul.mubr.msk.bf16.gmra.mrb[16].mxu0 %vm451_vm2, %v5341_v11 }
 0x30d   : > { %4632 = vmatprep.mubr.msk.bf16.mxu0 %vm5212_vm1, %v5211_v3 }
 0x314   : > { %4633 = vmatmul.mubr.msk.bf16.gmra.mrb[20].mxu0 %vm451_vm2, %v5350_v12 }
 0x315   : > { %4652 = vmatprep.mubr.msk.bf16.mxu0 %vm5212_vm1, %v5211_v3 }
 0x3d7   : > { %v850_v27 = vpop.f32.mrb[12].mxu0  ;;  %v5440_v28 = vpop.f32.mrb[24].mxu1 }
 0x3d8   : > { %v4626_v29 = vpop.f32.mrb[13].mxu0  ;;  %v4616_v30 = vpop.f32.mrb[25].mxu1 }
 0x3d9   : > { %v853_v31 = vpop.f32.mrb[14].mxu0  ;;  %v810_v32 = vpop.f32.mrb[26].mxu1 }
 0x3da   : > { %v872_v33 = vpack.c.bf16 %v853_v31, %v850_v27  ;;  %v4627_v34 = vpop.f32.mrb[15].mxu0  ;;  %v4617_v35 = vpop.f32.mrb[27].mxu1 }
 0x3dc   : > { %4639 = vmatmul.mubr.msk.bf16.vlgmr.msra.gmra.mrb[28].mxu1 %vm537_vm3, %v872_v33 }
 0x3dd   : > { %4642 = vmatprep.mubr.msk.bf16.mxu1 %vm5212_vm1, %v5211_v3 }
 0x3df   : > { %v858_v36 = vpop.f32.mrb[16].mxu0 }
 0x3e0   : > { %v4630_v37 = vpop.f32.mrb[17].mxu0 }
 0x3e1   : > { %v861_v38 = vpop.f32.mrb[18].mxu0 }
 0x3e2   : > { %v873_v39 = vpack.c.bf16 %v861_v38, %v858_v36  ;;  %v4631_v40 = vpop.f32.mrb[19].mxu0 }
 0x3e4   : > { %4643 = vmatmul.mubr.msk.bf16.gmra.mrb[32].mxu1 %vm537_vm3, %v873_v39 }
 0x3e5   : > { %4646 = vmatprep.mubr.msk.bf16.mxu1 %vm5212_vm1, %v5211_v3 }
 0x3e7   : > { %v866_v41 = vpop.f32.mrb[20].mxu0 }
 0x3e8   : > { %v874_v42 = vpack.c.bf16 %v866_v41, %v866_v41  ;;  %v4634_v43 = vpop.f32.mrb[21].mxu0 }
 0x3e9   : > { %v869_v44 = vpop.f32.mrb[22].mxu0 }
 0x3ea   : > { %v4635_v45 = vpop.f32.mrb[23].mxu0 }
 0x3ec   : > { %4647 = vmatmul.mubr.msk.bf16.gmra.mrb[36].mxu1 %vm537_vm3, %v874_v42 }
 0x3ed   : > { %4670 = vmatprep.mubr.msk.bf16.mxu1 %vm5212_vm1, %v5211_v3 }
 0x4af   : > { %v932_v47 = vpop.f32.mrb[28].mxu1 }
 0x4b0   : > { %v933_v48 = vadd.f32 %v4263_v46, %v932_v47  ;;  %v4640_v49 = vpop.f32.mrb[29].mxu1 }
 0x4b1   : > { %v935_v50 = vpop.f32.mrb[30].mxu1 }
 0x4b2   : > { %v936_v51 = vadd.f32 %v4263_v46, %v935_v50  ;;  %v4641_v52 = vpop.f32.mrb[31].mxu1  ;;  %v954_v53 = vmax.f32 %v933_v48, 0.0 }
 0x4b4   : > { %v955_v54 = vmax.f32 %v936_v51, 0.0 }
 0x4b6   : > { %v959_v55 = vpack.c.bf16 %v955_v54, %v954_v53 }
 0x4b7   : > { %v940_v56 = vpop.f32.mrb[32].mxu1 }
 0x4b8   : > { %v941_v57 = vadd.f32 %v4263_v46, %v940_v56  ;;  %v4644_v58 = vpop.f32.mrb[33].mxu1  ;;  %4653 = vmatmul.mubr.msk.bf16.vlgmr.msra.gmra.mrb[24].mxu0 %vm537_vm3, %v959_v55 }
 0x4b9   : > { %v943_v59 = vpop.f32.mrb[34].mxu1  ;;  %4656 = vmatprep.mubr.msk.bf16.mxu0 %vm5212_vm1, %v5211_v3 }
 0x4ba   : > { %v944_v60 = vadd.f32 %v4263_v46, %v943_v59  ;;  %v4645_v61 = vpop.f32.mrb[35].mxu1  ;;  %v956_v62 = vmax.f32 %v941_v57, 0.0 }
 0x4bc   : > { %v957_v63 = vmax.f32 %v944_v60, 0.0 }
 0x4be   : > { %v960_v0 = vpack.c.bf16 %v957_v63, %v956_v62 }
 0x4bf   : > { %v948_v1 = vpop.f32.mrb[36].mxu1 }
 0x4c0   : > { %v949_v2 = vadd.f32 %v4263_v46, %v948_v1  ;;  %v4648_v4 = vpop.f32.mrb[37].mxu1  ;;  %4657 = vmatmul.mubr.msk.bf16.gmra.mrb[28].mxu0 %vm537_vm3, %v960_v0 }
 0x4c1   : > { %v951_v5 = vpop.f32.mrb[38].mxu1  ;;  %4660 = vmatprep.mubr.msk.bf16.mxu0 %vm5212_vm1, %v5211_v3 }
 0x4c2   : > { %v958_v6 = vmax.f32 %v949_v2, 0.0  ;;  %v4649_v7 = vpop.f32.mrb[39].mxu1 }
 0x4c4   : > { %v961_v8 = vpack.c.bf16 %v958_v6, %v958_v6 }
 0x4c8   : > { %4661 = vmatmul.mubr.msk.bf16.gmra.mrb[32].mxu0 %vm537_vm3, %v961_v8 }
 0x4c9   : > { %4692 = vmatprep.mubr.msk.bf16.mxu0 %vm5212_vm1, %v5211_v3 }
 0x58b   : > { %v1019_v13 = vpop.f32.mrb[24].mxu0 }
 0x58c   : > { %v1020_v14 = vadd.f32 %v4270_v9, %v1019_v13  ;;  %v4654_v15 = vpop.f32.mrb[25].mxu0 }
 0x58d   : > { %v1022_v16 = vpop.f32.mrb[26].mxu0 }
 0x58e   : > { %v1041_v17 = vmax.f32 %v1020_v14, 0.0  ;;  %v1023_v18 = vadd.f32 %v4270_v9, %v1022_v16  ;;  %v4655_v19 = vpop.f32.mrb[27].mxu0 }
 0x590   : > { %v1042_v20 = vmax.f32 %v1023_v18, 0.0  ;;  %v1046_v21 = vsel %vm537_vm3, %v1041_v17, 0.0 }
 0x592   : > { %v1047_v22 = vsel %vm537_vm3, %v1042_v20, 0.0 }
 0x593   : > { %v1048_v23 = vadd.f32 %v1047_v22, %v1046_v21  ;;  %v1027_v25 = vpop.f32.mrb[28].mxu0  ;;  %v4275_v21 = vld [vmem:[%s6651_s5 + $0x6] ss:$0 sm:$0xff] }
 0x594   : > { %v1028_v26 = vadd.f32 %v4270_v9, %v1027_v25  ;;  %v4658_v27 = vpop.f32.mrb[29].mxu0 }
 0x595   : > { %v1030_v29 = vpop.f32.mrb[30].mxu0  ;;  %v4276_v27 = vld [vmem:[%s6651_s5 + $0x7] ss:$0 sm:$0xff] }
 0x596   : > { %v1043_v30 = vmax.f32 %v1028_v26, 0.0  ;;  %v1031_v31 = vadd.f32 %v4270_v9, %v1030_v29  ;;  %v4659_v32 = vpop.f32.mrb[31].mxu0 }
 0x598   : > { %v1049_v33 = vsel %vm537_vm3, %v1043_v30, 0.0  ;;  %v1044_v34 = vmax.f32 %v1031_v31, 0.0 }
 0x599   : > { %v1050_v35 = vadd.f32 %v1049_v33, %v1048_v23 }
 0x59a   : > { %v1051_v36 = vsel %vm537_vm3, %v1044_v34, 0.0 }
 0x59b   : > { %v1052_v37 = vadd.f32 %v1051_v36, %v1050_v35  ;;  %v1035_v38 = vpop.f32.mrb[32].mxu0 }
 0x59c   : > { %v1036_v39 = vadd.f32 %v4270_v9, %v1035_v38  ;;  %v4662_v40 = vpop.f32.mrb[33].mxu0 }
 0x59d   : > { %v1038_v41 = vpop.f32.mrb[34].mxu0 }
 0x59e   : > { %v1045_v42 = vmax.f32 %v1036_v39, 0.0  ;;  %v4663_v43 = vpop.f32.mrb[35].mxu0 }
 0x5a0   : > { %v1053_v44 = vsel %vm537_vm3, %v1045_v42, 0.0 }
 0x5a1   : > { %v1054_v45 = vadd.f32 %v1053_v44, %v1052_v37 }
 0x5a3   : > { %v1055_v46 = vrot.slane %v1054_v45, 4 }
 0x5a5   : > { %v1056_v47 = vadd.f32 %v1055_v46, %v1054_v45 }
 0x5a7   : > { %v1057_v48 = vrot.slane %v1056_v47, 2 }
 0x5a9   : > { %v1058_v49 = vadd.f32 %v1057_v48, %v1056_v47 }
 0x5ab   : > { %v1059_v50 = vrot.slane %v1058_v49, 1 }
 0x5ad   : > { %v1060_v51 = vadd.f32 %v1059_v50, %v1058_v49 }
 0x5af   : > { %v1061_v52 = vmul.f32 0.025, %v1060_v51 }
 0x5b1   : > { %v1062_v53 = vsub.f32 %v1041_v17, %v1061_v52  ;;  %v1063_v54 = vsub.f32 %v1042_v20, %v1061_v52  ;;  %v1064_v55 = vsub.f32 %v1043_v30, %v1061_v52  ;;  %v1065_v56 = vsub.f32 %v1044_v34, %v1061_v52 }
 0x5b2   : > { %v1066_v57 = vsub.f32 %v1045_v42, %v1061_v52 }
 0x5b3   : > { %v1067_v58 = vmul.f32 %v1062_v53, %v1062_v53  ;;  %v1068_v59 = vmul.f32 %v1063_v54, %v1063_v54  ;;  %v1069_v60 = vmul.f32 %v1064_v55, %v1064_v55  ;;  %v1070_v61 = vmul.f32 %v1065_v56, %v1065_v56 }
 0x5b4   : > { %v1071_v1 = vmul.f32 %v1066_v57, %v1066_v57 }
 0x5b5   : > { %v1072_v62 = vsel %vm537_vm3, %v1067_v58, 0.0  ;;  %v1073_v63 = vsel %vm537_vm3, %v1068_v59, 0.0  ;;  %v1075_v2 = vsel %vm537_vm3, %v1069_v60, 0.0  ;;  %v1077_v5 = vsel %vm537_vm3, %v1070_v61, 0.0 }
 0x5b6   : > { %v1074_v0 = vadd.f32 %v1073_v63, %v1072_v62  ;;  %v1079_v7 = vsel %vm537_vm3, %v1071_v1, 0.0 }
 0x5b8   : > { %v1076_v4 = vadd.f32 %v1075_v2, %v1074_v0  ;;  %v4939_v0 = vld [vmem:[%s6650_s4 + $0x10] sm:$0xff]  }
 0x5ba   : > { %v1078_v6 = vadd.f32 %v1077_v5, %v1076_v4 }
 0x5bc   : > { %v1080_v8 = vadd.f32 %v1079_v7, %v1078_v6 }
 0x5be   : > { %v1081_v9 = vrot.slane %v1080_v8, 4 }
 0x5c0   : > { %v1082_v13 = vadd.f32 %v1081_v9, %v1080_v8 }
 0x5c2   : > { %v1083_v14 = vrot.slane %v1082_v13, 2 }
 0x5c4   : > { %v1084_v15 = vadd.f32 %v1083_v14, %v1082_v13  ;;  %v4287_v14 = vld [vmem:[%s6651_s5 + $0x8] ss:$0 sm:$0xff] }
 0x5c6   : > { %v1085_v16 = vrot.slane %v1084_v15, 1 }
 0x5c8   : > { %v1086_v17 = vadd.f32 %v1085_v16, %v1084_v15 }
 0x5ca   : > { %v1087_v18 = vmul.f32 0.025, %v1086_v17 }
 0x5cc   : > { %v1088_v19 = vadd.f32 1e-05, %v1087_v18 }
 0x5ce   : > { %4953 = vrsqrt.f32 %v1088_v19 }
 0x5d8   : > { %v4954_v20 = vpop.eup %4953 }
 0x5d9   : > { %v1094_v22 = vmul.f32 %v4954_v20, %v1066_v57  ;;  %v1090_v23 = vmul.f32 %v4954_v20, %v1062_v53  ;;  %v1091_v25 = vmul.f32 %v4954_v20, %v1063_v54  ;;  %v1092_v26 = vmul.f32 %v4954_v20, %v1064_v55  ;;  %v4938_v53 = vld [vmem:[%s6649_s3 + $0x10] sm:$0xff]  }
 0x5da   : > { %v1093_v29 = vmul.f32 %v4954_v20, %v1065_v56  ;;  %v813_v55 = vpack.c.bf16 %v5440_v28, %v5440_v28 }
 0x5db   : > { %v1100_v30 = vmul.f32 %v4275_v21, %v1090_v23  ;;  %v1101_v31 = vmul.f32 %v4275_v21, %v1091_v25  ;;  %v1102_v32 = vmul.f32 %v4275_v21, %v1092_v26  ;;  %v1104_v33 = vmul.f32 %v4275_v21, %v1094_v22 }
 0x5dc   : > { %v1103_v34 = vmul.f32 %v4275_v21, %v1093_v29 }
 0x5dd   : > { %v1110_v35 = vadd.f32 %v4276_v27, %v1100_v30  ;;  %v1111_v36 = vadd.f32 %v4276_v27, %v1101_v31  ;;  %v1112_v37 = vadd.f32 %v4276_v27, %v1102_v32  ;;  %v1114_v41 = vadd.f32 %v4276_v27, %v1104_v33 }
 0x5de   : > { %v1113_v38 = vadd.f32 %v4276_v27, %v1103_v34 }
 0x5df   : > { %v1115_v39 = vpack.c.bf16 %v1111_v36, %v1110_v35  ;;  %v1117_v42 = vpack.c.bf16 %v1114_v41, %v1114_v41 }
 0x5e0   : > { %v1116_v40 = vpack.c.bf16 %v1113_v38, %v1112_v37 }
 0x5e1   : > { %4665 = vmatpush3.bf16.msra.mxu1 %v1115_v39  ;;  %4687 = vmatpush3.bf16.msra.mxu0 %v1115_v39  ;;  %v1119_v43 = vsel %vm461_vm0, %v1117_v42, 0  ;;  %v4294_v42 = vld [vmem:[%s6651_s5 + $0x9] ss:$0 sm:$0xff] }
 0x5e2   : > { %4666 = vmatprep.subr.bf16.mxu1 %v5211_v3  ;;  %4688 = vmatprep.subr.bf16.mxu0 %v5211_v3 }
 0x5e5   : > { %4667 = vmatpush3.bf16.msra.mxu1 %v1116_v40  ;;  %4689 = vmatpush3.bf16.msra.mxu0 %v1116_v40 }
 0x5e6   : > { %4668 = vmatprep.subr.bf16.mxu1 %v5211_v3  ;;  %4690 = vmatprep.subr.bf16.mxu0 %v5211_v3 }
 0x5e9   : > { %4669 = vmatpush3.bf16.msra.mxu1 %v1119_v43  ;;  %4691 = vmatpush3.bf16.msra.mxu0 %v1119_v43 }
 0x5ea   : > { %4674 = vmatprep.subr.bf16.mxu1 %v5211_v3  ;;  %4718 = vmatprep.subr.bf16.mxu0 %v5211_v3 }
 0x5ec   : > { %4671 = vmatmul.mubr.msk.bf16.vlgmr.msra.gmra.mrb[40].mxu1 %vm451_vm2, %v5412_v24  ;;  %4693 = vmatmul.mubr.msk.bf16.vlgmr.msra.gmra.mrb[36].mxu0 %vm451_vm2, %v5331_v10  ;;  %v4936_v10 = vld [vmem:[%s6656_s10 + $0x8] sm:$0xff]  }
 0x5ed   : > { %4696 = vmatprep.mubr.msk.bf16.mxu0 %vm5212_vm1, %v5211_v3  ;;  %4676 = vmatprep.mubr.msk.bf16.mxu1 %vm5212_vm1, %v5211_v3 }
 0x5ee   : > { %4675 = vmatpush3.bf16.msra.mxu1 %v4936_v10  ;;  %4719 = vmatpush3.bf16.msra.mxu0 %v4939_v0 }
 0x5ef   : > { %4680 = vmatprep.subr.bf16.mxu1 %v5211_v3  ;;  %4748 = vmatprep.subr.bf16.mxu0 %v5211_v3 }
 0x5f4   : > { %4697 = vmatmul.mubr.msk.bf16.gmra.mrb[40].mxu0 %vm451_vm2, %v5341_v11  ;;  %v4937_v11 = vld [vmem:[%s6656_s10] sm:$0xff]  }
 0x5f5   : > { %4700 = vmatprep.mubr.msk.bf16.mxu0 %vm5212_vm1, %v5211_v3 }
 0x5fc   : > { %4701 = vmatmul.mubr.msk.bf16.gmra.mrb[44].mxu0 %vm451_vm2, %v5350_v12 }
 0x5fd   : > { %4720 = vmatprep.mubr.msk.bf16.mxu0 %vm5212_vm1, %v5211_v3 }
 0x6bf   : > { %v1155_v44 = vpop.f32.mrb[40].mxu1  ;;  %v1296_v45 = vpop.f32.mrb[36].mxu0 }
 0x6c0   : > { %v1161_v46 = vpack.c.bf16 %v1155_v44, %v1155_v44  ;;  %v4672_v47 = vpop.f32.mrb[41].mxu1  ;;  %v4694_v48 = vpop.f32.mrb[37].mxu0 }
 0x6c1   : > { %v1158_v12 = vpop.f32.mrb[42].mxu1  ;;  %v1299_v49 = vpop.f32.mrb[38].mxu0 }
 0x6c2   : > { %v4673_v50 = vpop.f32.mrb[43].mxu1  ;;  %4677 = vmatmul.mubr.msk.bf16.vlgmr.msra.gmra.mrb[44].mxu1 %vm537_vm3, %v1161_v46  ;;  %v1318_v51 = vpack.c.bf16 %v1299_v49, %v1296_v45  ;;  %v4695_v52 = vpop.f32.mrb[39].mxu0 }
 0x6c3   : > { %4681 = vmatpush3.bf16.msra.mxu1 %v4937_v11  ;;  %4682 = vmatprep.mubr.msk.bf16.mxu1 %vm5212_vm1, %v5211_v3 }
 0x6c4   : > { %4704 = vmatprep.subr.bf16.mxu1 %v5211_v3 }
 0x6c7   : > { %v1304_v54 = vpop.f32.mrb[40].mxu0 }
 0x6c8   : > { %v4698_v56 = vpop.f32.mrb[41].mxu0 }
 0x6c9   : > { %v1307_v57 = vpop.f32.mrb[42].mxu0 }
 0x6ca   : > { %4683 = vmatmul.mubr.msk.bf16.vlgmr.msra.gmra.mrb[48].mxu1 %vm537_vm3, %v813_v55  ;;  %v1319_v58 = vpack.c.bf16 %v1307_v57, %v1304_v54  ;;  %v4699_v59 = vpop.f32.mrb[43].mxu0 }
 0x6cb   : > { %4705 = vmatpush3.bf16.msra.mxu1 %v4938_v53  ;;  %4706 = vmatprep.mubr.msk.bf16.mxu1 %vm5212_vm1, %v5211_v3 }
 0x6cc   : > { %4732 = vmatprep.subr.bf16.mxu1 %v5211_v3 }
 0x6cf   : > { %v1312_v60 = vpop.f32.mrb[44].mxu0 }
 0x6d0   : > { %v4702_v61 = vpop.f32.mrb[45].mxu0  ;;  %v1320_v28 = vpack.c.bf16 %v1312_v60, %v1312_v60 }
 0x6d1   : > { %v1315_v62 = vpop.f32.mrb[46].mxu0 }
 0x6d2   : > { %4707 = vmatmul.mubr.msk.bf16.vlgmr.msra.gmra.mrb[52].mxu1 %vm537_vm3, %v1318_v51  ;;  %v4703_v63 = vpop.f32.mrb[47].mxu0 }
 0x6d3   : > { %4710 = vmatprep.mubr.msk.bf16.mxu1 %vm5212_vm1, %v5211_v3 }
 0x6da   : > { %4711 = vmatmul.mubr.msk.bf16.gmra.mrb[56].mxu1 %vm537_vm3, %v1319_v58 }
 0x6db   : > { %4714 = vmatprep.mubr.msk.bf16.mxu1 %vm5212_vm1, %v5211_v3 }
 0x6e2   : > { %4715 = vmatmul.mubr.msk.bf16.gmra.mrb[60].mxu1 %vm537_vm3, %v1320_v28 }
 0x6e3   : > { %4738 = vmatprep.mubr.msk.bf16.mxu1 %vm5212_vm1, %v5211_v3 }
 0x795   : > { %v1207_v1 = vpop.f32.mrb[44].mxu1 }
 0x796   : > { %v4678_v2 = vpop.f32.mrb[45].mxu1 }
 0x797   : > { %v1210_v4 = vpop.f32.mrb[46].mxu1 }
 0x798   : > { %v4679_v5 = vpop.f32.mrb[47].mxu1 }
 0x79d   : > { %v1256_v6 = vpop.f32.mrb[48].mxu1 }
 0x79e   : > { %v5538_v7 = vadd.f32 %v1256_v6, %v1207_v1  ;;  %v4684_v8 = vpop.f32.mrb[49].mxu1 }
 0x79f   : > { %v1259_v9 = vpop.f32.mrb[50].mxu1 }
 0x7a0   : > { %v4685_v13 = vpop.f32.mrb[51].mxu1 }
 0x7a5   : > { %v1378_v15 = vpop.f32.mrb[52].mxu1 }
 0x7a6   : > { %v1379_v16 = vadd.f32 %v4287_v14, %v1378_v15  ;;  %v4708_v17 = vpop.f32.mrb[53].mxu1 }
 0x7a7   : > { %v1381_v18 = vpop.f32.mrb[54].mxu1 }
 0x7a8   : > { %v1382_v19 = vadd.f32 %v4287_v14, %v1381_v18  ;;  %v4709_v20 = vpop.f32.mrb[55].mxu1  ;;  %v1400_v21 = vmax.f32 %v1379_v16, 0.0 }
 0x7aa   : > { %v1401_v22 = vmax.f32 %v1382_v19, 0.0 }
 0x7ac   : > { %v1405_v23 = vpack.c.bf16 %v1401_v22, %v1400_v21 }
 0x7ad   : > { %v1386_v25 = vpop.f32.mrb[56].mxu1 }
 0x7ae   : > { %v1387_v26 = vadd.f32 %v4287_v14, %v1386_v25  ;;  %v4712_v27 = vpop.f32.mrb[57].mxu1  ;;  %4721 = vmatmul.mubr.msk.bf16.vlgmr.msra.gmra.mrb[48].mxu0 %vm537_vm3, %v1405_v23 }
 0x7af   : > { %v1389_v29 = vpop.f32.mrb[58].mxu1  ;;  %4724 = vmatprep.mubr.msk.bf16.mxu0 %vm5212_vm1, %v5211_v3 }
 0x7b0   : > { %v1390_v30 = vadd.f32 %v4287_v14, %v1389_v29  ;;  %v4713_v31 = vpop.f32.mrb[59].mxu1  ;;  %v1402_v32 = vmax.f32 %v1387_v26, 0.0 }
 0x7b2   : > { %v1403_v33 = vmax.f32 %v1390_v30, 0.0 }
 0x7b4   : > { %v1406_v34 = vpack.c.bf16 %v1403_v33, %v1402_v32 }
 0x7b5   : > { %v1394_v35 = vpop.f32.mrb[60].mxu1 }
 0x7b6   : > { %v1395_v36 = vadd.f32 %v4287_v14, %v1394_v35  ;;  %v4716_v37 = vpop.f32.mrb[61].mxu1  ;;  %4725 = vmatmul.mubr.msk.bf16.gmra.mrb[52].mxu0 %vm537_vm3, %v1406_v34 }
 0x7b7   : > { %v1397_v38 = vpop.f32.mrb[62].mxu1  ;;  %4728 = vmatprep.mubr.msk.bf16.mxu0 %vm5212_vm1, %v5211_v3 }
 0x7b8   : > { %v1404_v39 = vmax.f32 %v1395_v36, 0.0  ;;  %v4717_v40 = vpop.f32.mrb[63].mxu1 }
 0x7ba   : > { %v1407_v41 = vpack.c.bf16 %v1404_v39, %v1404_v39 }
 0x7be   : > { %4729 = vmatmul.mubr.msk.bf16.gmra.mrb[56].mxu0 %vm537_vm3, %v1407_v41 }
 0x7bf   : > { %4754 = vmatprep.mubr.msk.bf16.mxu0 %vm5212_vm1, %v5211_v3 }
 0x881   : > { %v1465_v43 = vpop.f32.mrb[48].mxu0 }
 0x882   : > { %v1466_v10 = vadd.f32 %v4294_v42, %v1465_v43  ;;  %v4722_v44 = vpop.f32.mrb[49].mxu0 }
 0x883   : > { %v1468_v11 = vpop.f32.mrb[50].mxu0 }
 0x884   : > { %v1487_v45 = vmax.f32 %v1466_v10, 0.0  ;;  %v1469_v46 = vadd.f32 %v4294_v42, %v1468_v11  ;;  %v4723_v47 = vpop.f32.mrb[51].mxu0 }
 0x886   : > { %v1488_v48 = vmax.f32 %v1469_v46, 0.0  ;;  %v1492_v12 = vsel %vm537_vm3, %v1487_v45, 0.0  ;;  %v4299_v46 = vld [vmem:[%s6651_s5 + $0xa] ss:$0 sm:$0xff] }
 0x888   : > { %v1493_v49 = vsel %vm537_vm3, %v1488_v48, 0.0 }
 0x889   : > { %v1494_v50 = vadd.f32 %v1493_v49, %v1492_v12  ;;  %v1473_v51 = vpop.f32.mrb[52].mxu0 }
 0x88a   : > { %v1474_v52 = vadd.f32 %v4294_v42, %v1473_v51  ;;  %v4726_v53 = vpop.f32.mrb[53].mxu0 }
 0x88b   : > { %v1476_v54 = vpop.f32.mrb[54].mxu0 }
 0x88c   : > { %v1489_v55 = vmax.f32 %v1474_v52, 0.0  ;;  %v1477_v56 = vadd.f32 %v4294_v42, %v1476_v54  ;;  %v4727_v57 = vpop.f32.mrb[55].mxu0 }
 0x88e   : > { %v1495_v58 = vsel %vm537_vm3, %v1489_v55, 0.0  ;;  %v1490_v59 = vmax.f32 %v1477_v56, 0.0 }
 0x88f   : > { %v1496_v60 = vadd.f32 %v1495_v58, %v1494_v50  ;;  %v4300_v50 = vld [vmem:[%s6651_s5 + $0xb] ss:$0 sm:$0xff] }
 0x890   : > { %v1497_v61 = vsel %vm537_vm3, %v1490_v59, 0.0 }
 0x891   : > { %v1498_v62 = vadd.f32 %v1497_v61, %v1496_v60  ;;  %v1481_v63 = vpop.f32.mrb[56].mxu0 }
 0x892   : > { %v1482_v28 = vadd.f32 %v4294_v42, %v1481_v63  ;;  %v4730_v0 = vpop.f32.mrb[57].mxu0 }
 0x893   : > { %v1484_v1 = vpop.f32.mrb[58].mxu0 }
 0x894   : > { %v1491_v2 = vmax.f32 %v1482_v28, 0.0  ;;  %v4731_v4 = vpop.f32.mrb[59].mxu0  ;;  %v5583_v1 = vld [vmem:[%s6646_s0] sm:$0xff]  }
 0x895   : > { %v4940_v4 = vld [vmem:[%s6656_s10 + $0x10] sm:$0xff]  }
 0x896   : > { %v1499_v5 = vsel %vm537_vm3, %v1491_v2, 0.0 }
 0x897   : > { %v1500_v6 = vadd.f32 %v1499_v5, %v1498_v62 }
 0x899   : > { %v1501_v8 = vrot.slane %v1500_v6, 4 }
 0x89b   : > { %v1502_v9 = vadd.f32 %v1501_v8, %v1500_v6  ;;  %v4941_v8 = vld [vmem:[%s6649_s3 + $0x18] sm:$0xff]  }
 0x89d   : > { %v1503_v13 = vrot.slane %v1502_v9, 2 }
 0x89f   : > { %v1504_v14 = vadd.f32 %v1503_v13, %v1502_v9 }
 0x8a1   : > { %v1505_v15 = vrot.slane %v1504_v14, 1 }
 0x8a3   : > { %v1506_v16 = vadd.f32 %v1505_v15, %v1504_v14 }
 0x8a5   : > { %v1507_v17 = vmul.f32 0.025, %v1506_v16 }
 0x8a7   : > { %v1508_v18 = vsub.f32 %v1487_v45, %v1507_v17  ;;  %v1509_v19 = vsub.f32 %v1488_v48, %v1507_v17  ;;  %v1510_v20 = vsub.f32 %v1489_v55, %v1507_v17  ;;  %v1511_v21 = vsub.f32 %v1490_v59, %v1507_v17 }
 0x8a8   : > { %v1512_v22 = vsub.f32 %v1491_v2, %v1507_v17  ;;  %v5594_v2 = vld [vmem:[%s6646_s0 + $0x8] sm:$0xff]  }
 0x8a9   : > { %v1513_v23 = vmul.f32 %v1508_v18, %v1508_v18  ;;  %v1514_v25 = vmul.f32 %v1509_v19, %v1509_v19  ;;  %v1515_v26 = vmul.f32 %v1510_v20, %v1510_v20  ;;  %v1516_v27 = vmul.f32 %v1511_v21, %v1511_v21 }
 0x8aa   : > { %v1517_v32 = vmul.f32 %v1512_v22, %v1512_v22 }
 0x8ab   : > { %v1518_v29 = vsel %vm537_vm3, %v1513_v23, 0.0  ;;  %v1519_v30 = vsel %vm537_vm3, %v1514_v25, 0.0  ;;  %v1521_v33 = vsel %vm537_vm3, %v1515_v26, 0.0  ;;  %v1523_v35 = vsel %vm537_vm3, %v1516_v27, 0.0 }
 0x8ac   : > { %v1520_v31 = vadd.f32 %v1519_v30, %v1518_v29  ;;  %v1525_v37 = vsel %vm537_vm3, %v1517_v32, 0.0  ;;  %v4942_v32 = vld [vmem:[%s6650_s4 + $0x18] sm:$0xff]  }
 0x8ae   : > { %v1522_v34 = vadd.f32 %v1521_v33, %v1520_v31 }
 0x8b0   : > { %v1524_v36 = vadd.f32 %v1523_v35, %v1522_v34 }
 0x8b2   : > { %v1526_v38 = vadd.f32 %v1525_v37, %v1524_v36 }
 0x8b4   : > { %v1527_v39 = vrot.slane %v1526_v38, 4 }
 0x8b6   : > { %v1528_v40 = vadd.f32 %v1527_v39, %v1526_v38  ;;  %v4309_v38 = vld [vmem:[%s6651_s5 + $0xc] ss:$0 sm:$0xff] }
 0x8b8   : > { %v1529_v41 = vrot.slane %v1528_v40, 2 }
 0x8ba   : > { %v1530_v42 = vadd.f32 %v1529_v41, %v1528_v40 }
 0x8bc   : > { %v1531_v43 = vrot.slane %v1530_v42, 1 }
 0x8be   : > { %v1532_v10 = vadd.f32 %v1531_v43, %v1530_v42 }
 0x8c0   : > { %v1533_v44 = vmul.f32 0.025, %v1532_v10 }
 0x8c2   : > { %v1534_v11 = vadd.f32 1e-05, %v1533_v44 }
 0x8c4   : > { %4955 = vrsqrt.f32 %v1534_v11 }
 0x8ce   : > { %v4956_v45 = vpop.eup %4955 }
 0x8cf   : > { %v1540_v47 = vmul.f32 %v4956_v45, %v1512_v22  ;;  %v1536_v48 = vmul.f32 %v4956_v45, %v1508_v18  ;;  %v1537_v12 = vmul.f32 %v4956_v45, %v1509_v19  ;;  %v1538_v49 = vmul.f32 %v4956_v45, %v1510_v20 }
 0x8d0   : > { %v1539_v51 = vmul.f32 %v4956_v45, %v1511_v21 }
 0x8d1   : > { %v1546_v52 = vmul.f32 %v4299_v46, %v1536_v48  ;;  %v1547_v53 = vmul.f32 %v4299_v46, %v1537_v12  ;;  %v1548_v54 = vmul.f32 %v4299_v46, %v1538_v49  ;;  %v1550_v55 = vmul.f32 %v4299_v46, %v1540_v47 }
 0x8d2   : > { %v1549_v56 = vmul.f32 %v4299_v46, %v1539_v51 }
 0x8d3   : > { %v1556_v57 = vadd.f32 %v4300_v50, %v1546_v52  ;;  %v1557_v58 = vadd.f32 %v4300_v50, %v1547_v53  ;;  %v1558_v59 = vadd.f32 %v4300_v50, %v1548_v54  ;;  %v1560_v63 = vadd.f32 %v4300_v50, %v1550_v55 }
 0x8d4   : > { %v1559_v60 = vadd.f32 %v4300_v50, %v1549_v56 }
 0x8d5   : > { %v1561_v61 = vpack.c.bf16 %v1557_v58, %v1556_v57  ;;  %v1563_v28 = vpack.c.bf16 %v1560_v63, %v1560_v63 }
 0x8d6   : > { %v1562_v62 = vpack.c.bf16 %v1559_v60, %v1558_v59  ;;  %v4316_v60 = vld [vmem:[%s6651_s5 + $0xd] ss:$0 sm:$0xff] }
 0x8d7   : > { %4733 = vmatpush3.bf16.msra.mxu1 %v1561_v61  ;;  %4749 = vmatpush3.bf16.msra.mxu0 %v1561_v61  ;;  %v1565_v0 = vsel %vm461_vm0, %v1563_v28, 0 }
 0x8d8   : > { %4734 = vmatprep.subr.bf16.mxu1 %v5211_v3  ;;  %4750 = vmatprep.subr.bf16.mxu0 %v5211_v3 }
 0x8db   : > { %4735 = vmatpush3.bf16.msra.mxu1 %v1562_v62  ;;  %4751 = vmatpush3.bf16.msra.mxu0 %v1562_v62 }
 0x8dc   : > { %4736 = vmatprep.subr.bf16.mxu1 %v5211_v3  ;;  %4752 = vmatprep.subr.bf16.mxu0 %v5211_v3 }
 0x8df   : > { %4737 = vmatpush3.bf16.msra.mxu1 %v1565_v0  ;;  %4753 = vmatpush3.bf16.msra.mxu0 %v1565_v0 }
 0x8e0   : > { %4742 = vmatprep.subr.bf16.mxu1 %v5211_v3  ;;  %4794 = vmatprep.subr.bf16.mxu0 %v5211_v3 }
 0x8e2   : > { %4739 = vmatmul.mubr.msk.bf16.vlgmr.msra.gmra.mrb[64].mxu1 %vm451_vm2, %v5412_v24  ;;  %4755 = vmatmul.mubr.msk.bf16.vlgmr.msra.gmra.mrb[60].mxu0 %vm451_vm2, %v5583_v1  ;;  %v5603_v24 = vld [vmem:[%s6646_s0 + $0x10] ss:$0 sps:$4 sm:$0xff]  }
 0x8e3   : > { %4758 = vmatprep.mubr.msk.bf16.mxu0 %vm5212_vm1, %v5211_v3  ;;  %4744 = vmatprep.mubr.msk.bf16.mxu1 %vm5212_vm1, %v5211_v3 }
 0x8e4   : > { %4743 = vmatpush3.bf16.msra.mxu1 %v4940_v4 }
 0x8e5   : > { %4766 = vmatprep.subr.bf16.mxu1 %v5211_v3 }
 0x8ea   : > { %4759 = vmatmul.mubr.msk.bf16.gmra.mrb[64].mxu0 %vm451_vm2, %v5594_v2 }
 0x8eb   : > { %4762 = vmatprep.mubr.msk.bf16.mxu0 %vm5212_vm1, %v5211_v3 }
 0x8f2   : > { %4763 = vmatmul.mubr.msk.bf16.gmra.mrb[68].mxu0 %vm451_vm2, %v5603_v24 }
 0x8f3   : > { %4800 = vmatprep.mubr.msk.bf16.mxu0 %vm5212_vm1, %v5211_v3 }
 0x9b5   : > { %v1601_v5 = vpop.f32.mrb[64].mxu1  ;;  %v1694_v6 = vpop.f32.mrb[60].mxu0 }
 0x9b6   : > { %v1607_v9 = vpack.c.bf16 %v1601_v5, %v1601_v5  ;;  %v4740_v13 = vpop.f32.mrb[65].mxu1  ;;  %v4756_v14 = vpop.f32.mrb[61].mxu0 }
 0x9b7   : > { %v1604_v15 = vpop.f32.mrb[66].mxu1  ;;  %v1697_v16 = vpop.f32.mrb[62].mxu0 }
 0x9b8   : > { %v4741_v17 = vpop.f32.mrb[67].mxu1  ;;  %4745 = vmatmul.mubr.msk.bf16.vlgmr.msra.gmra.mrb[68].mxu1 %vm537_vm3, %v1607_v9  ;;  %v1716_v18 = vpack.c.bf16 %v1697_v16, %v1694_v6  ;;  %v4757_v19 = vpop.f32.mrb[63].mxu0 }
 0x9b9   : > { %4767 = vmatpush3.bf16.msra.mxu1 %v4941_v8  ;;  %4768 = vmatprep.mubr.msk.bf16.mxu1 %vm5212_vm1, %v5211_v3 }
 0x9ba   : > { %4780 = vmatprep.subr.bf16.mxu1 %v5211_v3 }
 0x9bd   : > { %v1702_v20 = vpop.f32.mrb[64].mxu0 }
 0x9be   : > { %v4760_v21 = vpop.f32.mrb[65].mxu0 }
 0x9bf   : > { %v1705_v22 = vpop.f32.mrb[66].mxu0 }
 0x9c0   : > { %4769 = vmatmul.mubr.msk.bf16.vlgmr.msra.gmra.mrb[72].mxu1 %vm537_vm3, %v1716_v18  ;;  %v1717_v23 = vpack.c.bf16 %v1705_v22, %v1702_v20  ;;  %v4761_v25 = vpop.f32.mrb[67].mxu0 }
 0x9c1   : > { %4772 = vmatprep.mubr.msk.bf16.mxu1 %vm5212_vm1, %v5211_v3  ;;  %4781 = vmatpush3.bf16.msra.mxu1 %v4942_v32 }
 0x9c2   : > { %4828 = vmatprep.subr.bf16.mxu1 %v5211_v3 }
 0x9c5   : > { %v1710_v26 = vpop.f32.mrb[68].mxu0 }
 0x9c6   : > { %v4764_v27 = vpop.f32.mrb[69].mxu0  ;;  %v1718_v31 = vpack.c.bf16 %v1710_v26, %v1710_v26 }
 0x9c7   : > { %v1713_v29 = vpop.f32.mrb[70].mxu0 }
 0x9c8   : > { %4773 = vmatmul.mubr.msk.bf16.gmra.mrb[76].mxu1 %vm537_vm3, %v1717_v23  ;;  %v4765_v30 = vpop.f32.mrb[71].mxu0 }
 0x9c9   : > { %4776 = vmatprep.mubr.msk.bf16.mxu1 %vm5212_vm1, %v5211_v3 }
 0x9d0   : > { %4777 = vmatmul.mubr.msk.bf16.gmra.mrb[80].mxu1 %vm537_vm3, %v1718_v31 }
 0x9d1   : > { %4782 = vmatprep.mubr.msk.bf16.mxu1 %vm5212_vm1, %v5211_v3 }
 0xa8b   : > { %v1653_v33 = vpop.f32.mrb[68].mxu1 }
 0xa8c   : > { %v5634_v34 = vadd.f32 %v1653_v33, %v5538_v7  ;;  %v4746_v35 = vpop.f32.mrb[69].mxu1 }
 0xa8d   : > { %v1656_v36 = vpop.f32.mrb[70].mxu1 }
 0xa8e   : > { %v4747_v37 = vpop.f32.mrb[71].mxu1 }
 0xa93   : > { %v1776_v39 = vpop.f32.mrb[72].mxu1 }
 0xa94   : > { %v1777_v40 = vadd.f32 %v4309_v38, %v1776_v39  ;;  %v4770_v41 = vpop.f32.mrb[73].mxu1 }
 0xa95   : > { %v1779_v42 = vpop.f32.mrb[74].mxu1 }
 0xa96   : > { %v1780_v43 = vadd.f32 %v4309_v38, %v1779_v42  ;;  %v4771_v10 = vpop.f32.mrb[75].mxu1  ;;  %v1798_v44 = vmax.f32 %v1777_v40, 0.0 }
 0xa98   : > { %v1799_v11 = vmax.f32 %v1780_v43, 0.0 }
 0xa9a   : > { %v1803_v45 = vpack.c.bf16 %v1799_v11, %v1798_v44 }
 0xa9b   : > { %v1784_v46 = vpop.f32.mrb[76].mxu1 }
 0xa9c   : > { %v1785_v47 = vadd.f32 %v4309_v38, %v1784_v46  ;;  %v4774_v7 = vpop.f32.mrb[77].mxu1  ;;  %4783 = vmatmul.mubr.msk.bf16.vlgmr.msra.gmra.mrb[84].mxu1 %vm537_vm3, %v1803_v45 }
 0xa9d   : > { %v1787_v48 = vpop.f32.mrb[78].mxu1  ;;  %4786 = vmatprep.mubr.msk.bf16.mxu1 %vm5212_vm1, %v5211_v3 }
 0xa9e   : > { %v1788_v12 = vadd.f32 %v4309_v38, %v1787_v48  ;;  %v4775_v49 = vpop.f32.mrb[79].mxu1  ;;  %v1800_v50 = vmax.f32 %v1785_v47, 0.0 }
 0xaa0   : > { %v1801_v51 = vmax.f32 %v1788_v12, 0.0 }
 0xaa2   : > { %v1804_v52 = vpack.c.bf16 %v1801_v51, %v1800_v50 }
 0xaa3   : > { %v1792_v53 = vpop.f32.mrb[80].mxu1 }
 0xaa4   : > { %v1793_v54 = vadd.f32 %v4309_v38, %v1792_v53  ;;  %v4778_v55 = vpop.f32.mrb[81].mxu1  ;;  %4787 = vmatmul.mubr.msk.bf16.gmra.mrb[88].mxu1 %vm537_vm3, %v1804_v52 }
 0xaa5   : > { %v1795_v56 = vpop.f32.mrb[82].mxu1  ;;  %4790 = vmatprep.mubr.msk.bf16.mxu1 %vm5212_vm1, %v5211_v3 }
 0xaa6   : > { %v1802_v57 = vmax.f32 %v1793_v54, 0.0  ;;  %v4779_v58 = vpop.f32.mrb[83].mxu1 }
 0xaa8   : > { %v1805_v59 = vpack.c.bf16 %v1802_v57, %v1802_v57 }
 0xaac   : > { %4791 = vmatmul.mubr.msk.bf16.gmra.mrb[92].mxu1 %vm537_vm3, %v1805_v59 }
 0xaad   : > { %4830 = vmatprep.mubr.msk.bf16.mxu1 %vm5212_vm1, %v5211_v3 }
 0xb6f   : > { %v1863_v61 = vpop.f32.mrb[84].mxu1 }
 0xb70   : > { %v1864_v62 = vadd.f32 %v4316_v60, %v1863_v61  ;;  %v4784_v63 = vpop.f32.mrb[85].mxu1 }
 0xb71   : > { %v1866_v28 = vpop.f32.mrb[86].mxu1 }
 0xb72   : > { %v1885_v0 = vmax.f32 %v1864_v62, 0.0  ;;  %v1867_v4 = vadd.f32 %v4316_v60, %v1866_v28  ;;  %v4785_v5 = vpop.f32.mrb[87].mxu1 }
 0xb74   : > { %v1886_v6 = vmax.f32 %v1867_v4, 0.0  ;;  %v1890_v8 = vsel %vm537_vm3, %v1885_v0, 0.0 }
 0xb76   : > { %v1891_v9 = vsel %vm537_vm3, %v1886_v6, 0.0 }
 0xb77   : > { %v1892_v13 = vadd.f32 %v1891_v9, %v1890_v8  ;;  %v1871_v14 = vpop.f32.mrb[88].mxu1 }
 0xb78   : > { %v1872_v15 = vadd.f32 %v4316_v60, %v1871_v14  ;;  %v4788_v16 = vpop.f32.mrb[89].mxu1 }
 0xb79   : > { %v1874_v17 = vpop.f32.mrb[90].mxu1 }
 0xb7a   : > { %v1887_v18 = vmax.f32 %v1872_v15, 0.0  ;;  %v1875_v19 = vadd.f32 %v4316_v60, %v1874_v17  ;;  %v4789_v20 = vpop.f32.mrb[91].mxu1  ;;  %v4322_v15 = vld [vmem:[%s6651_s5 + $0xf] ss:$0 sm:$0xff] }
 0xb7c   : > { %v1893_v21 = vsel %vm537_vm3, %v1887_v18, 0.0  ;;  %v1888_v22 = vmax.f32 %v1875_v19, 0.0 }
 0xb7d   : > { %v1894_v23 = vadd.f32 %v1893_v21, %v1892_v13 }
 0xb7e   : > { %v1895_v25 = vsel %vm537_vm3, %v1888_v22, 0.0 }
 0xb7f   : > { %v1896_v26 = vadd.f32 %v1895_v25, %v1894_v23  ;;  %v1879_v27 = vpop.f32.mrb[92].mxu1 }
 0xb80   : > { %v1880_v29 = vadd.f32 %v4316_v60, %v1879_v27  ;;  %v4792_v30 = vpop.f32.mrb[93].mxu1 }
 0xb81   : > { %v1882_v31 = vpop.f32.mrb[94].mxu1 }
 0xb82   : > { %v1889_v32 = vmax.f32 %v1880_v29, 0.0  ;;  %v4793_v33 = vpop.f32.mrb[95].mxu1 }
 0xb83   : > { %v4943_v33 = vld [vmem:[%s6656_s10 + $0x18] sm:$0xff]  }
 0xb84   : > { %v1897_v35 = vsel %vm537_vm3, %v1889_v32, 0.0 }
 0xb85   : > { %v1898_v36 = vadd.f32 %v1897_v35, %v1896_v26  ;;  %v5677_v35 = vld [vmem:[%s6648_s2] sm:$0xf] }
 0xb87   : > { %v1899_v37 = vrot.slane %v1898_v36, 4 }
 0xb89   : > { %v1900_v38 = vadd.f32 %v1899_v37, %v1898_v36 }
 0xb8b   : > { %v1901_v39 = vrot.slane %v1900_v38, 2 }
 0xb8d   : > { %v1902_v40 = vadd.f32 %v1901_v39, %v1900_v38 }
 0xb8f   : > { %v1903_v41 = vrot.slane %v1902_v40, 1 }
 0xb91   : > { %v1904_v42 = vadd.f32 %v1903_v41, %v1902_v40  ;;  %v4944_v41 = vld [vmem:[%s6649_s3 + $0x20] sm:$0xff]  }
 0xb92   : > { %4829 = vmatpush3.bf16.msra.mxu1 %v4944_v41 }
 0xb93   : > { %v1905_v43 = vmul.f32 0.025, %v1904_v42  ;;  %4856 = vmatprep.subr.bf16.mxu1 %v5211_v3 }
 0xb95   : > { %v1906_v10 = vsub.f32 %v1885_v0, %v1905_v43  ;;  %v1907_v44 = vsub.f32 %v1886_v6, %v1905_v43  ;;  %v1908_v11 = vsub.f32 %v1887_v18, %v1905_v43  ;;  %v1909_v45 = vsub.f32 %v1888_v22, %v1905_v43  ;;  %v4321_v6 = vld [vmem:[%s6651_s5 + $0xe] ss:$0 sm:$0xff] }
 0xb96   : > { %v1910_v46 = vsub.f32 %v1889_v32, %v1905_v43 }
 0xb97   : > { %v1911_v47 = vmul.f32 %v1906_v10, %v1906_v10  ;;  %v1912_v7 = vmul.f32 %v1907_v44, %v1907_v44  ;;  %v1913_v48 = vmul.f32 %v1908_v11, %v1908_v11  ;;  %v1914_v12 = vmul.f32 %v1909_v45, %v1909_v45 }
 0xb98   : > { %v1915_v52 = vmul.f32 %v1910_v46, %v1910_v46 }
 0xb99   : > { %v1916_v49 = vsel %vm537_vm3, %v1911_v47, 0.0  ;;  %v1917_v50 = vsel %vm537_vm3, %v1912_v7, 0.0  ;;  %v1919_v53 = vsel %vm537_vm3, %v1913_v48, 0.0  ;;  %v1921_v55 = vsel %vm537_vm3, %v1914_v12, 0.0 }
 0xb9a   : > { %v1918_v51 = vadd.f32 %v1917_v50, %v1916_v49  ;;  %v1923_v57 = vsel %vm537_vm3, %v1915_v52, 0.0 }
 0xb9c   : > { %v1920_v54 = vadd.f32 %v1919_v53, %v1918_v51 }
 0xb9e   : > { %v1922_v56 = vadd.f32 %v1921_v55, %v1920_v54  ;;  %v4331_v55 = vld [vmem:[%s6651_s5 + $0x10] ss:$0 sm:$0xff] }
 0xba0   : > { %v1924_v58 = vadd.f32 %v1923_v57, %v1922_v56 }
 0xba2   : > { %v1925_v59 = vrot.slane %v1924_v58, 4 }
 0xba4   : > { %v1926_v60 = vadd.f32 %v1925_v59, %v1924_v58 }
 0xba6   : > { %v1927_v61 = vrot.slane %v1926_v60, 2 }
 0xba8   : > { %v1928_v62 = vadd.f32 %v1927_v61, %v1926_v60 }
 0xbaa   : > { %v1929_v63 = vrot.slane %v1928_v62, 1 }
 0xbac   : > { %v1930_v28 = vadd.f32 %v1929_v63, %v1928_v62 }
 0xbae   : > { %v1931_v0 = vmul.f32 0.025, %v1930_v28 }
 0xbb0   : > { %v1932_v4 = vadd.f32 1e-05, %v1931_v0 }
 0xbb2   : > { %4957 = vrsqrt.f32 %v1932_v4 }
 0xbbc   : > { %v4958_v5 = vpop.eup %4957 }
 0xbbd   : > { %v1938_v8 = vmul.f32 %v4958_v5, %v1910_v46  ;;  %v1934_v9 = vmul.f32 %v4958_v5, %v1906_v10  ;;  %v1935_v13 = vmul.f32 %v4958_v5, %v1907_v44  ;;  %v1936_v14 = vmul.f32 %v4958_v5, %v1908_v11 }
 0xbbe   : > { %v1937_v16 = vmul.f32 %v4958_v5, %v1909_v45 }
 0xbbf   : > { %v1944_v17 = vmul.f32 %v4321_v6, %v1934_v9  ;;  %v1945_v18 = vmul.f32 %v4321_v6, %v1935_v13  ;;  %v1946_v19 = vmul.f32 %v4321_v6, %v1936_v14  ;;  %v1948_v20 = vmul.f32 %v4321_v6, %v1938_v8 }
 0xbc0   : > { %v1947_v21 = vmul.f32 %v4321_v6, %v1937_v16 }
 0xbc1   : > { %v1954_v22 = vadd.f32 %v4322_v15, %v1944_v17  ;;  %v1955_v23 = vadd.f32 %v4322_v15, %v1945_v18  ;;  %v1956_v25 = vadd.f32 %v4322_v15, %v1946_v19  ;;  %v1958_v30 = vadd.f32 %v4322_v15, %v1948_v20 }
 0xbc2   : > { %v1957_v26 = vadd.f32 %v4322_v15, %v1947_v21 }
 0xbc3   : > { %v1959_v27 = vpack.c.bf16 %v1955_v23, %v1954_v22  ;;  %v1961_v31 = vpack.c.bf16 %v1958_v30, %v1958_v30  ;;  %v4338_v23 = vld [vmem:[%s6651_s5 + $0x11] ss:$0 sm:$0xff] }
 0xbc4   : > { %v1960_v29 = vpack.c.bf16 %v1957_v26, %v1956_v25 }
 0xbc5   : > { %4795 = vmatpush3.bf16.msra.mxu0 %v1959_v27  ;;  %v1963_v32 = vsel %vm461_vm0, %v1961_v31, 0 }
 0xbc6   : > { %4796 = vmatprep.subr.bf16.mxu0 %v5211_v3 }
 0xbc9   : > { %4797 = vmatpush3.bf16.msra.mxu0 %v1960_v29 }
 0xbca   : > { %4798 = vmatprep.subr.bf16.mxu0 %v5211_v3 }
 0xbcd   : > { %4799 = vmatpush3.bf16.msra.mxu0 %v1963_v32 }
 0xbce   : > { %4804 = vmatprep.subr.bf16.mxu0 %v5211_v3 }
 0xbd0   : > { %4801 = vmatmul.mubr.msk.bf16.vlgmr.msra.gmra.mrb[72].mxu0 %vm451_vm2, %v5677_v35 }
 0xbd1   : > { %4805 = vmatpush3.bf16.msra.mxu0 %v4943_v33  ;;  %4806 = vmatprep.mubr.msk.bf16.mxu0 %vm5212_vm1, %v5211_v3 }
 0xbd2   : > { %4810 = vmatprep.subr.bf16.mxu0 %v5211_v3 }
 0xca3   : > { %v1999_v36 = vpop.f32.mrb[72].mxu0 }
 0xca4   : > { %v2005_v37 = vpack.c.bf16 %v1999_v36, %v1999_v36  ;;  %v4802_v38 = vpop.f32.mrb[73].mxu0 }
 0xca5   : > { %v2002_v39 = vpop.f32.mrb[74].mxu0 }
 0xca6   : > { %v4803_v40 = vpop.f32.mrb[75].mxu0  ;;  %4807 = vmatmul.mubr.msk.bf16.vlgmr.msra.gmra.mrb[76].mxu0 %vm537_vm3, %v2005_v37 }
 0xca7   : > { %4811 = vmatpush3.bf16.msra.mxu0 %v1959_v27  ;;  %4816 = vmatprep.mubr.msk.bf16.mxu0 %vm5212_vm1, %v5211_v3 }
 0xca8   : > { %4812 = vmatprep.subr.bf16.mxu0 %v5211_v3 }
 0xcab   : > { %4813 = vmatpush3.bf16.msra.mxu0 %v1960_v29 }
 0xcac   : > { %4814 = vmatprep.subr.bf16.mxu0 %v5211_v3 }
 0xcaf   : > { %4815 = vmatpush3.bf16.msra.mxu0 %v1963_v32 }
 0xcb0   : > { %4842 = vmatprep.subr.bf16.mxu0 %v5211_v3 }
 0xcb2   : > { %4817 = vmatmul.mubr.msk.bf16.vlgmr.msra.gmra.mrb[80].mxu0 %vm451_vm2, %v5583_v1  ;;  %v4945_v1 = vld [vmem:[%s6650_s4 + $0x20] sm:$0xff]  }
 0xcb3   : > { %4820 = vmatprep.mubr.msk.bf16.mxu0 %vm5212_vm1, %v5211_v3  ;;  %4843 = vmatpush3.bf16.msra.mxu0 %v4945_v1 }
 0xcb4   : > { %4872 = vmatprep.subr.bf16.mxu0 %v5211_v3 }
 0xcba   : > { %4821 = vmatmul.mubr.msk.bf16.gmra.mrb[84].mxu0 %vm451_vm2, %v5594_v2 }
 0xcbb   : > { %4824 = vmatprep.mubr.msk.bf16.mxu0 %vm5212_vm1, %v5211_v3 }
 0xcc2   : > { %4825 = vmatmul.mubr.msk.bf16.gmra.mrb[88].mxu0 %vm451_vm2, %v5603_v24 }
 0xcc3   : > { %4844 = vmatprep.mubr.msk.bf16.mxu0 %vm5212_vm1, %v5211_v3 }
 0xd79   : > { %v2051_v2 = vpop.f32.mrb[76].mxu0 }
 0xd7a   : > { %v5711_v24 = vadd.f32 %v2051_v2, %v5634_v34  ;;  %v4808_v42 = vpop.f32.mrb[77].mxu0 }
 0xd7b   : > { %v2054_v43 = vpop.f32.mrb[78].mxu0 }
 0xd7c   : > { %v4809_v10 = vpop.f32.mrb[79].mxu0 }
 0xd85   : > { %v2092_v44 = vpop.f32.mrb[80].mxu0 }
 0xd86   : > { %v4818_v11 = vpop.f32.mrb[81].mxu0 }
 0xd87   : > { %v2095_v45 = vpop.f32.mrb[82].mxu0 }
 0xd88   : > { %v2114_v46 = vpack.c.bf16 %v2095_v45, %v2092_v44  ;;  %v4819_v47 = vpop.f32.mrb[83].mxu0 }
 0xd8a   : > { %4831 = vmatmul.mubr.msk.bf16.vlgmr.msra.gmra.mrb[96].mxu1 %vm537_vm3, %v2114_v46 }
 0xd8b   : > { %4834 = vmatprep.mubr.msk.bf16.mxu1 %vm5212_vm1, %v5211_v3 }
 0xd8d   : > { %v2100_v7 = vpop.f32.mrb[84].mxu0 }
 0xd8e   : > { %v4822_v48 = vpop.f32.mrb[85].mxu0 }
 0xd8f   : > { %v2103_v12 = vpop.f32.mrb[86].mxu0 }
 0xd90   : > { %v2115_v49 = vpack.c.bf16 %v2103_v12, %v2100_v7  ;;  %v4823_v50 = vpop.f32.mrb[87].mxu0 }
 0xd92   : > { %4835 = vmatmul.mubr.msk.bf16.gmra.mrb[100].mxu1 %vm537_vm3, %v2115_v49 }
 0xd93   : > { %4838 = vmatprep.mubr.msk.bf16.mxu1 %vm5212_vm1, %v5211_v3 }
 0xd95   : > { %v2108_v34 = vpop.f32.mrb[88].mxu0 }
 0xd96   : > { %v2116_v51 = vpack.c.bf16 %v2108_v34, %v2108_v34  ;;  %v4826_v52 = vpop.f32.mrb[89].mxu0 }
 0xd97   : > { %v2111_v53 = vpop.f32.mrb[90].mxu0 }
 0xd98   : > { %v4827_v54 = vpop.f32.mrb[91].mxu0 }
 0xd9a   : > { %4839 = vmatmul.mubr.msk.bf16.gmra.mrb[104].mxu1 %vm537_vm3, %v2116_v51 }
 0xd9b   : > { %4862 = vmatprep.mubr.msk.bf16.mxu1 %vm5212_vm1, %v5211_v3 }
 0xe5d   : > { %v2174_v56 = vpop.f32.mrb[96].mxu1 }
 0xe5e   : > { %v2175_v57 = vadd.f32 %v4331_v55, %v2174_v56  ;;  %v4832_v58 = vpop.f32.mrb[97].mxu1 }
 0xe5f   : > { %v2177_v59 = vpop.f32.mrb[98].mxu1 }
 0xe60   : > { %v2178_v60 = vadd.f32 %v4331_v55, %v2177_v59  ;;  %v4833_v61 = vpop.f32.mrb[99].mxu1  ;;  %v2196_v62 = vmax.f32 %v2175_v57, 0.0 }
 0xe62   : > { %v2197_v63 = vmax.f32 %v2178_v60, 0.0 }
 0xe64   : > { %v2201_v28 = vpack.c.bf16 %v2197_v63, %v2196_v62 }
 0xe65   : > { %v2182_v0 = vpop.f32.mrb[100].mxu1 }
 0xe66   : > { %v2183_v4 = vadd.f32 %v4331_v55, %v2182_v0  ;;  %v4836_v5 = vpop.f32.mrb[101].mxu1  ;;  %4845 = vmatmul.mubr.msk.bf16.vlgmr.msra.gmra.mrb[92].mxu0 %vm537_vm3, %v2201_v28 }
 0xe67   : > { %v2185_v6 = vpop.f32.mrb[102].mxu1  ;;  %4848 = vmatprep.mubr.msk.bf16.mxu0 %vm5212_vm1, %v5211_v3 }
 0xe68   : > { %v2186_v8 = vadd.f32 %v4331_v55, %v2185_v6  ;;  %v4837_v9 = vpop.f32.mrb[103].mxu1  ;;  %v2198_v13 = vmax.f32 %v2183_v4, 0.0 }
 0xe6a   : > { %v2199_v14 = vmax.f32 %v2186_v8, 0.0 }
 0xe6c   : > { %v2202_v15 = vpack.c.bf16 %v2199_v14, %v2198_v13 }
 0xe6d   : > { %v2190_v16 = vpop.f32.mrb[104].mxu1 }
 0xe6e   : > { %v2191_v17 = vadd.f32 %v4331_v55, %v2190_v16  ;;  %v4840_v18 = vpop.f32.mrb[105].mxu1  ;;  %4849 = vmatmul.mubr.msk.bf16.gmra.mrb[96].mxu0 %vm537_vm3, %v2202_v15 }
 0xe6f   : > { %v2193_v19 = vpop.f32.mrb[106].mxu1  ;;  %4852 = vmatprep.mubr.msk.bf16.mxu0 %vm5212_vm1, %v5211_v3 }
 0xe70   : > { %v2200_v20 = vmax.f32 %v2191_v17, 0.0  ;;  %v4841_v21 = vpop.f32.mrb[107].mxu1 }
 0xe72   : > { %v2203_v22 = vpack.c.bf16 %v2200_v20, %v2200_v20 }
 0xe76   : > { %4853 = vmatmul.mubr.msk.bf16.gmra.mrb[100].mxu0 %vm537_vm3, %v2203_v22 }
 0xe77   : > { %4880 = vmatprep.mubr.msk.bf16.mxu0 %vm5212_vm1, %v5211_v3 }
 0xf39   : > { %v2261_v25 = vpop.f32.mrb[92].mxu0 }
 0xf3a   : > { %v2262_v26 = vadd.f32 %v4338_v23, %v2261_v25  ;;  %v4846_v27 = vpop.f32.mrb[93].mxu0 }
 0xf3b   : > { %v2264_v29 = vpop.f32.mrb[94].mxu0 }
 0xf3c   : > { %v2283_v30 = vmax.f32 %v2262_v26, 0.0  ;;  %v2265_v31 = vadd.f32 %v4338_v23, %v2264_v29  ;;  %v4847_v32 = vpop.f32.mrb[95].mxu0 }
 0xf3e   : > { %v2284_v33 = vmax.f32 %v2265_v31, 0.0  ;;  %v2288_v36 = vsel %vm537_vm3, %v2283_v30, 0.0  ;;  %v4343_v31 = vld [vmem:[%s6651_s5 + $0x12] ss:$0 sm:$0xff] }
 0xf40   : > { %v2289_v37 = vsel %vm537_vm3, %v2284_v33, 0.0 }
 0xf41   : > { %v2290_v38 = vadd.f32 %v2289_v37, %v2288_v36  ;;  %v2269_v39 = vpop.f32.mrb[96].mxu0 }
 0xf42   : > { %v2270_v40 = vadd.f32 %v4338_v23, %v2269_v39  ;;  %v4850_v41 = vpop.f32.mrb[97].mxu0 }
 0xf43   : > { %v2272_v1 = vpop.f32.mrb[98].mxu0 }
 0xf44   : > { %v2285_v2 = vmax.f32 %v2270_v40, 0.0  ;;  %v2273_v42 = vadd.f32 %v4338_v23, %v2272_v1  ;;  %v4851_v43 = vpop.f32.mrb[99].mxu0 }
 0xf46   : > { %v2291_v10 = vsel %vm537_vm3, %v2285_v2, 0.0  ;;  %v2286_v44 = vmax.f32 %v2273_v42, 0.0 }
 0xf47   : > { %v2292_v11 = vadd.f32 %v2291_v10, %v2290_v38  ;;  %v4344_v38 = vld [vmem:[%s6651_s5 + $0x13] ss:$0 sm:$0xff] }
 0xf48   : > { %v2293_v45 = vsel %vm537_vm3, %v2286_v44, 0.0 }
 0xf49   : > { %v2294_v46 = vadd.f32 %v2293_v45, %v2292_v11  ;;  %v2277_v47 = vpop.f32.mrb[100].mxu0 }
 0xf4a   : > { %v2278_v7 = vadd.f32 %v4338_v23, %v2277_v47  ;;  %v4854_v48 = vpop.f32.mrb[101].mxu0 }
 0xf4b   : > { %v2280_v12 = vpop.f32.mrb[102].mxu0 }
 0xf4c   : > { %v2287_v49 = vmax.f32 %v2278_v7, 0.0  ;;  %v4855_v50 = vpop.f32.mrb[103].mxu0  ;;  %v4946_v12 = vld [vmem:[%s6656_s10 + $0x20] sm:$0xff]  }
 0xf4e   : > { %v2295_v34 = vsel %vm537_vm3, %v2287_v49, 0.0 }
 0xf4f   : > { %v2296_v51 = vadd.f32 %v2295_v34, %v2294_v46 }
 0xf51   : > { %v2297_v52 = vrot.slane %v2296_v51, 4 }
 0xf53   : > { %v2298_v53 = vadd.f32 %v2297_v52, %v2296_v51 }
 0xf55   : > { %v2299_v54 = vrot.slane %v2298_v53, 2 }
 0xf57   : > { %v2300_v55 = vadd.f32 %v2299_v54, %v2298_v53  ;;  %v4947_v53 = vld [vmem:[%s6658_s12] sm:$0xff]   ;;  %v4949_v54 = vld [vmem:[%s6658_s12 + $0x10] sm:$0xff]  }
 0xf58   : > { %4873 = vmatpush3.bf16.msra.mxu0 %v4947_v53 }
 0xf59   : > { %v2301_v56 = vrot.slane %v2300_v55, 1  ;;  %4874 = vmatprep.subr.bf16.mxu0 %v5211_v3 }
 0xf5b   : > { %v2302_v57 = vadd.f32 %v2301_v56, %v2300_v55  ;;  %v4950_v55 = vld [vmem:[%s6658_s12 + $0x18] sm:$0xff]  }
 0xf5d   : > { %v2303_v58 = vmul.f32 0.025, %v2302_v57  ;;  %v4348_v57 = vld [vmem:[%s6657_s11] ss:$0 sm:$0xff] }
 0xf5f   : > { %v2304_v59 = vsub.f32 %v2283_v30, %v2303_v58  ;;  %v2305_v60 = vsub.f32 %v2284_v33, %v2303_v58  ;;  %v2306_v61 = vsub.f32 %v2285_v2, %v2303_v58  ;;  %v2307_v62 = vsub.f32 %v2286_v44, %v2303_v58 }
 0xf60   : > { %v2308_v63 = vsub.f32 %v2287_v49, %v2303_v58 }
 0xf61   : > { %v2309_v28 = vmul.f32 %v2304_v59, %v2304_v59  ;;  %v2310_v0 = vmul.f32 %v2305_v60, %v2305_v60  ;;  %v2311_v4 = vmul.f32 %v2306_v61, %v2306_v61  ;;  %v2312_v5 = vmul.f32 %v2307_v62, %v2307_v62 }
 0xf62   : > { %v2313_v13 = vmul.f32 %v2308_v63, %v2308_v63 }
 0xf63   : > { %v2314_v6 = vsel %vm537_vm3, %v2309_v28, 0.0  ;;  %v2315_v8 = vsel %vm537_vm3, %v2310_v0, 0.0  ;;  %v2317_v14 = vsel %vm537_vm3, %v2311_v4, 0.0  ;;  %v2319_v16 = vsel %vm537_vm3, %v2312_v5, 0.0 }
 0xf64   : > { %v2316_v9 = vadd.f32 %v2315_v8, %v2314_v6  ;;  %v2321_v18 = vsel %vm537_vm3, %v2313_v13, 0.0 }
 0xf66   : > { %v2318_v15 = vadd.f32 %v2317_v14, %v2316_v9 }
 0xf68   : > { %v2320_v17 = vadd.f32 %v2319_v16, %v2318_v15 }
 0xf6a   : > { %v2322_v19 = vadd.f32 %v2321_v18, %v2320_v17 }
 0xf6c   : > { %v2323_v20 = vrot.slane %v2322_v19, 4 }
 0xf6e   : > { %v2324_v21 = vadd.f32 %v2323_v20, %v2322_v19 }
 0xf70   : > { %v2325_v22 = vrot.slane %v2324_v21, 2 }
 0xf72   : > { %v2326_v23 = vadd.f32 %v2325_v22, %v2324_v21 }
 0xf74   : > { %v2327_v25 = vrot.slane %v2326_v23, 1 }
 0xf76   : > { %v2328_v26 = vadd.f32 %v2327_v25, %v2326_v23  ;;  %v4349_v23 = vld [vmem:[%s6657_s11 + $0x1] ss:$0 sm:$0xff] }
 0xf78   : > { %v2329_v27 = vmul.f32 0.025, %v2328_v26  ;;  %v4350_v26 = vld [vmem:[%s6657_s11 + $0x2] ss:$0 sm:$0xff] }
 0xf7a   : > { %v2330_v29 = vadd.f32 1e-05, %v2329_v27 }
 0xf7c   : > { %4959 = vrsqrt.f32 %v2330_v29 }
 0xf86   : > { %v4960_v30 = vpop.eup %4959 }
 0xf87   : > { %v2336_v32 = vmul.f32 %v4960_v30, %v2308_v63  ;;  %v2332_v33 = vmul.f32 %v4960_v30, %v2304_v59  ;;  %v2333_v36 = vmul.f32 %v4960_v30, %v2305_v60  ;;  %v2334_v37 = vmul.f32 %v4960_v30, %v2306_v61 }
 0xf88   : > { %v2335_v39 = vmul.f32 %v4960_v30, %v2307_v62 }
 0xf89   : > { %v2342_v40 = vmul.f32 %v4343_v31, %v2332_v33  ;;  %v2343_v41 = vmul.f32 %v4343_v31, %v2333_v36  ;;  %v2344_v1 = vmul.f32 %v4343_v31, %v2334_v37  ;;  %v2346_v2 = vmul.f32 %v4343_v31, %v2336_v32 }
 0xf8a   : > { %v2345_v42 = vmul.f32 %v4343_v31, %v2335_v39 }
 0xf8b   : > { %v2352_v43 = vadd.f32 %v4344_v38, %v2342_v40  ;;  %v2353_v10 = vadd.f32 %v4344_v38, %v2343_v41  ;;  %v2354_v44 = vadd.f32 %v4344_v38, %v2344_v1  ;;  %v2356_v47 = vadd.f32 %v4344_v38, %v2346_v2 }
 0xf8c   : > { %v2355_v11 = vadd.f32 %v4344_v38, %v2345_v42 }
 0xf8d   : > { %v2357_v45 = vpack.c.bf16 %v2353_v10, %v2352_v43  ;;  %v2359_v7 = vpack.c.bf16 %v2356_v47, %v2356_v47 }
 0xf8e   : > { %v2358_v46 = vpack.c.bf16 %v2355_v11, %v2354_v44 }
 0xf8f   : > { %4857 = vmatpush3.bf16.msra.mxu1 %v2357_v45  ;;  %v2361_v48 = vsel %vm461_vm0, %v2359_v7, 0 }
 0xf90   : > { %4858 = vmatprep.subr.bf16.mxu1 %v5211_v3 }
 0xf93   : > { %4859 = vmatpush3.bf16.msra.mxu1 %v2358_v46 }
 0xf94   : > { %4860 = vmatprep.subr.bf16.mxu1 %v5211_v3 }
 0xf97   : > { %4861 = vmatpush3.bf16.msra.mxu1 %v2361_v48 }
 0xf98   : > { %4866 = vmatprep.subr.bf16.mxu1 %v5211_v3 }
 0xf9a   : > { %4863 = vmatmul.mubr.msk.bf16.vlgmr.msra.gmra.mrb[108].mxu1 %vm451_vm2, %v5677_v35  ;;  %v4948_v35 = vld [vmem:[%s6658_s12 + $0x8] sm:$0xff]  }
 0xf9b   : > { %4868 = vmatprep.mubr.msk.bf16.mxu1 %vm5212_vm1, %v5211_v3  ;;  %4867 = vmatpush3.bf16.msra.mxu1 %v4946_v12 }
 0xf9c   : > { %4875 = vmatpush3.bf16.msra.mxu0 %v4948_v35 }
 0xf9d   : > { %4876 = vmatprep.subr.bf16.mxu0 %v5211_v3 }
 0xfa0   : > { %4877 = vmatpush3.bf16.msra.mxu0 %v4949_v54 }
 0xfa1   : > { %4878 = vmatprep.subr.bf16.mxu0 %v5211_v3 }
 0xfa4   : > { %4879 = vmatpush3.bf16.msra.mxu0 %v4950_v55 }
0x106d   : > { %v2397_v49 = vpop.f32.mrb[108].mxu1 }
0x106e   : > { %v2403_v50 = vpack.c.bf16 %v2397_v49, %v2397_v49  ;;  %v4864_v34 = vpop.f32.mrb[109].mxu1 }
0x106f   : > { %v2400_v51 = vpop.f32.mrb[110].mxu1 }
0x1070   : > { %4869 = vmatmul.mubr.msk.bf16.vlgmr.msra.gmra.mrb[112].mxu1 %vm537_vm3, %v2403_v50  ;;  %v4865_v52 = vpop.f32.mrb[111].mxu1 }
0x1143   : > { %v2449_v56 = vpop.f32.mrb[112].mxu1 }
0x1144   : > { %v2455_v58 = vadd.f32 %v2449_v56, %v5711_v24  ;;  %v4870_v59 = vpop.f32.mrb[113].mxu1 }
0x1145   : > { %v2452_v60 = vpop.f32.mrb[114].mxu1 }
0x1146   : > { %v2463_v61 = vadd.f32 %v4348_v57, %v2455_v58  ;;  %v4871_v62 = vpop.f32.mrb[115].mxu1 }
0x1148   : > { %v2465_v63 = vsel %vm2464_vm4, %v2463_v61, 0.0 }
0x1149   : > { %v2466_v3 = vrot.slane %v2465_v63, 4 }
0x114b   : > { %v2467_v28 = vadd.f32 %v2466_v3, %v2465_v63 }
0x114d   : > { %v2468_v0 = vrot.slane %v2467_v28, 2 }
0x114f   : > { %v2469_v4 = vadd.f32 %v2468_v0, %v2467_v28 }
0x1151   : > { %v2470_v5 = vrot.slane %v2469_v4, 1 }
0x1153   : > { %v2471_v6 = vadd.f32 %v2470_v5, %v2469_v4 }
0x1155   : > { %v2473_v8 = vmul.f32 0.125, %v2471_v6 }
0x1157   : > { %v2474_v9 = vsub.f32 %v2463_v61, %v2473_v8 }
0x1159   : > { %v2475_v13 = vmul.f32 %v2474_v9, %v2474_v9 }
0x115b   : > { %v2476_v14 = vsel %vm2464_vm4, %v2475_v13, 0.0 }
0x115c   : > { %v2477_v15 = vrot.slane %v2476_v14, 4 }
0x115e   : > { %v2478_v24 = vadd.f32 %v2477_v15, %v2476_v14 }
0x1160   : > { %v2479_v16 = vrot.slane %v2478_v24, 2 }
0x1162   : > { %v2480_v17 = vadd.f32 %v2479_v16, %v2478_v24 }
0x1164   : > { %v2481_v18 = vrot.slane %v2480_v17, 1 }
0x1166   : > { %v2482_v19 = vadd.f32 %v2481_v18, %v2480_v17 }
0x1168   : > { %v2483_v20 = vmul.f32 0.125, %v2482_v19 }
0x116a   : > { %v2484_v21 = vadd.f32 1e-05, %v2483_v20 }
0x116c   : > { %4961 = vrsqrt.f32 %v2484_v21 }
0x1176   : > { %v4962_v22 = vpop.eup %4961 }
0x1177   : > { %v2486_v25 = vmul.f32 %v4962_v22, %v2474_v9 }
0x1179   : > { %v2491_v27 = vmul.f32 %v4349_v23, %v2486_v25 }
0x117b   : > { %v2496_v29 = vadd.f32 %v4350_v26, %v2491_v27 }
0x117d   : > { %v2497_v30 = vmax.f32 %v2496_v29, 0.0 }
0x117f   : > { %v2498_v31 = vpack.c.bf16 %v2497_v30, %v2497_v30 }
0x1181   : > { %4881 = vmatmul.mubr.msk.bf16.vlgmr.msra.gmra.mrb[104].mxu0 %vm2464_vm4, %v2498_v31 }
0x1254   : > { %v2568_v32 = vpop.f32.mrb[104].mxu0 }
0x1255   : > { %v4882_v33 = vpop.f32.mrb[105].mxu0  ;;  %v2574_v36 = vmul.f32 %v2568_v32, %v2568_v32 }
0x1256   : > { %v2571_v37 = vpop.f32.mrb[106].mxu0 }
0x1257   : > { %v4883_v38 = vpop.f32.mrb[107].mxu0  ;;  %v2576_v39 = vsel %vm2575_vm5, %v2574_v36, 0.0 }
0x1258   : > { %2577 = vadd.xlane.f32.xlu0 %v2576_v39 }
0x12e5   : > { %v2578_v40 = vpop.xlane.xlu0 %2577 }
0x12e6   : > { %4963 = vrsqrt.f32 %v2578_v40  ;;  %vm2581_vm6 = vcmp.eq.f32.partialorder %v2578_v40, inf  ;;  %v2584_v2 = vand.u32 2147483648, %v2578_v40  ;;  %vm2583_vm7 = vcmp.eq.f32.partialorder %v2578_v40, 0.0 }
0x12f0   : > { %v4964_v41 = vpop.eup %4963 }
0x12f1   : > { %v2580_v1 = vmul.f32 %v4964_v41, %v2578_v40 }
0x12f3   : > { %v2582_v42 = vsel %vm2581_vm6, %v2578_v40, %v2580_v1 }
0x12f4   : > { %v2585_v43 = vsel %vm2583_vm7, %v2584_v2, %v2582_v42 }
0x12f5   : > { %v2586_v10 = vmax.f32 %v2585_v43, 1e-12 }
0x12f7   : > { %4965 = vrcp.f32 %v2586_v10 }
0x1301   : > { %v4966_v44 = vpop.eup %4965 }
0x1302   : > { %v2588_v11 = vmul.f32 %v4966_v44, %v2568_v32 }
0x1304   : > { %2589 = vst.msk [vmem:[%s5301_s14] sm:$0xff] %vm2575_vm5, %v2588_v11 }
0x1305 PF: > { %p4356_p5 = scmp.ne.s32.totalorder %s5292_s26, 1 }
0x1307   : > { %2593 = sbr.rel (%p4356_p5) target bundleno = 7655 (0x1de7), region = 80 }
0x130e   : > { %v4971_v45 = vld [vmem:[%s6653_s7 + $0x4] ss:$16 sps:$4 sm:$0xff]   ;;  %v4973_v46 = vld [vmem:[%s6653_s7 + $0xc] ss:$16 sps:$4 sm:$0xff]   ;;  %v6660_v47 = vmov 0   ;;  %vm2652_vm8 = vcmask 130048   ;;  %v2612_v32 = vlaneseq }
0x130f   : > { %2697 = vmatprep.mubr.bf16.mxu0 %v6660_v47  ;;  %2770 = vmatprep.mubr.bf16.mxu1 %v6660_v47  ;;  %v4975_v7 = vld [vmem:[%s6653_s7] ss:$16 sps:$4 sm:$0xff]   ;;  %v4976_v48 = vld [vmem:[%s6653_s7 + $0x8] ss:$16 sps:$4 sm:$0xff]   ;;  %v5820_v34 = vld [vmem:[%s6654_s8 + $0x4] ss:$16 sps:$4 sm:$0xff]  }
0x1310   : > { %2665 = vmatprep.subr.bf16.mxu0 %v4971_v45  ;;  %v2594_v12 = vld [vmem:[%s6652_s6] sm:$0xff]  ;;  %2738 = vmatprep.subr.bf16.mxu1 %v4973_v46  ;;  %v2595_v49 = vld [vmem:[%s6652_s6 + $0x8] sm:$0xff]  ;;  %v2596_v57 = vld [vmem:[%s6652_s6 + $0x10] sm:$0xff]  ;;  %v2613_v33 = vshrl.u32 %v2612_v32, 7  ;;  %vm5215_vm9 = vmmov 0   ;;  %vm4066_vm10 = vcmask 523264  }
0x1311   : > { %2666 = vmatpush1.bf16.msra.mxu0 %v4975_v7  ;;  %2739 = vmatpush1.bf16.msra.mxu1 %v4976_v48  ;;  %v2602_v50 = vpack.c.bf16 %v2595_v49, %v2594_v12  ;;  %v5825_v51 = vld [vmem:[%s6654_s8 + $0xc] ss:$16 sps:$4 sm:$0xff]   ;;  %v5830_v52 = vld [vmem:[%s6654_s8] ss:$16 sps:$4 sm:$0xff]   ;;  %v5835_v53 = vld [vmem:[%s6654_s8 + $0x8] ss:$16 sps:$4 sm:$0xff]  }
0x1312   : > { %3039 = vmatprep.subr.bf16.mxu0 %v5820_v34  ;;  %v5841_v35 = vld [vmem:[%s6654_s8 + $0x24] ss:$16 sps:$4 sm:$0xff]   ;;  %v5848_v54 = vld [vmem:[%s6654_s8 + $0x2c] ss:$16 sps:$4 sm:$0xff]   ;;  %3080 = vmatprep.subr.bf16.mxu1 %v5825_v51  ;;  %v5855_v55 = vld [vmem:[%s6654_s8 + $0x20] ss:$16 sps:$4 sm:$0xff]  }
0x1313   : > { %v5860_v56 = vld [vmem:[%s6654_s8 + $0x28] ss:$16 sps:$4 sm:$0xff]   ;;  %v5875_v59 = vld [vmem:[%s6654_s8 + $0x44] ss:$16 sps:$4 sm:$0xff]   ;;  %v5881_v61 = vld [vmem:[%s6654_s8 + $0x4c] ss:$16 sps:$4 sm:$0xff]  }
0x1314   : > { %4361 = vmatmul.mubr.msk.bf16.vlgmr.msra.gmra.mrb[0].mxu0 %vm2652_vm8, %v2602_v50  ;;  %4365 = vmatmul.mubr.msk.bf16.vlgmr.msra.gmra.mrb[0].mxu1 %vm2652_vm8, %v2602_v50  ;;  %v2597_v58 = vld [vmem:[%s6652_s6 + $0x18] sm:$0xff]  ;;  %v5886_v62 = vld [vmem:[%s6654_s8 + $0x40] ss:$16 sps:$4 sm:$0xff]   ;;  %v5899_v3 = vld [vmem:[%s6654_s8 + $0x64] ss:$16 sps:$4 sm:$0xff]   ;;  %v2622_v36 = vsub.s32 2, %v2613_v33 }
0x1315   : > { %3040 = vmatpush1.bf16.msra.mxu0 %v5830_v52  ;;  %3081 = vmatpush1.bf16.msra.mxu1 %v5835_v53  ;;  %v2603_v60 = vpack.c.bf16 %v2597_v58, %v2596_v57  ;;  %v5892_v63 = vld [vmem:[%s6654_s8 + $0x48] ss:$16 sps:$4 sm:$0xff]   ;;  %v5905_v28 = vld [vmem:[%s6654_s8 + $0x6c] ss:$16 sps:$4 sm:$0xff]   ;;  %v5910_v0 = vld [vmem:[%s6654_s8 + $0x60] ss:$16 sps:$4 sm:$0xff]  }
0x1316   : > { %3041 = vmatprep.subr.bf16.mxu0 %v5841_v35  ;;  %3082 = vmatprep.subr.bf16.mxu1 %v5848_v54  ;;  %v2598_v4 = vld [vmem:[%s6652_s6 + $0x20] sm:$0xff]  ;;  %v2599_v5 = vld [vmem:[%s6652_s6 + $0x28] sm:$0xff]  ;;  %v2600_v19 = vld [vmem:[%s6652_s6 + $0x30] sm:$0xff]  ;;  %v2626_v37 = vsub.s32 3, %v2613_v33  ;;  %v2614_v38 = vsub.s32 0, %v2613_v33  ;;  %v2618_v40 = vsub.s32 1, %v2613_v33 }
0x1317   : > { %2707 = vmatprep.mubr.bf16.mxu0 %v6660_v47  ;;  %2780 = vmatprep.mubr.bf16.mxu1 %v6660_v47  ;;  %v5927_v6 = vld [vmem:[%s6654_s8 + $0x68] ss:$16 sps:$4 sm:$0xff]   ;;  %v5932_v8 = vld [vmem:[%s6654_s8 + $0x84] ss:$16 sps:$4 sm:$0xff]   ;;  %v5939_v9 = vld [vmem:[%s6654_s8 + $0x8c] ss:$16 sps:$4 sm:$0xff]   ;;  %v2604_v13 = vpack.c.bf16 %v2599_v5, %v2598_v4 }
0x1318   : > { %v5945_v14 = vld [vmem:[%s6654_s8 + $0x80] ss:$16 sps:$4 sm:$0xff]   ;;  %v5950_v15 = vld [vmem:[%s6654_s8 + $0x88] ss:$16 sps:$4 sm:$0xff]   ;;  %v5957_v24 = vld [vmem:[%s6654_s8 + $0xa4] ss:$16 sps:$4 sm:$0xff]  }
0x1319   : > { %3042 = vmatpush1.bf16.msra.mxu0 %v5855_v55  ;;  %3083 = vmatpush1.bf16.msra.mxu1 %v5860_v56  ;;  %v5963_v16 = vld [vmem:[%s6654_s8 + $0xac] ss:$16 sps:$4 sm:$0xff]   ;;  %v5970_v17 = vld [vmem:[%s6654_s8 + $0xa0] ss:$16 sps:$4 sm:$0xff]   ;;  %v5975_v18 = vld [vmem:[%s6654_s8 + $0xa8] ss:$16 sps:$4 sm:$0xff]  }
0x131a   : > { %3043 = vmatprep.subr.bf16.mxu0 %v5875_v59  ;;  %3084 = vmatprep.subr.bf16.mxu1 %v5881_v61  ;;  %v2601_v20 = vld [vmem:[%s6652_s6 + $0x38] sm:$0xff]  ;;  %v5990_v21 = vld [vmem:[%s6654_s8 + $0xc4] ss:$16 sps:$4 sm:$0xff]   ;;  %v6002_v23 = vld [vmem:[%s6654_s8 + $0xc0] ss:$16 sps:$4 sm:$0xff]   ;;  %vm4177_vm11 = vcmask 785408  }
0x131b   : > { %v5997_v22 = vld [vmem:[%s6654_s8 + $0xcc] ss:$16 sps:$4 sm:$0xff]   ;;  %v2605_v25 = vpack.c.bf16 %v2601_v20, %v2600_v19  ;;  %v6007_v26 = vld [vmem:[%s6654_s8 + $0xc8] ss:$16 sps:$4 sm:$0xff]   ;;  %v6012_v27 = vld [vmem:[%s6654_s8 + $0xe4] ss:$16 sps:$4 sm:$0xff]  }
0x131c   : > { %4362 = vmatmul.mubr.msk.bf16.gmra.mrb[4].mxu0 %vm2652_vm8, %v2603_v60  ;;  %4366 = vmatmul.mubr.msk.bf16.gmra.mrb[4].mxu1 %vm2652_vm8, %v2603_v60  ;;  %v6018_v29 = vld [vmem:[%s6654_s8 + $0xec] ss:$16 sps:$4 sm:$0xff]   ;;  %v6026_v30 = vld [vmem:[%s6654_s8 + $0xe0] ss:$16 sps:$4 sm:$0xff]   ;;  %v6033_v31 = vld [vmem:[%s6654_s8 + $0xe8] ss:$16 sps:$4 sm:$0xff]  }
0x131d   : > { %3044 = vmatpush1.bf16.msra.mxu0 %v5886_v62  ;;  %2717 = vmatprep.mubr.bf16.mxu0 %v6660_v47  ;;  %v2610_v39 = vld [vmem:[%s6655_s9] sm:$0xf] }
0x131e   : > { %3085 = vmatpush1.bf16.msra.mxu1 %v5892_v63  ;;  %3045 = vmatprep.subr.bf16.mxu0 %v5899_v3  ;;  %v6084_v41 = vrot.slane %v2610_v39, %v2622_v36  ;;  %v6090_v42 = vrot.slane %v2610_v39, %v2626_v37  ;;  %v2615_v43 = vrot.slane %v2610_v39, %v2614_v38 }
0x131f   : > { %3086 = vmatprep.subr.bf16.mxu1 %v5905_v28  ;;  %2790 = vmatprep.mubr.bf16.mxu1 %v6660_v47  ;;  %v2619_v11 = vrot.slane %v2610_v39, %v2618_v40 }
0x1321   : > { %3046 = vmatpush1.bf16.msra.mxu0 %v5910_v0 }
0x1322   : > { %3087 = vmatpush1.bf16.msra.mxu1 %v5927_v6  ;;  %3047 = vmatprep.subr.bf16.mxu0 %v5932_v8 }
0x1323   : > { %3088 = vmatprep.subr.bf16.mxu1 %v5939_v9 }
0x1324   : > { %4363 = vmatmul.mubr.msk.bf16.gmra.mrb[8].mxu0 %vm2652_vm8, %v2604_v13  ;;  %4367 = vmatmul.mubr.msk.bf16.gmra.mrb[8].mxu1 %vm2652_vm8, %v2604_v13 }
0x1325   : > { %3048 = vmatpush1.bf16.msra.mxu0 %v5945_v14  ;;  %2727 = vmatprep.mubr.bf16.mxu0 %v6660_v47 }
0x1326   : > { %3089 = vmatpush1.bf16.msra.mxu1 %v5950_v15  ;;  %3049 = vmatprep.subr.bf16.mxu0 %v5957_v24 }
0x1327   : > { %3090 = vmatprep.subr.bf16.mxu1 %v5963_v16  ;;  %2800 = vmatprep.mubr.bf16.mxu1 %v6660_v47 }
0x1329   : > { %3050 = vmatpush1.bf16.msra.mxu0 %v5970_v17 }
0x132a   : > { %3091 = vmatpush1.bf16.msra.mxu1 %v5975_v18  ;;  %3051 = vmatprep.subr.bf16.mxu0 %v5990_v21 }
0x132b   : > { %3092 = vmatprep.subr.bf16.mxu1 %v5997_v22 }
0x132c   : > { %4364 = vmatmul.mubr.msk.bf16.gmra.mrb[12].mxu0 %vm2652_vm8, %v2605_v25  ;;  %4368 = vmatmul.mubr.msk.bf16.gmra.mrb[12].mxu1 %vm2652_vm8, %v2605_v25 }
0x132d   : > { %3052 = vmatpush1.bf16.msra.mxu0 %v6002_v23  ;;  %3071 = vmatprep.mubr.bf16.mxu0 %v6660_v47 }
0x132e   : > { %3093 = vmatpush1.bf16.msra.mxu1 %v6007_v26  ;;  %3053 = vmatprep.subr.bf16.mxu0 %v6012_v27 }
0x132f   : > { %3094 = vmatprep.subr.bf16.mxu1 %v6018_v29  ;;  %3112 = vmatprep.mubr.bf16.mxu1 %v6660_v47 }
0x1331   : > { %3054 = vmatpush1.bf16.msra.mxu0 %v6026_v30 }
0x1332   : > { %3095 = vmatpush1.bf16.msra.mxu1 %v6033_v31  ;;  %3154 = vmatprep.subr.bf16.mxu0 %v5820_v34 }
0x1333   : > { %3195 = vmatprep.subr.bf16.mxu1 %v5825_v51 }
0x1334   : > { %3072 = vmatmul.mubr.bf16.vlgmr.msra.gmra.mrb[16].mxu0 %v6660_v47 }
0x1335   : > { %3113 = vmatmul.mubr.bf16.vlgmr.msra.gmra.mrb[16].mxu1 %v6660_v47  ;;  %3155 = vmatpush1.bf16.msra.mxu0 %v5830_v52 }
0x1336   : > { %3196 = vmatpush1.bf16.msra.mxu1 %v5835_v53  ;;  %3156 = vmatprep.subr.bf16.mxu0 %v5841_v35 }
0x1337   : > { %3197 = vmatprep.subr.bf16.mxu1 %v5848_v54  ;;  %3186 = vmatprep.mubr.bf16.mxu0 %v6660_v47 }
0x1338   : > { %3227 = vmatprep.mubr.bf16.mxu1 %v6660_v47 }
0x1339   : > { %3157 = vmatpush1.bf16.msra.mxu0 %v5855_v55 }
0x133a   : > { %3198 = vmatpush1.bf16.msra.mxu1 %v5860_v56  ;;  %3158 = vmatprep.subr.bf16.mxu0 %v5875_v59 }
0x133b   : > { %3199 = vmatprep.subr.bf16.mxu1 %v5881_v61 }
0x133d   : > { %3159 = vmatpush1.bf16.msra.mxu0 %v5886_v62 }
0x133e   : > { %3200 = vmatpush1.bf16.msra.mxu1 %v5892_v63  ;;  %3160 = vmatprep.subr.bf16.mxu0 %v5899_v3 }
0x133f   : > { %3201 = vmatprep.subr.bf16.mxu1 %v5905_v28 }
0x1341   : > { %3161 = vmatpush1.bf16.msra.mxu0 %v5910_v0 }
0x1342   : > { %3202 = vmatpush1.bf16.msra.mxu1 %v5927_v6  ;;  %3162 = vmatprep.subr.bf16.mxu0 %v5932_v8 }
0x1343   : > { %3203 = vmatprep.subr.bf16.mxu1 %v5939_v9 }
0x1345   : > { %3163 = vmatpush1.bf16.msra.mxu0 %v5945_v14 }
0x1346   : > { %3204 = vmatpush1.bf16.msra.mxu1 %v5950_v15  ;;  %3164 = vmatprep.subr.bf16.mxu0 %v5957_v24 }
0x1347   : > { %3205 = vmatprep.subr.bf16.mxu1 %v5963_v16 }
0x1349   : > { %3165 = vmatpush1.bf16.msra.mxu0 %v5970_v17 }
0x134a   : > { %3206 = vmatpush1.bf16.msra.mxu1 %v5975_v18  ;;  %3166 = vmatprep.subr.bf16.mxu0 %v5990_v21 }
0x134b   : > { %3207 = vmatprep.subr.bf16.mxu1 %v5997_v22 }
0x134d   : > { %3167 = vmatpush1.bf16.msra.mxu0 %v6002_v23 }
0x134e   : > { %3208 = vmatpush1.bf16.msra.mxu1 %v6007_v26  ;;  %3168 = vmatprep.subr.bf16.mxu0 %v6012_v27 }
0x134f   : > { %3209 = vmatprep.subr.bf16.mxu1 %v6018_v29 }
0x1351   : > { %3169 = vmatpush1.bf16.msra.mxu0 %v6026_v30 }
0x1352   : > { %3210 = vmatpush1.bf16.msra.mxu1 %v6033_v31  ;;  %3269 = vmatprep.subr.bf16.mxu0 %v5820_v34 }
0x1353   : > { %3310 = vmatprep.subr.bf16.mxu1 %v5825_v51 }
0x13e7   : > { %v6086_v1 = vpop.f32.mrb[0].mxu0  ;;  %v6088_v2 = vpop.f32.mrb[0].mxu1 }
0x13e8   : > { %v2701_v10 = vpop.f32.mrb[1].mxu0  ;;  %v2774_v44 = vpop.f32.mrb[1].mxu1 }
0x13e9   : > { %v2703_v45 = vpop.f32.mrb[2].mxu0  ;;  %v2776_v46 = vpop.f32.mrb[2].mxu1 }
0x13ea   : > { %v6092_v7 = vadd.f32 %v2703_v45, %v2615_v43  ;;  %v2705_v48 = vpop.f32.mrb[3].mxu0  ;;  %v6095_v12 = vadd.f32 %v2776_v46, %v6084_v41  ;;  %v2778_v49 = vpop.f32.mrb[3].mxu1 }
0x13eb   : > { %v6097_v50 = vadd.f32 %v2705_v48, %v2619_v11  ;;  %v6100_v57 = vadd.f32 %v2778_v49, %v6090_v42 }
0x13ef   : > { %v2709_v58 = vpop.f32.mrb[4].mxu0  ;;  %v2782_v60 = vpop.f32.mrb[4].mxu1 }
0x13f0   : > { %v6102_v4 = vadd.f32 %v2709_v58, %v2615_v43  ;;  %v2711_v5 = vpop.f32.mrb[5].mxu0  ;;  %v6105_v13 = vadd.f32 %v2782_v60, %v6084_v41  ;;  %v2784_v19 = vpop.f32.mrb[5].mxu1 }
0x13f1   : > { %v6107_v20 = vadd.f32 %v2711_v5, %v2619_v11  ;;  %v2713_v25 = vpop.f32.mrb[6].mxu0  ;;  %v6110_v32 = vadd.f32 %v2784_v19, %v6090_v42  ;;  %v2786_v33 = vpop.f32.mrb[6].mxu1 }
0x13f2   : > { %v6112_v36 = vadd.f32 %v2713_v25, %v2615_v43  ;;  %v2715_v37 = vpop.f32.mrb[7].mxu0  ;;  %v6115_v38 = vadd.f32 %v2786_v33, %v6084_v41  ;;  %v2788_v39 = vpop.f32.mrb[7].mxu1 }
0x13f3   : > { %6662 = vst [vmem:[#allocation3_spill] sm:$0xff] %v6110_v32  ;;  %v6117_v40 = vadd.f32 %v2715_v37, %v2619_v11  ;;  %v6120_v45 = vadd.f32 %v2788_v39, %v6090_v42 }
0x13f4   : > { %6663 = vst [vmem:[#allocation4_spill] sm:$0xff] %v6112_v36  ;;  %6664 = vst [vmem:[#allocation5_spill] sm:$0xff] %v6115_v38 }
0x13f5   : > { %6665 = vst [vmem:[#allocation6_spill] sm:$0xff] %v6117_v40  ;;  %6666 = vst [vmem:[#allocation7_spill] sm:$0xff] %v6120_v45 }
0x13f7   : > { %v2719_v46 = vpop.f32.mrb[8].mxu0  ;;  %v2792_v48 = vpop.f32.mrb[8].mxu1 }
0x13f8   : > { %v6122_v49 = vadd.f32 %v2719_v46, %v2615_v43  ;;  %v2721_v58 = vpop.f32.mrb[9].mxu0  ;;  %v6125_v60 = vadd.f32 %v2792_v48, %v6084_v41  ;;  %v2794_v5 = vpop.f32.mrb[9].mxu1 }
0x13f9   : > { %v6127_v19 = vadd.f32 %v2721_v58, %v2619_v11  ;;  %v2723_v25 = vpop.f32.mrb[10].mxu0  ;;  %v6130_v33 = vadd.f32 %v2794_v5, %v6090_v42  ;;  %v2796_v37 = vpop.f32.mrb[10].mxu1 }
0x13fa   : > { %6667 = vst [vmem:[#allocation8_spill] sm:$0xff] %v6122_v49  ;;  %6668 = vst [vmem:[#allocation9_spill] sm:$0xff] %v6125_v60  ;;  %v6132_v47 = vadd.f32 %v2723_v25, %v2615_v43  ;;  %v2725_v39 = vpop.f32.mrb[11].mxu0  ;;  %v6135_v45 = vadd.f32 %v2796_v37, %v6084_v41  ;;  %v2798_v46 = vpop.f32.mrb[11].mxu1 }
0x13fb   : > { %6669 = vst [vmem:[#allocation10_spill] sm:$0xff] %v6127_v19  ;;  %6670 = vst [vmem:[#allocation11_spill] sm:$0xff] %v6130_v33  ;;  %v6137_v49 = vadd.f32 %v2725_v39, %v2619_v11  ;;  %v6140_v48 = vadd.f32 %v2798_v46, %v6090_v42 }
0x13fc   : > { %6671 = vst [vmem:[#allocation12_spill] sm:$0xff] %v6132_v47  ;;  %6672 = vst [vmem:[#allocation13_spill] sm:$0xff] %v6135_v45 }
0x13fd   : > { %6673 = vst [vmem:[#allocation14_spill] sm:$0xff] %v6137_v49  ;;  %6674 = vst [vmem:[#allocation15_spill] sm:$0xff] %v6140_v48 }
0x13ff   : > { %v2729_v60 = vpop.f32.mrb[12].mxu0  ;;  %v2802_v58 = vpop.f32.mrb[12].mxu1 }
0x1400   : > { %v6142_v19 = vadd.f32 %v2729_v60, %v2615_v43  ;;  %v2731_v40 = vpop.f32.mrb[13].mxu0  ;;  %v6145_v5 = vadd.f32 %v2802_v58, %v6084_v41  ;;  %v2804_v25 = vpop.f32.mrb[13].mxu1 }
0x1401   : > { %v6147_v47 = vadd.f32 %v2731_v40, %v2619_v11  ;;  %v2733_v33 = vpop.f32.mrb[14].mxu0  ;;  %v6150_v37 = vadd.f32 %v2804_v25, %v6090_v42  ;;  %v2806_v39 = vpop.f32.mrb[14].mxu1  ;;  %v2700_v40 = vadd.f32 %v6086_v1, %v2615_v43  ;;  %v2773_v25 = vadd.f32 %v6088_v2, %v6084_v41 }
0x1402   : > { %6675 = vst [vmem:[#allocation16_spill] sm:$0xff] %v6142_v19  ;;  %6676 = vst [vmem:[#allocation17_spill] sm:$0xff] %v6145_v5  ;;  %v6152_v49 = vadd.f32 %v2733_v33, %v2615_v43  ;;  %v2735_v46 = vpop.f32.mrb[15].mxu0  ;;  %v6155_v48 = vadd.f32 %v2806_v39, %v6084_v41  ;;  %v2808_v60 = vpop.f32.mrb[15].mxu1  ;;  %v2775_v33 = vadd.f32 %v2774_v44, %v6090_v42 }
0x1403   : > { %6677 = vst [vmem:[#allocation18_spill] sm:$0xff] %v6147_v47  ;;  %6678 = vst [vmem:[#allocation19_spill] sm:$0xff] %v6150_v37  ;;  %v6157_v19 = vadd.f32 %v2735_v46, %v2619_v11  ;;  %v6160_v58 = vadd.f32 %v2808_v60, %v6090_v42  ;;  %v2702_v47 = vadd.f32 %v2701_v10, %v2619_v11 }
0x1404   : > { %6679 = vst [vmem:[#allocation20_spill] sm:$0xff] %v6152_v49  ;;  %6680 = vst [vmem:[#allocation21_spill] sm:$0xff] %v6155_v48 }
0x1405   : > { %6681 = vst [vmem:[#allocation22_spill] sm:$0xff] %v6157_v19  ;;  %6682 = vst [vmem:[#allocation23_spill] sm:$0xff] %v6160_v58 }
0x1407   : > { %v3073_v37 = vpop.f32.mrb[16].mxu0 }
0x1408   : > { %v3121_v49 = vadd.f32 %v3073_v37, %v2700_v40  ;;  %v3114_v5 = vpop.f32.mrb[16].mxu1  ;;  %v3075_v45 = vpop.f32.mrb[17].mxu0 }
0x1409   : > { %v3123_v39 = vadd.f32 %v3114_v5, %v2773_v25  ;;  %v3122_v48 = vadd.f32 %v3075_v45, %v2702_v47  ;;  %v3116_v38 = vpop.f32.mrb[17].mxu1  ;;  %v3077_v46 = vpop.f32.mrb[18].mxu0 }
0x140a   : > { %v4401_v19 = vmul.f32 -1.442695, %v3121_v49  ;;  %v3124_v36 = vadd.f32 %v3116_v38, %v2775_v33  ;;  %v3078_v60 = vpop.f32.mrb[19].mxu0  ;;  %v3118_v58 = vpop.f32.mrb[18].mxu1 }
0x140b   : > { %v4402_v32 = vmul.f32 -1.442695, %v3122_v48  ;;  %v3119_v1 = vpop.f32.mrb[19].mxu1  ;;  %v6683_v58 = vmov 0  }
0x140c   : > { %5037 = vpow2.f32 %v4401_v19  ;;  %v4403_v43 = vmul.f32 -1.442695, %v3124_v36 }
0x140d   : > { %5039 = vpow2.f32 %v4402_v32 }
0x140e   : > { %5041 = vpow2.f32 %v4403_v43 }
0x140f   : > { %5043 = vtanh.f32 %v3123_v39 }
0x1416   : > { %v5038_v41 = vpop.eup %5037 }
0x1417   : > { %v5040_v2 = vpop.eup %5039  ;;  %v3128_v10 = vadd.f32 1.0, %v5038_v41 }
0x1418   : > { %v3134_v42 = vadd.f32 1.0, %v5040_v2  ;;  %v5042_v47 = vpop.eup %5041 }
0x1419   : > { %5045 = vrcp.f32 %v3128_v10  ;;  %v5044_v44 = vpop.eup %5043  ;;  %v3141_v49 = vadd.f32 1.0, %v5042_v47 }
0x141a   : > { %5047 = vrcp.f32 %v3134_v42 }
0x141b   : > { %5049 = vrcp.f32 %v3141_v49 }
0x1423   : > { %v5046_v11 = vpop.eup %5045 }
0x1424   : > { %v5048_v45 = vpop.eup %5047  ;;  %v3145_v38 = vmul.f32 %v5046_v11, %v5044_v44 }
0x1425   : > { %v3144_v5 = vmul.f32 0.0, %v5048_v45  ;;  %v5050_v32 = vpop.eup %5049 }
0x1427   : > { %v6166_v48 = vadd.f32 %v3145_v38, %v3144_v5 }
0x1429   : > { %5051 = vtanh.f32 %v6166_v48 }
0x1433   : > { %v5052_v36 = vpop.eup %5051 }
0x1434   : > { %v3148_v19 = vmul.f32 %v5052_v36, %v5050_v32 }
0x1436   : > { %v3153_v37 = vpack.c.bf16 %v3148_v19, %v3148_v19 }
0x1438   : > { %3187 = vmatmul.mubr.bf16.vlgmr.msra.gmra.mrb[20].mxu0 %v3153_v37  ;;  %3228 = vmatmul.mubr.bf16.vlgmr.msra.gmra.mrb[20].mxu1 %v3153_v37 }
0x1439   : > { %3270 = vmatpush1.bf16.msra.mxu0 %v5830_v52  ;;  %3311 = vmatpush1.bf16.msra.mxu1 %v5835_v53 }
0x143a   : > { %3271 = vmatprep.subr.bf16.mxu0 %v5841_v35  ;;  %3312 = vmatprep.subr.bf16.mxu1 %v5848_v54 }
0x143b   : > { %3301 = vmatprep.mubr.bf16.mxu0 %v6683_v58  ;;  %3342 = vmatprep.mubr.bf16.mxu1 %v6683_v58 }
0x143d   : > { %3272 = vmatpush1.bf16.msra.mxu0 %v5855_v55  ;;  %3313 = vmatpush1.bf16.msra.mxu1 %v5860_v56 }
0x143e   : > { %3273 = vmatprep.subr.bf16.mxu0 %v5875_v59  ;;  %3314 = vmatprep.subr.bf16.mxu1 %v5881_v61 }
0x1441   : > { %3274 = vmatpush1.bf16.msra.mxu0 %v5886_v62  ;;  %3315 = vmatpush1.bf16.msra.mxu1 %v5892_v63 }
0x1442   : > { %3275 = vmatprep.subr.bf16.mxu0 %v5899_v3  ;;  %3316 = vmatprep.subr.bf16.mxu1 %v5905_v28 }
0x1445   : > { %3276 = vmatpush1.bf16.msra.mxu0 %v5910_v0  ;;  %3317 = vmatpush1.bf16.msra.mxu1 %v5927_v6 }
0x1446   : > { %3277 = vmatprep.subr.bf16.mxu0 %v5932_v8  ;;  %3318 = vmatprep.subr.bf16.mxu1 %v5939_v9 }
0x1449   : > { %3278 = vmatpush1.bf16.msra.mxu0 %v5945_v14  ;;  %3319 = vmatpush1.bf16.msra.mxu1 %v5950_v15 }
0x144a   : > { %3279 = vmatprep.subr.bf16.mxu0 %v5957_v24  ;;  %3320 = vmatprep.subr.bf16.mxu1 %v5963_v16 }
0x144d   : > { %3280 = vmatpush1.bf16.msra.mxu0 %v5970_v17  ;;  %3321 = vmatpush1.bf16.msra.mxu1 %v5975_v18 }
0x144e   : > { %3281 = vmatprep.subr.bf16.mxu0 %v5990_v21  ;;  %3322 = vmatprep.subr.bf16.mxu1 %v5997_v22 }
0x1451   : > { %3282 = vmatpush1.bf16.msra.mxu0 %v6002_v23  ;;  %3323 = vmatpush1.bf16.msra.mxu1 %v6007_v26 }
0x1452   : > { %3283 = vmatprep.subr.bf16.mxu0 %v6012_v27  ;;  %3324 = vmatprep.subr.bf16.mxu1 %v6018_v29 }
0x1455   : > { %3284 = vmatpush1.bf16.msra.mxu0 %v6026_v30  ;;  %3325 = vmatpush1.bf16.msra.mxu1 %v6033_v31 }
0x1456   : > { %3384 = vmatprep.subr.bf16.mxu0 %v5820_v34  ;;  %3425 = vmatprep.subr.bf16.mxu1 %v5825_v51 }
0x150b   : > { %v3188_v40 = vpop.f32.mrb[20].mxu0  ;;  %v3229_v25 = vpop.f32.mrb[20].mxu1 }
0x150c   : > { %v3236_v33 = vadd.f32 %v3188_v40, %v6092_v7  ;;  %v3238_v39 = vadd.f32 %v3229_v25, %v6095_v12  ;;  %v3190_v46 = vpop.f32.mrb[21].mxu0  ;;  %v3231_v60 = vpop.f32.mrb[21].mxu1 }
0x150d   : > { %v3237_v1 = vadd.f32 %v3190_v46, %v6097_v50  ;;  %v3239_v43 = vadd.f32 %v3231_v60, %v6100_v57  ;;  %v3192_v41 = vpop.f32.mrb[22].mxu0  ;;  %v3233_v2 = vpop.f32.mrb[22].mxu1 }
0x150e   : > { %v4404_v10 = vmul.f32 -1.442695, %v3236_v33  ;;  %v3193_v42 = vpop.f32.mrb[23].mxu0  ;;  %v3234_v47 = vpop.f32.mrb[23].mxu1 }
0x150f   : > { %v4405_v44 = vmul.f32 -1.442695, %v3237_v1  ;;  %v4406_v11 = vmul.f32 -1.442695, %v3239_v43 }
0x1510   : > { %5053 = vpow2.f32 %v4404_v10  ;;  %v6684_v10 = vld [vmem:[#allocation3_spill] sm:$0xff] }
0x1511   : > { %5055 = vpow2.f32 %v4405_v44 }
0x1512   : > { %5057 = vpow2.f32 %v4406_v11 }
0x1513   : > { %5059 = vtanh.f32 %v3238_v39 }
0x151a   : > { %v5054_v45 = vpop.eup %5053 }
0x151b   : > { %v5056_v38 = vpop.eup %5055  ;;  %v3243_v7 = vadd.f32 1.0, %v5054_v45 }
0x151c   : > { %v3249_v12 = vadd.f32 1.0, %v5056_v38  ;;  %v5058_v50 = vpop.eup %5057 }
0x151d   : > { %5061 = vrcp.f32 %v3243_v7  ;;  %v5060_v49 = vpop.eup %5059  ;;  %v3256_v36 = vadd.f32 1.0, %v5058_v50 }
0x151e   : > { %5063 = vrcp.f32 %v3249_v12 }
0x151f   : > { %5065 = vrcp.f32 %v3256_v36 }
0x1527   : > { %v5062_v57 = vpop.eup %5061 }
0x1528   : > { %v5064_v5 = vpop.eup %5063  ;;  %v3260_v32 = vmul.f32 %v5062_v57, %v5060_v49 }
0x1529   : > { %v3259_v19 = vmul.f32 %v5064_v5, %v6166_v48  ;;  %v5066_v40 = vpop.eup %5065 }
0x152b   : > { %v6208_v37 = vadd.f32 %v3260_v32, %v3259_v19 }
0x152d   : > { %5067 = vtanh.f32 %v6208_v37 }
0x1537   : > { %v5068_v25 = vpop.eup %5067 }
0x1538   : > { %v3263_v33 = vmul.f32 %v5068_v25, %v5066_v40 }
0x153a   : > { %v3268_v39 = vpack.c.bf16 %v3263_v33, %v3263_v33 }
0x153c   : > { %3302 = vmatmul.mubr.bf16.vlgmr.msra.gmra.mrb[24].mxu0 %v3268_v39  ;;  %3343 = vmatmul.mubr.bf16.vlgmr.msra.gmra.mrb[24].mxu1 %v3268_v39 }
0x153d   : > { %3385 = vmatpush1.bf16.msra.mxu0 %v5830_v52  ;;  %3426 = vmatpush1.bf16.msra.mxu1 %v5835_v53 }
0x153e   : > { %3386 = vmatprep.subr.bf16.mxu0 %v5841_v35  ;;  %3427 = vmatprep.subr.bf16.mxu1 %v5848_v54 }
0x153f   : > { %3416 = vmatprep.mubr.bf16.mxu0 %v6683_v58  ;;  %3457 = vmatprep.mubr.bf16.mxu1 %v6683_v58 }
0x1541   : > { %3387 = vmatpush1.bf16.msra.mxu0 %v5855_v55  ;;  %3428 = vmatpush1.bf16.msra.mxu1 %v5860_v56 }
0x1542   : > { %3388 = vmatprep.subr.bf16.mxu0 %v5875_v59  ;;  %3429 = vmatprep.subr.bf16.mxu1 %v5881_v61 }
0x1545   : > { %3389 = vmatpush1.bf16.msra.mxu0 %v5886_v62  ;;  %3430 = vmatpush1.bf16.msra.mxu1 %v5892_v63 }
0x1546   : > { %3390 = vmatprep.subr.bf16.mxu0 %v5899_v3  ;;  %3431 = vmatprep.subr.bf16.mxu1 %v5905_v28 }
0x1549   : > { %3391 = vmatpush1.bf16.msra.mxu0 %v5910_v0  ;;  %3432 = vmatpush1.bf16.msra.mxu1 %v5927_v6 }
0x154a   : > { %3392 = vmatprep.subr.bf16.mxu0 %v5932_v8  ;;  %3433 = vmatprep.subr.bf16.mxu1 %v5939_v9 }
0x154d   : > { %3393 = vmatpush1.bf16.msra.mxu0 %v5945_v14  ;;  %3434 = vmatpush1.bf16.msra.mxu1 %v5950_v15 }
0x154e   : > { %3394 = vmatprep.subr.bf16.mxu0 %v5957_v24  ;;  %3435 = vmatprep.subr.bf16.mxu1 %v5963_v16 }
0x1551   : > { %3395 = vmatpush1.bf16.msra.mxu0 %v5970_v17  ;;  %3436 = vmatpush1.bf16.msra.mxu1 %v5975_v18 }
0x1552   : > { %3396 = vmatprep.subr.bf16.mxu0 %v5990_v21  ;;  %3437 = vmatprep.subr.bf16.mxu1 %v5997_v22 }
0x1555   : > { %3397 = vmatpush1.bf16.msra.mxu0 %v6002_v23  ;;  %3438 = vmatpush1.bf16.msra.mxu1 %v6007_v26 }
0x1556   : > { %3398 = vmatprep.subr.bf16.mxu0 %v6012_v27  ;;  %3439 = vmatprep.subr.bf16.mxu1 %v6018_v29 }
0x1559   : > { %3399 = vmatpush1.bf16.msra.mxu0 %v6026_v30  ;;  %3440 = vmatpush1.bf16.msra.mxu1 %v6033_v31 }
0x155a   : > { %3499 = vmatprep.subr.bf16.mxu0 %v5820_v34  ;;  %3540 = vmatprep.subr.bf16.mxu1 %v5825_v51 }
0x160f   : > { %v3303_v48 = vpop.f32.mrb[24].mxu0  ;;  %v3344_v46 = vpop.f32.mrb[24].mxu1 }
0x1610   : > { %v3351_v60 = vadd.f32 %v3303_v48, %v6102_v4  ;;  %v3353_v1 = vadd.f32 %v3344_v46, %v6105_v13  ;;  %v3305_v43 = vpop.f32.mrb[25].mxu0  ;;  %v3346_v41 = vpop.f32.mrb[25].mxu1 }
0x1611   : > { %v3352_v2 = vadd.f32 %v3305_v43, %v6107_v20  ;;  %v3354_v42 = vadd.f32 %v3346_v41, %v6684_v10  ;;  %v3307_v47 = vpop.f32.mrb[26].mxu0  ;;  %v3348_v44 = vpop.f32.mrb[26].mxu1 }
0x1612   : > { %v4407_v11 = vmul.f32 -1.442695, %v3351_v60  ;;  %v3308_v45 = vpop.f32.mrb[27].mxu0  ;;  %v3349_v38 = vpop.f32.mrb[27].mxu1  ;;  %v6686_v60 = vld [vmem:[#allocation5_spill] sm:$0xff] }
0x1613   : > { %v4408_v7 = vmul.f32 -1.442695, %v3352_v2  ;;  %v4409_v12 = vmul.f32 -1.442695, %v3354_v42  ;;  %v6687_v2 = vld [vmem:[#allocation6_spill] sm:$0xff]  ;;  %v6688_v42 = vld [vmem:[#allocation7_spill] sm:$0xff] }
0x1614   : > { %5069 = vpow2.f32 %v4407_v11 }
0x1615   : > { %5071 = vpow2.f32 %v4408_v7 }
0x1616   : > { %5073 = vpow2.f32 %v4409_v12 }
0x1617   : > { %5075 = vtanh.f32 %v3353_v1 }
0x161e   : > { %v5070_v50 = vpop.eup %5069 }
0x161f   : > { %v5072_v49 = vpop.eup %5071  ;;  %v3358_v4 = vadd.f32 1.0, %v5070_v50 }
0x1620   : > { %v3364_v13 = vadd.f32 1.0, %v5072_v49  ;;  %v5074_v20 = vpop.eup %5073 }
0x1621   : > { %5077 = vrcp.f32 %v3358_v4  ;;  %v5076_v57 = vpop.eup %5075  ;;  %v3371_v19 = vadd.f32 1.0, %v5074_v20 }
0x1622   : > { %5079 = vrcp.f32 %v3364_v13 }
0x1623   : > { %5081 = vrcp.f32 %v3371_v19 }
0x162b   : > { %v5078_v5 = vpop.eup %5077 }
0x162c   : > { %v5080_v32 = vpop.eup %5079  ;;  %v3375_v36 = vmul.f32 %v5078_v5, %v5076_v57 }
0x162d   : > { %v3374_v40 = vmul.f32 %v5080_v32, %v6208_v37  ;;  %v5082_v33 = vpop.eup %5081 }
0x162f   : > { %v6250_v25 = vadd.f32 %v3375_v36, %v3374_v40 }
0x1631   : > { %5083 = vtanh.f32 %v6250_v25 }
0x163b   : > { %v5084_v39 = vpop.eup %5083 }
0x163c   : > { %v3378_v48 = vmul.f32 %v5084_v39, %v5082_v33 }
0x163e   : > { %v3383_v46 = vpack.c.bf16 %v3378_v48, %v3378_v48 }
0x1640   : > { %3417 = vmatmul.mubr.bf16.vlgmr.msra.gmra.mrb[28].mxu0 %v3383_v46  ;;  %3458 = vmatmul.mubr.bf16.vlgmr.msra.gmra.mrb[28].mxu1 %v3383_v46 }
0x1641   : > { %3500 = vmatpush1.bf16.msra.mxu0 %v5830_v52  ;;  %3541 = vmatpush1.bf16.msra.mxu1 %v5835_v53 }
0x1642   : > { %3501 = vmatprep.subr.bf16.mxu0 %v5841_v35  ;;  %3542 = vmatprep.subr.bf16.mxu1 %v5848_v54  ;;  %v6685_v35 = vld [vmem:[#allocation4_spill] sm:$0xff] }
0x1643   : > { %3531 = vmatprep.mubr.bf16.mxu0 %v6683_v58  ;;  %3572 = vmatprep.mubr.bf16.mxu1 %v6683_v58 }
0x1645   : > { %3502 = vmatpush1.bf16.msra.mxu0 %v5855_v55  ;;  %3543 = vmatpush1.bf16.msra.mxu1 %v5860_v56 }
0x1646   : > { %3503 = vmatprep.subr.bf16.mxu0 %v5875_v59  ;;  %3544 = vmatprep.subr.bf16.mxu1 %v5881_v61 }
0x1649   : > { %3504 = vmatpush1.bf16.msra.mxu0 %v5886_v62  ;;  %3545 = vmatpush1.bf16.msra.mxu1 %v5892_v63 }
0x164a   : > { %3505 = vmatprep.subr.bf16.mxu0 %v5899_v3  ;;  %3546 = vmatprep.subr.bf16.mxu1 %v5905_v28 }
0x164d   : > { %3506 = vmatpush1.bf16.msra.mxu0 %v5910_v0  ;;  %3547 = vmatpush1.bf16.msra.mxu1 %v5927_v6 }
0x164e   : > { %3507 = vmatprep.subr.bf16.mxu0 %v5932_v8  ;;  %3548 = vmatprep.subr.bf16.mxu1 %v5939_v9 }
0x1651   : > { %3508 = vmatpush1.bf16.msra.mxu0 %v5945_v14  ;;  %3549 = vmatpush1.bf16.msra.mxu1 %v5950_v15 }
0x1652   : > { %3509 = vmatprep.subr.bf16.mxu0 %v5957_v24  ;;  %3550 = vmatprep.subr.bf16.mxu1 %v5963_v16 }
0x1655   : > { %3510 = vmatpush1.bf16.msra.mxu0 %v5970_v17  ;;  %3551 = vmatpush1.bf16.msra.mxu1 %v5975_v18 }
0x1656   : > { %3511 = vmatprep.subr.bf16.mxu0 %v5990_v21  ;;  %3552 = vmatprep.subr.bf16.mxu1 %v5997_v22 }
0x1659   : > { %3512 = vmatpush1.bf16.msra.mxu0 %v6002_v23  ;;  %3553 = vmatpush1.bf16.msra.mxu1 %v6007_v26 }
0x165a   : > { %3513 = vmatprep.subr.bf16.mxu0 %v6012_v27  ;;  %3554 = vmatprep.subr.bf16.mxu1 %v6018_v29 }
0x165d   : > { %3514 = vmatpush1.bf16.msra.mxu0 %v6026_v30  ;;  %3555 = vmatpush1.bf16.msra.mxu1 %v6033_v31 }
0x165e   : > { %3614 = vmatprep.subr.bf16.mxu0 %v5820_v34  ;;  %3655 = vmatprep.subr.bf16.mxu1 %v5825_v51 }
0x1713   : > { %v3418_v52 = vpop.f32.mrb[28].mxu0  ;;  %v3459_v53 = vpop.f32.mrb[28].mxu1 }
0x1714   : > { %v3466_v37 = vadd.f32 %v3418_v52, %v6685_v35  ;;  %v3468_v1 = vadd.f32 %v3459_v53, %v6686_v60  ;;  %v3420_v43 = vpop.f32.mrb[29].mxu0  ;;  %v3461_v41 = vpop.f32.mrb[29].mxu1  ;;  %v6298_v52 = vld [vmem:[%s6654_s8] ss:$16 sps:$4 sm:$0xff]   ;;  %v6310_v53 = vld [vmem:[%s6654_s8 + $0x24] ss:$16 sps:$4 sm:$0xff]  }
0x1715   : > { %v3467_v10 = vadd.f32 %v3420_v43, %v6687_v2  ;;  %v3469_v47 = vadd.f32 %v3461_v41, %v6688_v42  ;;  %v3422_v44 = vpop.f32.mrb[30].mxu0  ;;  %v3463_v11 = vpop.f32.mrb[30].mxu1 }
0x1716   : > { %v4410_v45 = vmul.f32 -1.442695, %v3466_v37  ;;  %v3423_v38 = vpop.f32.mrb[31].mxu0  ;;  %v3464_v7 = vpop.f32.mrb[31].mxu1 }
0x1717   : > { %v4411_v34 = vmul.f32 -1.442695, %v3467_v10  ;;  %v4412_v51 = vmul.f32 -1.442695, %v3469_v47  ;;  %v6376_v38 = vld [vmem:[%s6654_s8 + $0x20] ss:$16 sps:$4 sm:$0xff]  }
0x1718   : > { %5085 = vpow2.f32 %v4410_v45  ;;  %v6368_v45 = vld [vmem:[%s6654_s8 + $0x2c] ss:$16 sps:$4 sm:$0xff]   ;;  %v6382_v7 = vld [vmem:[%s6654_s8 + $0x28] ss:$16 sps:$4 sm:$0xff]  }
0x1719   : > { %5087 = vpow2.f32 %v4411_v34  ;;  %v6388_v34 = vld [vmem:[%s6654_s8 + $0x44] ss:$16 sps:$4 sm:$0xff]  }
0x171a   : > { %5089 = vpow2.f32 %v4412_v51  ;;  %v6394_v51 = vld [vmem:[%s6654_s8 + $0x4c] ss:$16 sps:$4 sm:$0xff]  }
0x171b   : > { %5091 = vtanh.f32 %v3468_v1 }
0x1722   : > { %v5086_v12 = vpop.eup %5085 }
0x1723   : > { %v5088_v50 = vpop.eup %5087  ;;  %v3473_v49 = vadd.f32 1.0, %v5086_v12  ;;  %v6400_v12 = vld [vmem:[%s6654_s8 + $0x40] ss:$16 sps:$4 sm:$0xff]  }
0x1724   : > { %v3479_v4 = vadd.f32 1.0, %v5088_v50  ;;  %v5090_v13 = vpop.eup %5089  ;;  %v6406_v50 = vld [vmem:[%s6654_s8 + $0x48] ss:$16 sps:$4 sm:$0xff]  }
0x1725   : > { %5093 = vrcp.f32 %v3473_v49  ;;  %v5092_v20 = vpop.eup %5091  ;;  %v3486_v36 = vadd.f32 1.0, %v5090_v13  ;;  %v6412_v49 = vld [vmem:[%s6654_s8 + $0x64] ss:$16 sps:$4 sm:$0xff]   ;;  %v6424_v13 = vld [vmem:[%s6654_s8 + $0x60] ss:$16 sps:$4 sm:$0xff]  }
0x1726   : > { %5095 = vrcp.f32 %v3479_v4  ;;  %v6418_v4 = vld [vmem:[%s6654_s8 + $0x6c] ss:$16 sps:$4 sm:$0xff]  }
0x1727   : > { %5097 = vrcp.f32 %v3486_v36  ;;  %v6454_v36 = vld [vmem:[%s6654_s8 + $0x88] ss:$16 sps:$4 sm:$0xff]  }
0x172f   : > { %v5094_v57 = vpop.eup %5093 }
0x1730   : > { %v5096_v5 = vpop.eup %5095  ;;  %v3490_v32 = vmul.f32 %v5094_v57, %v5092_v20  ;;  %v6430_v20 = vld [vmem:[%s6654_s8 + $0x68] ss:$16 sps:$4 sm:$0xff]   ;;  %v6436_v57 = vld [vmem:[%s6654_s8 + $0x84] ss:$16 sps:$4 sm:$0xff]  }
0x1731   : > { %v3489_v19 = vmul.f32 %v5096_v5, %v6250_v25  ;;  %v5098_v33 = vpop.eup %5097  ;;  %v6304_v25 = vld [vmem:[%s6654_s8 + $0x8] ss:$16 sps:$4 sm:$0xff]   ;;  %v6442_v5 = vld [vmem:[%s6654_s8 + $0x8c] ss:$16 sps:$4 sm:$0xff]  }
0x1733   : > { %v6292_v40 = vadd.f32 %v3490_v32, %v3489_v19  ;;  %v6448_v32 = vld [vmem:[%s6654_s8 + $0x80] ss:$16 sps:$4 sm:$0xff]   ;;  %v6460_v19 = vld [vmem:[%s6654_s8 + $0xa4] ss:$16 sps:$4 sm:$0xff]  }
0x1735   : > { %5099 = vtanh.f32 %v6292_v40 }
0x173f   : > { %v5100_v39 = vpop.eup %5099 }
0x1740   : > { %v3493_v48 = vmul.f32 %v5100_v39, %v5098_v33  ;;  %v6472_v33 = vld [vmem:[%s6654_s8 + $0xa0] ss:$16 sps:$4 sm:$0xff]   ;;  %v6478_v39 = vld [vmem:[%s6654_s8 + $0xa8] ss:$16 sps:$4 sm:$0xff]  }
0x1742   : > { %v3498_v46 = vpack.c.bf16 %v3493_v48, %v3493_v48  ;;  %v6484_v48 = vld [vmem:[%s6654_s8 + $0xc4] ss:$16 sps:$4 sm:$0xff]  }
0x1744   : > { %3532 = vmatmul.mubr.bf16.vlgmr.msra.gmra.mrb[32].mxu0 %v3498_v46  ;;  %3573 = vmatmul.mubr.bf16.vlgmr.msra.gmra.mrb[32].mxu1 %v3498_v46  ;;  %v6490_v46 = vld [vmem:[%s6654_s8 + $0xcc] ss:$16 sps:$4 sm:$0xff]  }
0x1745   : > { %3615 = vmatpush1.bf16.msra.mxu0 %v6298_v52  ;;  %3656 = vmatpush1.bf16.msra.mxu1 %v6304_v25 }
0x1746   : > { %3616 = vmatprep.subr.bf16.mxu0 %v6310_v53  ;;  %3657 = vmatprep.subr.bf16.mxu1 %v5848_v54  ;;  %v6345_v54 = vld [vmem:[%s6654_s8 + $0x4] ss:$16 sps:$4 sm:$0xff]  }
0x1747   : > { %3646 = vmatprep.mubr.bf16.mxu0 %v6683_v58  ;;  %3687 = vmatprep.mubr.bf16.mxu1 %v6683_v58 }
0x1749   : > { %3617 = vmatpush1.bf16.msra.mxu0 %v5855_v55  ;;  %3658 = vmatpush1.bf16.msra.mxu1 %v5860_v56  ;;  %v6351_v55 = vld [vmem:[%s6654_s8 + $0xc] ss:$16 sps:$4 sm:$0xff]  }
0x174a   : > { %3618 = vmatprep.subr.bf16.mxu0 %v5875_v59  ;;  %3659 = vmatprep.subr.bf16.mxu1 %v5881_v61  ;;  %v6689_v61 = vld [vmem:[#allocation8_spill] sm:$0xff] }
0x174d   : > { %3619 = vmatpush1.bf16.msra.mxu0 %v5886_v62  ;;  %3660 = vmatpush1.bf16.msra.mxu1 %v5892_v63  ;;  %v6690_v63 = vld [vmem:[#allocation9_spill] sm:$0xff] }
0x174e   : > { %3620 = vmatprep.subr.bf16.mxu0 %v5899_v3  ;;  %3661 = vmatprep.subr.bf16.mxu1 %v5905_v28 }
0x1751   : > { %3621 = vmatpush1.bf16.msra.mxu0 %v5910_v0  ;;  %3662 = vmatpush1.bf16.msra.mxu1 %v5927_v6  ;;  %v6691_v6 = vld [vmem:[#allocation10_spill] sm:$0xff] }
0x1752   : > { %3622 = vmatprep.subr.bf16.mxu0 %v5932_v8  ;;  %3663 = vmatprep.subr.bf16.mxu1 %v5939_v9  ;;  %v6692_v9 = vld [vmem:[#allocation11_spill] sm:$0xff] }
0x1755   : > { %3623 = vmatpush1.bf16.msra.mxu0 %v5945_v14  ;;  %3664 = vmatpush1.bf16.msra.mxu1 %v5950_v15 }
0x1756   : > { %3624 = vmatprep.subr.bf16.mxu0 %v5957_v24  ;;  %3665 = vmatprep.subr.bf16.mxu1 %v5963_v16 }
0x1759   : > { %3625 = vmatpush1.bf16.msra.mxu0 %v5970_v17  ;;  %3666 = vmatpush1.bf16.msra.mxu1 %v5975_v18 }
0x175a   : > { %3626 = vmatprep.subr.bf16.mxu0 %v5990_v21  ;;  %3667 = vmatprep.subr.bf16.mxu1 %v5997_v22 }
0x175d   : > { %3627 = vmatpush1.bf16.msra.mxu0 %v6002_v23  ;;  %3668 = vmatpush1.bf16.msra.mxu1 %v6007_v26 }
0x175e   : > { %3628 = vmatprep.subr.bf16.mxu0 %v6012_v27  ;;  %3669 = vmatprep.subr.bf16.mxu1 %v6018_v29 }
0x1761   : > { %3629 = vmatpush1.bf16.msra.mxu0 %v6026_v30  ;;  %3670 = vmatpush1.bf16.msra.mxu1 %v6033_v31 }
0x1762   : > { %3729 = vmatprep.subr.bf16.mxu0 %v6345_v54  ;;  %3770 = vmatprep.subr.bf16.mxu1 %v6351_v55 }
0x1817   : > { %v3533_v56 = vpop.f32.mrb[32].mxu0  ;;  %v3574_v59 = vpop.f32.mrb[32].mxu1 }
0x1818   : > { %v3581_v62 = vadd.f32 %v3533_v56, %v6689_v61  ;;  %v3583_v3 = vadd.f32 %v3574_v59, %v6690_v63  ;;  %v3535_v28 = vpop.f32.mrb[33].mxu0  ;;  %v3576_v0 = vpop.f32.mrb[33].mxu1  ;;  %v6496_v56 = vld [vmem:[%s6654_s8 + $0xc0] ss:$16 sps:$4 sm:$0xff]   ;;  %v6502_v59 = vld [vmem:[%s6654_s8 + $0xc8] ss:$16 sps:$4 sm:$0xff]  }
0x1819   : > { %v3582_v8 = vadd.f32 %v3535_v28, %v6691_v6  ;;  %v3584_v14 = vadd.f32 %v3576_v0, %v6692_v9  ;;  %v3537_v15 = vpop.f32.mrb[34].mxu0  ;;  %v3578_v24 = vpop.f32.mrb[34].mxu1  ;;  %v6508_v61 = vld [vmem:[%s6654_s8 + $0xe4] ss:$16 sps:$4 sm:$0xff]   ;;  %v6693_v28 = vld [vmem:[#allocation12_spill] sm:$0xff] }
0x181a   : > { %v4413_v16 = vmul.f32 -1.442695, %v3581_v62  ;;  %v3538_v17 = vpop.f32.mrb[35].mxu0  ;;  %v3579_v18 = vpop.f32.mrb[35].mxu1  ;;  %v6514_v62 = vld [vmem:[%s6654_s8 + $0xec] ss:$16 sps:$4 sm:$0xff]  }
0x181b   : > { %v4414_v21 = vmul.f32 -1.442695, %v3582_v8  ;;  %v4415_v22 = vmul.f32 -1.442695, %v3584_v14  ;;  %v6694_v6 = vld [vmem:[#allocation13_spill] sm:$0xff]  ;;  %v6695_v15 = vld [vmem:[#allocation14_spill] sm:$0xff] }
0x181c   : > { %5101 = vpow2.f32 %v4413_v16  ;;  %v6696_v16 = vld [vmem:[#allocation15_spill] sm:$0xff] }
0x181d   : > { %5103 = vpow2.f32 %v4414_v21 }
0x181e   : > { %5105 = vpow2.f32 %v4415_v22 }
0x181f   : > { %5107 = vtanh.f32 %v3583_v3 }
0x1826   : > { %v5102_v23 = vpop.eup %5101 }
0x1827   : > { %v5104_v26 = vpop.eup %5103  ;;  %v3588_v27 = vadd.f32 1.0, %v5102_v23 }
0x1828   : > { %v3594_v29 = vadd.f32 1.0, %v5104_v26  ;;  %v5106_v35 = vpop.eup %5105 }
0x1829   : > { %5109 = vrcp.f32 %v3588_v27  ;;  %v5108_v37 = vpop.eup %5107  ;;  %v3601_v41 = vadd.f32 1.0, %v5106_v35 }
0x182a   : > { %5111 = vrcp.f32 %v3594_v29 }
0x182b   : > { %5113 = vrcp.f32 %v3601_v41 }
0x1833   : > { %v5110_v60 = vpop.eup %5109 }
0x1834   : > { %v5112_v1 = vpop.eup %5111  ;;  %v3605_v43 = vmul.f32 %v5110_v60, %v5108_v37 }
0x1835   : > { %v3604_v2 = vmul.f32 %v5112_v1, %v6292_v40  ;;  %v5114_v42 = vpop.eup %5113  ;;  %v6466_v40 = vld [vmem:[%s6654_s8 + $0xac] ss:$16 sps:$4 sm:$0xff]  }
0x1837   : > { %v6359_v10 = vadd.f32 %v3605_v43, %v3604_v2 }
0x1839   : > { %5115 = vtanh.f32 %v6359_v10 }
0x1843   : > { %v5116_v47 = vpop.eup %5115 }
0x1844   : > { %v3608_v44 = vmul.f32 %v5116_v47, %v5114_v42 }
0x1846   : > { %v3613_v11 = vpack.c.bf16 %v3608_v44, %v3608_v44 }
0x1848   : > { %3647 = vmatmul.mubr.bf16.vlgmr.msra.gmra.mrb[36].mxu0 %v3613_v11  ;;  %3688 = vmatmul.mubr.bf16.vlgmr.msra.gmra.mrb[36].mxu1 %v3613_v11 }
0x1849   : > { %3730 = vmatpush1.bf16.msra.mxu0 %v6298_v52  ;;  %3771 = vmatpush1.bf16.msra.mxu1 %v6304_v25 }
0x184a   : > { %3731 = vmatprep.subr.bf16.mxu0 %v6310_v53  ;;  %3772 = vmatprep.subr.bf16.mxu1 %v6368_v45 }
0x184b   : > { %3761 = vmatprep.mubr.bf16.mxu0 %v6683_v58  ;;  %3802 = vmatprep.mubr.bf16.mxu1 %v6683_v58 }
0x184d   : > { %3732 = vmatpush1.bf16.msra.mxu0 %v6376_v38  ;;  %3773 = vmatpush1.bf16.msra.mxu1 %v6382_v7 }
0x184e   : > { %3733 = vmatprep.subr.bf16.mxu0 %v6388_v34  ;;  %3774 = vmatprep.subr.bf16.mxu1 %v6394_v51 }
0x1851   : > { %3734 = vmatpush1.bf16.msra.mxu0 %v6400_v12  ;;  %3775 = vmatpush1.bf16.msra.mxu1 %v6406_v50 }
0x1852   : > { %3735 = vmatprep.subr.bf16.mxu0 %v6412_v49  ;;  %3776 = vmatprep.subr.bf16.mxu1 %v6418_v4 }
0x1855   : > { %3736 = vmatpush1.bf16.msra.mxu0 %v6424_v13  ;;  %3777 = vmatpush1.bf16.msra.mxu1 %v6430_v20 }
0x1856   : > { %3737 = vmatprep.subr.bf16.mxu0 %v6436_v57  ;;  %3778 = vmatprep.subr.bf16.mxu1 %v6442_v5 }
0x1859   : > { %3738 = vmatpush1.bf16.msra.mxu0 %v6448_v32  ;;  %3779 = vmatpush1.bf16.msra.mxu1 %v6454_v36 }
0x185a   : > { %3739 = vmatprep.subr.bf16.mxu0 %v6460_v19  ;;  %3780 = vmatprep.subr.bf16.mxu1 %v6466_v40 }
0x185d   : > { %3740 = vmatpush1.bf16.msra.mxu0 %v6472_v33  ;;  %3781 = vmatpush1.bf16.msra.mxu1 %v6478_v39 }
0x185e   : > { %3741 = vmatprep.subr.bf16.mxu0 %v6484_v48  ;;  %3782 = vmatprep.subr.bf16.mxu1 %v6490_v46 }
0x1861   : > { %3742 = vmatpush1.bf16.msra.mxu0 %v6496_v56  ;;  %3783 = vmatpush1.bf16.msra.mxu1 %v6502_v59 }
0x1862   : > { %3743 = vmatprep.subr.bf16.mxu0 %v6508_v61  ;;  %3784 = vmatprep.subr.bf16.mxu1 %v6514_v62 }
0x1865   : > { %3744 = vmatpush1.bf16.msra.mxu0 %v6026_v30  ;;  %3785 = vmatpush1.bf16.msra.mxu1 %v6033_v31 }
0x1866   : > { %3844 = vmatprep.subr.bf16.mxu0 %v6345_v54  ;;  %3885 = vmatprep.subr.bf16.mxu1 %v6351_v55 }
0x191b   : > { %v3648_v63 = vpop.f32.mrb[36].mxu0  ;;  %v3689_v3 = vpop.f32.mrb[36].mxu1 }
0x191c   : > { %v3696_v0 = vadd.f32 %v3648_v63, %v6693_v28  ;;  %v3698_v8 = vadd.f32 %v3689_v3, %v6694_v6  ;;  %v3650_v9 = vpop.f32.mrb[37].mxu0  ;;  %v3691_v14 = vpop.f32.mrb[37].mxu1 }
0x191d   : > { %v3697_v24 = vadd.f32 %v3650_v9, %v6695_v15  ;;  %v3699_v17 = vadd.f32 %v3691_v14, %v6696_v16  ;;  %v3652_v18 = vpop.f32.mrb[38].mxu0  ;;  %v3693_v30 = vpop.f32.mrb[38].mxu1  ;;  %v5025_v15 = vld [vmem:[%s6656_s10] sm:$0xff]   ;;  %v5026_v16 = vld [vmem:[%s6656_s10 + $0x8] sm:$0xff]  }
0x191e   : > { %v4416_v21 = vmul.f32 -1.442695, %v3696_v0  ;;  %v3653_v31 = vpop.f32.mrb[39].mxu0  ;;  %v3694_v22 = vpop.f32.mrb[39].mxu1  ;;  %v5028_v18 = vld [vmem:[%s6656_s10 + $0x18] sm:$0xff]   ;;  %v5029_v30 = vld [vmem:[%s6656_s10 + $0x20] sm:$0xff]  }
0x191f   : > { %v4417_v54 = vmul.f32 -1.442695, %v3697_v24  ;;  %v4418_v55 = vmul.f32 -1.442695, %v3699_v17  ;;  %v5214_v24 = vmov 0.0   ;;  %v5027_v17 = vld [vmem:[%s6656_s10 + $0x10] sm:$0xff]  }
0x1920   : > { %5117 = vpow2.f32 %v4416_v21  ;;  %v5030_v21 = vld [vmem:[%s6656_s10 + $0x28] sm:$0xff]   ;;  %v5031_v31 = vld [vmem:[%s6656_s10 + $0x30] sm:$0xff]   ;;  %v5032_v22 = vld [vmem:[%s6656_s10 + $0x38] sm:$0xff]  }
0x1921   : > { %5119 = vpow2.f32 %v4417_v54 }
0x1922   : > { %5121 = vpow2.f32 %v4418_v55 }
0x1923   : > { %5123 = vtanh.f32 %v3698_v8 }
0x192a   : > { %v5118_v23 = vpop.eup %5117 }
0x192b   : > { %v5120_v26 = vpop.eup %5119  ;;  %v3703_v27 = vadd.f32 1.0, %v5118_v23  ;;  %v6701_v23 = vld [vmem:[#allocation20_spill] sm:$0xff] }
0x192c   : > { %v3709_v29 = vadd.f32 1.0, %v5120_v26  ;;  %v5122_v35 = vpop.eup %5121 }
0x192d   : > { %5125 = vrcp.f32 %v3703_v27  ;;  %v5124_v37 = vpop.eup %5123  ;;  %v3716_v41 = vadd.f32 1.0, %v5122_v35  ;;  %v6702_v27 = vld [vmem:[#allocation21_spill] sm:$0xff] }
0x192e   : > { %5127 = vrcp.f32 %v3709_v29 }
0x192f   : > { %5129 = vrcp.f32 %v3716_v41 }
0x1937   : > { %v5126_v60 = vpop.eup %5125 }
0x1938   : > { %v5128_v1 = vpop.eup %5127  ;;  %v3720_v43 = vmul.f32 %v5126_v60, %v5124_v37  ;;  %v6703_v60 = vld [vmem:[#allocation22_spill] sm:$0xff] }
0x1939   : > { %v3719_v2 = vmul.f32 %v5128_v1, %v6359_v10  ;;  %v5130_v47 = vpop.eup %5129  ;;  %v6697_v10 = vld [vmem:[#allocation16_spill] sm:$0xff] }
0x193b   : > { %v6526_v42 = vadd.f32 %v3720_v43, %v3719_v2  ;;  %v6704_v43 = vld [vmem:[#allocation23_spill] sm:$0xff] }
0x193d   : > { %5131 = vtanh.f32 %v6526_v42 }
0x1947   : > { %v5132_v44 = vpop.eup %5131 }
0x1948   : > { %v3723_v11 = vmul.f32 %v5132_v44, %v5130_v47 }
0x194a   : > { %v3728_v63 = vpack.c.bf16 %v3723_v11, %v3723_v11 }
0x194c   : > { %3762 = vmatmul.mubr.bf16.vlgmr.msra.gmra.mrb[40].mxu0 %v3728_v63  ;;  %3803 = vmatmul.mubr.bf16.vlgmr.msra.gmra.mrb[40].mxu1 %v3728_v63 }
0x194d   : > { %3845 = vmatpush1.bf16.msra.mxu0 %v6298_v52  ;;  %3886 = vmatpush1.bf16.msra.mxu1 %v6304_v25  ;;  %v5202_v52 = vld [vmem:[%s6654_s8 + $0xe8] ss:$16 sps:$4 sm:$0xff]  }
0x194e   : > { %3846 = vmatprep.subr.bf16.mxu0 %v6310_v53  ;;  %3887 = vmatprep.subr.bf16.mxu1 %v6368_v45 }
0x194f   : > { %3876 = vmatprep.mubr.bf16.mxu0 %v6683_v58  ;;  %3917 = vmatprep.mubr.bf16.mxu1 %v6683_v58  ;;  %v5201_v58 = vld [vmem:[%s6654_s8 + $0xe0] ss:$16 sps:$4 sm:$0xff]  }
0x1951   : > { %3847 = vmatpush1.bf16.msra.mxu0 %v6376_v38  ;;  %3888 = vmatpush1.bf16.msra.mxu1 %v6382_v7  ;;  %v6698_v38 = vld [vmem:[#allocation17_spill] sm:$0xff] }
0x1952   : > { %3848 = vmatprep.subr.bf16.mxu0 %v6388_v34  ;;  %3889 = vmatprep.subr.bf16.mxu1 %v6394_v51 }
0x1955   : > { %3849 = vmatpush1.bf16.msra.mxu0 %v6400_v12  ;;  %3890 = vmatpush1.bf16.msra.mxu1 %v6406_v50  ;;  %v6699_v12 = vld [vmem:[#allocation18_spill] sm:$0xff] }
0x1956   : > { %3850 = vmatprep.subr.bf16.mxu0 %v6412_v49  ;;  %3891 = vmatprep.subr.bf16.mxu1 %v6418_v4  ;;  %v6700_v49 = vld [vmem:[#allocation19_spill] sm:$0xff] }
0x1959   : > { %3851 = vmatpush1.bf16.msra.mxu0 %v6424_v13  ;;  %3892 = vmatpush1.bf16.msra.mxu1 %v6430_v20 }
0x195a   : > { %3852 = vmatprep.subr.bf16.mxu0 %v6436_v57  ;;  %3893 = vmatprep.subr.bf16.mxu1 %v6442_v5 }
0x195d   : > { %3853 = vmatpush1.bf16.msra.mxu0 %v6448_v32  ;;  %3894 = vmatpush1.bf16.msra.mxu1 %v6454_v36 }
0x195e   : > { %3854 = vmatprep.subr.bf16.mxu0 %v6460_v19  ;;  %3895 = vmatprep.subr.bf16.mxu1 %v6466_v40 }
0x1961   : > { %3855 = vmatpush1.bf16.msra.mxu0 %v6472_v33  ;;  %3896 = vmatpush1.bf16.msra.mxu1 %v6478_v39 }
0x1962   : > { %3856 = vmatprep.subr.bf16.mxu0 %v6484_v48  ;;  %3897 = vmatprep.subr.bf16.mxu1 %v6490_v46 }
0x1965   : > { %3857 = vmatpush1.bf16.msra.mxu0 %v6496_v56  ;;  %3898 = vmatpush1.bf16.msra.mxu1 %v6502_v59 }
0x1966   : > { %3858 = vmatprep.subr.bf16.mxu0 %v6508_v61  ;;  %3899 = vmatprep.subr.bf16.mxu1 %v6514_v62 }
0x1969   : > { %3859 = vmatpush1.bf16.msra.mxu0 %v5201_v58  ;;  %3900 = vmatpush1.bf16.msra.mxu1 %v5202_v52 }
0x196a   : > { %4884 = vmatprep.subr.bf16.mxu0 %v5214_v24  ;;  %4904 = vmatprep.subr.bf16.mxu1 %v5214_v24 }
0x1a1f   : > { %v3763_v25 = vpop.f32.mrb[40].mxu0  ;;  %v3804_v53 = vpop.f32.mrb[40].mxu1 }
0x1a20   : > { %v3811_v45 = vadd.f32 %v3763_v25, %v6697_v10  ;;  %v3813_v7 = vadd.f32 %v3804_v53, %v6698_v38  ;;  %v3765_v34 = vpop.f32.mrb[41].mxu0  ;;  %v3806_v51 = vpop.f32.mrb[41].mxu1 }
0x1a21   : > { %v3812_v50 = vadd.f32 %v3765_v34, %v6699_v12  ;;  %v3814_v4 = vadd.f32 %v3806_v51, %v6700_v49  ;;  %v3767_v13 = vpop.f32.mrb[42].mxu0  ;;  %v3808_v20 = vpop.f32.mrb[42].mxu1 }
0x1a22   : > { %v4419_v57 = vmul.f32 -1.442695, %v3811_v45  ;;  %v3768_v5 = vpop.f32.mrb[43].mxu0  ;;  %v3809_v32 = vpop.f32.mrb[43].mxu1 }
0x1a23   : > { %v4420_v36 = vmul.f32 -1.442695, %v3812_v50  ;;  %v4421_v19 = vmul.f32 -1.442695, %v3814_v4  ;;  %v5033_v5 = vld [vmem:[%s6658_s12] sm:$0xff]   ;;  %v5034_v32 = vld [vmem:[%s6658_s12 + $0x8] sm:$0xff]  }
0x1a24   : > { %5133 = vpow2.f32 %v4419_v57 }
0x1a25   : > { %5135 = vpow2.f32 %v4420_v36  ;;  %v5035_v36 = vld [vmem:[%s6658_s12 + $0x10] sm:$0xff]  }
0x1a26   : > { %5137 = vpow2.f32 %v4421_v19  ;;  %v5036_v19 = vld [vmem:[%s6658_s12 + $0x18] sm:$0xff]  }
0x1a27   : > { %5139 = vtanh.f32 %v3813_v7 }
0x1a2e   : > { %v5134_v40 = vpop.eup %5133 }
0x1a2f   : > { %v5136_v33 = vpop.eup %5135  ;;  %v3818_v39 = vadd.f32 1.0, %v5134_v40  ;;  %v4425_v40 = vld [vmem:[%s6657_s11] ss:$0 sm:$0xff] }
0x1a30   : > { %v3824_v48 = vadd.f32 1.0, %v5136_v33  ;;  %v5138_v46 = vpop.eup %5137 }
0x1a31   : > { %5141 = vrcp.f32 %v3818_v39  ;;  %v5140_v56 = vpop.eup %5139  ;;  %v3831_v3 = vadd.f32 1.0, %v5138_v46 }
0x1a32   : > { %5143 = vrcp.f32 %v3824_v48 }
0x1a33   : > { %5145 = vrcp.f32 %v3831_v3 }
0x1a3b   : > { %v5142_v59 = vpop.eup %5141 }
0x1a3c   : > { %v5144_v61 = vpop.eup %5143  ;;  %v3835_v62 = vmul.f32 %v5142_v59, %v5140_v56 }
0x1a3d   : > { %v3834_v28 = vmul.f32 %v5144_v61, %v6526_v42  ;;  %v5146_v6 = vpop.eup %5145 }
0x1a3f   : > { %v6570_v0 = vadd.f32 %v3835_v62, %v3834_v28 }
0x1a41   : > { %5147 = vtanh.f32 %v6570_v0 }
0x1a4b   : > { %v5148_v8 = vpop.eup %5147 }
0x1a4c   : > { %v3838_v9 = vmul.f32 %v5148_v8, %v5146_v6 }
0x1a4e   : > { %v3843_v14 = vpack.c.bf16 %v3838_v9, %v3838_v9 }
0x1a50   : > { %3877 = vmatmul.mubr.bf16.vlgmr.msra.gmra.mrb[44].mxu0 %v3843_v14  ;;  %3918 = vmatmul.mubr.bf16.vlgmr.msra.gmra.mrb[44].mxu1 %v3843_v14 }
0x1a51   : > { %4885 = vmatpush3.bf16.msra.mxu0 %v5025_v15  ;;  %4900 = vmatprep.mubr.msk.bf16.mxu0 %vm5215_vm9, %v5214_v24 }
0x1a52   : > { %4886 = vmatprep.subr.bf16.mxu0 %v5214_v24  ;;  %4912 = vmatprep.mubr.msk.bf16.mxu1 %vm5215_vm9, %v5214_v24 }
0x1a53   : > { %4905 = vmatpush3.bf16.msra.mxu1 %v5033_v5 }
0x1a54   : > { %4906 = vmatprep.subr.bf16.mxu1 %v5214_v24 }
0x1a55   : > { %4887 = vmatpush3.bf16.msra.mxu0 %v5026_v16 }
0x1a56   : > { %4888 = vmatprep.subr.bf16.mxu0 %v5214_v24 }
0x1a57   : > { %4907 = vmatpush3.bf16.msra.mxu1 %v5034_v32 }
0x1a58   : > { %4908 = vmatprep.subr.bf16.mxu1 %v5214_v24 }
0x1a59   : > { %4889 = vmatpush3.bf16.msra.mxu0 %v5027_v17 }
0x1a5a   : > { %4890 = vmatprep.subr.bf16.mxu0 %v5214_v24 }
0x1a5b   : > { %4909 = vmatpush3.bf16.msra.mxu1 %v5035_v36 }
0x1a5c   : > { %4910 = vmatprep.subr.bf16.mxu1 %v5214_v24 }
0x1a5d   : > { %4891 = vmatpush3.bf16.msra.mxu0 %v5028_v18 }
0x1a5e   : > { %4892 = vmatprep.subr.bf16.mxu0 %v5214_v24 }
0x1a5f   : > { %4911 = vmatpush3.bf16.msra.mxu1 %v5036_v19 }
0x1a61   : > { %4893 = vmatpush3.bf16.msra.mxu0 %v5029_v30 }
0x1a62   : > { %4894 = vmatprep.subr.bf16.mxu0 %v5214_v24 }
0x1a65   : > { %4895 = vmatpush3.bf16.msra.mxu0 %v5030_v21 }
0x1a66   : > { %4896 = vmatprep.subr.bf16.mxu0 %v5214_v24 }
0x1a69   : > { %4897 = vmatpush3.bf16.msra.mxu0 %v5031_v31 }
0x1a6a   : > { %4898 = vmatprep.subr.bf16.mxu0 %v5214_v24 }
0x1a6d   : > { %4899 = vmatpush3.bf16.msra.mxu0 %v5032_v22 }
0x1b23   : > { %v3878_v54 = vpop.f32.mrb[44].mxu0  ;;  %v3919_v55 = vpop.f32.mrb[44].mxu1 }
0x1b24   : > { %v3926_v26 = vadd.f32 %v3878_v54, %v6701_v23  ;;  %v3928_v29 = vadd.f32 %v3919_v55, %v6702_v27  ;;  %v3880_v35 = vpop.f32.mrb[45].mxu0  ;;  %v3921_v37 = vpop.f32.mrb[45].mxu1  ;;  %v4434_v55 = vld [vmem:[%s6657_s11 + $0x1] ss:$0 sm:$0xff] }
0x1b25   : > { %v3927_v1 = vadd.f32 %v3880_v35, %v6703_v60  ;;  %v3929_v41 = vadd.f32 %v3921_v37, %v6704_v43  ;;  %v3882_v2 = vpop.f32.mrb[46].mxu0  ;;  %v3923_v42 = vpop.f32.mrb[46].mxu1 }
0x1b26   : > { %v4422_v47 = vmul.f32 -1.442695, %v3926_v26  ;;  %v3883_v44 = vpop.f32.mrb[47].mxu0  ;;  %v3924_v11 = vpop.f32.mrb[47].mxu1  ;;  %v4435_v26 = vld [vmem:[%s6657_s11 + $0x2] ss:$0 sm:$0xff] }
0x1b27   : > { %v4423_v63 = vmul.f32 -1.442695, %v3927_v1  ;;  %v4424_v58 = vmul.f32 -1.442695, %v3929_v41 }
0x1b28   : > { %5149 = vpow2.f32 %v4422_v47 }
0x1b29   : > { %5151 = vpow2.f32 %v4423_v63 }
0x1b2a   : > { %5153 = vpow2.f32 %v4424_v58 }
0x1b2b   : > { %5155 = vtanh.f32 %v3928_v29 }
0x1b32   : > { %v5150_v52 = vpop.eup %5149 }
0x1b33   : > { %v5152_v25 = vpop.eup %5151  ;;  %v3933_v53 = vadd.f32 1.0, %v5150_v52 }
0x1b34   : > { %v3939_v10 = vadd.f32 1.0, %v5152_v25  ;;  %v5154_v45 = vpop.eup %5153 }
0x1b35   : > { %5157 = vrcp.f32 %v3933_v53  ;;  %v5156_v38 = vpop.eup %5155  ;;  %v3946_v12 = vadd.f32 1.0, %v5154_v45 }
0x1b36   : > { %5159 = vrcp.f32 %v3939_v10 }
0x1b37   : > { %5161 = vrcp.f32 %v3946_v12 }
0x1b3f   : > { %v5158_v7 = vpop.eup %5157 }
0x1b40   : > { %v5160_v34 = vpop.eup %5159  ;;  %v3950_v51 = vmul.f32 %v5158_v7, %v5156_v38 }
0x1b41   : > { %v3949_v50 = vmul.f32 %v5160_v34, %v6570_v0  ;;  %v5162_v4 = vpop.eup %5161 }
0x1b43   : > { %v3951_v49 = vadd.f32 %v3950_v51, %v3949_v50 }
0x1b45   : > { %5163 = vtanh.f32 %v3951_v49 }
0x1b4f   : > { %v5164_v13 = vpop.eup %5163 }
0x1b50   : > { %v3953_v20 = vmul.f32 %v5164_v13, %v5162_v4 }
0x1b52   : > { %v3954_v57 = vpack.c.bf16 %v3953_v20, %v3953_v20 }
0x1b54   : > { %4901 = vmatmul.mubr.bf16.vlgmr.msra.gmra.mrb[48].mxu0 %v3954_v57 }
0x1c27   : > { %v4060_v33 = vpop.f32.mrb[48].mxu0 }
0x1c28   : > { %v4061_v39 = vadd.f32 %v4425_v40, %v4060_v33  ;;  %v4902_v48 = vpop.f32.mrb[49].mxu0 }
0x1c29   : > { %v4063_v46 = vpop.f32.mrb[50].mxu0 }
0x1c2a   : > { %v4067_v56 = vsel %vm4066_vm10, %v4061_v39, 0.0  ;;  %v4903_v59 = vpop.f32.mrb[51].mxu0 }
0x1c2b   : > { %v4068_v61 = vrot.slane %v4067_v56, 4 }
0x1c2d   : > { %v4069_v62 = vadd.f32 %v4068_v61, %v4067_v56 }
0x1c2f   : > { %v4070_v3 = vrot.slane %v4069_v62, 2 }
0x1c31   : > { %v4071_v28 = vadd.f32 %v4070_v3, %v4069_v62 }
0x1c33   : > { %v4072_v0 = vrot.slane %v4071_v28, 1 }
0x1c35   : > { %v4073_v6 = vadd.f32 %v4072_v0, %v4071_v28 }
0x1c37   : > { %v4075_v8 = vmul.f32 0.125, %v4073_v6 }
0x1c39   : > { %v4076_v9 = vsub.f32 %v4061_v39, %v4075_v8 }
0x1c3b   : > { %v4077_v14 = vmul.f32 %v4076_v9, %v4076_v9 }
0x1c3d   : > { %v4078_v15 = vsel %vm4066_vm10, %v4077_v14, 0.0 }
0x1c3e   : > { %v4079_v24 = vrot.slane %v4078_v15, 4 }
0x1c40   : > { %v4080_v16 = vadd.f32 %v4079_v24, %v4078_v15 }
0x1c42   : > { %v4081_v17 = vrot.slane %v4080_v16, 2 }
0x1c44   : > { %v4082_v18 = vadd.f32 %v4081_v17, %v4080_v16 }
0x1c46   : > { %v4083_v30 = vrot.slane %v4082_v18, 1 }
0x1c48   : > { %v4084_v21 = vadd.f32 %v4083_v30, %v4082_v18 }
0x1c4a   : > { %v4085_v31 = vmul.f32 0.125, %v4084_v21 }
0x1c4c   : > { %v4086_v22 = vadd.f32 1e-05, %v4085_v31 }
0x1c4e   : > { %5165 = vrsqrt.f32 %v4086_v22 }
0x1c58   : > { %v5166_v54 = vpop.eup %5165 }
0x1c59   : > { %v4088_v23 = vmul.f32 %v5166_v54, %v4076_v9 }
0x1c5b   : > { %v4093_v27 = vmul.f32 %v4434_v55, %v4088_v23 }
0x1c5d   : > { %v4098_v29 = vadd.f32 %v4435_v26, %v4093_v27 }
0x1c5f   : > { %v4099_v35 = vmax.f32 %v4098_v29, 0.0 }
0x1c61   : > { %v4100_v37 = vpack.c.bf16 %v4099_v35, %v4099_v35 }
0x1c63   : > { %4913 = vmatmul.mubr.msk.bf16.vlgmr.msra.gmra.mrb[48].mxu1 %vm4066_vm10, %v4100_v37 }
0x1d36   : > { %v4170_v60 = vpop.f32.mrb[48].mxu1 }
0x1d37   : > { %v4914_v1 = vpop.f32.mrb[49].mxu1  ;;  %v4176_v43 = vmul.f32 %v4170_v60, %v4170_v60 }
0x1d38   : > { %v4173_v41 = vpop.f32.mrb[50].mxu1 }
0x1d39   : > { %v4915_v2 = vpop.f32.mrb[51].mxu1  ;;  %v4178_v42 = vsel %vm4177_vm11, %v4176_v43, 0.0 }
0x1d3a   : > { %4179 = vadd.xlane.f32.xlu0 %v4178_v42 }
0x1dc7   : > { %v4180_v47 = vpop.xlane.xlu0 %4179 }
0x1dc8   : > { %5167 = vrsqrt.f32 %v4180_v47  ;;  %vm4183_vm12 = vcmp.eq.f32.partialorder %v4180_v47, inf  ;;  %v4186_v63 = vand.u32 2147483648, %v4180_v47  ;;  %vm4185_vm13 = vcmp.eq.f32.partialorder %v4180_v47, 0.0 }
0x1dd2   : > { %v5168_v44 = vpop.eup %5167 }
0x1dd3   : > { %v4182_v11 = vmul.f32 %v5168_v44, %v4180_v47 }
0x1dd5   : > { %v4184_v58 = vsel %vm4183_vm12, %v4180_v47, %v4182_v11 }
0x1dd6   : > { %v4187_v52 = vsel %vm4185_vm13, %v4186_v63, %v4184_v58 }
0x1dd7   : > { %v4188_v25 = vmax.f32 %v4187_v52, 1e-12 }
0x1dd9   : > { %5169 = vrcp.f32 %v4188_v25 }
0x1de3   : > { %v5170_v53 = vpop.eup %5169 }
0x1de4   : > { %v4190_v10 = vmul.f32 %v5170_v53, %v4170_v60 }
0x1de6   : > { %4191 = vst.msk [vmem:[%s5301_s14] sm:$0xff] %vm4177_vm11, %v4190_v10 }
0x1de7 PF: > { %s23_s25 = sadd.s32 1, %s5209_s25  }
0x1de8   : > { %p20_p6 = scmp.ge.s32.totalorder %s23_s25, 4  }
0x1dea   :  { %22 = sbr.rel (!%p20_p6) target bundleno = 1 (0x1), region = 115 }

</bundles_post_ra>
